<compile_context>
chip_gen: v6e
topology: v6e:2x2x1
jax: 0.10.0
libtpu: 0.0.40
codegen_flags: <defaults>
</compile_context>

<pallas_src>
import math

import jax
import jax.numpy as jnp
from jax.experimental import pallas as pl
from jax.experimental.pallas import tpu as pltpu

# ----------------------------- config ---------------------------------------
B, S = 2, 8            # batch, sequence length
D = 32                 # d_model
H = 4                  # number of heads
DH = D // H            # head dim
DFF = 64               # feed-forward hidden dim
VOCAB = 50
N_ENCODER = 2
EPS = 1e-6
DTYPE = jnp.float32
EMB_SCALE = math.sqrt(D)
N = B * S


# ----------------------------- fused kernel ---------------------------------
def encoder_kernel(xemb_ref, pe_ref, mask_ref,
                   g1_ref, be1_ref, wqkv_ref, bqkv_ref, wo_ref, bo_ref,
                   g2_ref, be2_ref, w1_ref, b1_ref, w2_ref, b2_ref,
                   gl_ref, bl_ref, o_ref):
    # Activations: (N=B*S, D) slab, f32, resident for the whole kernel.
    x = xemb_ref[...].astype(jnp.float32) * EMB_SCALE + pe_ref[...]
    mask = mask_ref[...]                      # (B, 1, S); 1 = keep, 0 = masked
    scale = 1.0 / math.sqrt(DH)

    def layer_norm(v, g, b):
        mu = jnp.mean(v, axis=-1, keepdims=True)
        var = jnp.mean((v - mu) ** 2, axis=-1, keepdims=True)
        return (v - mu) * jax.lax.rsqrt(var + EPS) * g + b

    for l in range(N_ENCODER):                # static unroll, L = 2
        # ---------------- self-attention sub-layer (pre-norm) ----------------
        x1 = layer_norm(x, g1_ref[l], be1_ref[l])                       # (N, D)
        # Fused QKV projection: one lane-dense (N, D) x (D, 3D) matmul.
        qkv = jnp.dot(x1, wqkv_ref[l],
                      preferred_element_type=jnp.float32) + bqkv_ref[l]  # (N, 3D)
        q = qkv[:, 0 * D:1 * D]
        k = qkv[:, 1 * D:2 * D]
        v = qkv[:, 2 * D:3 * D]

        head_outs = []
        for h in range(H):                    # static unroll, H = 4
            qh = q[:, h * DH:(h + 1) * DH]    # (N, DH)
            kh = k[:, h * DH:(h + 1) * DH]
            vh = v[:, h * DH:(h + 1) * DH]
            rows = []
            for b in range(B):                # static unroll, B = 2
                qb = qh[b * S:(b + 1) * S, :]                     # (S, DH)
                kb = kh[b * S:(b + 1) * S, :]
                vb = vh[b * S:(b + 1) * S, :]
                sc = jnp.dot(qb, kb.T,
                             preferred_element_type=jnp.float32) * scale  # (S, S)
                # key-mask broadcast over query rows; -1e9 on masked keys
                sc = jnp.where(mask[b] == 0.0, jnp.float32(-1e9), sc)
                sc = sc - jnp.max(sc, axis=-1, keepdims=True)
                p = jnp.exp(sc)
                p = p * pl.reciprocal(jnp.sum(p, axis=-1, keepdims=True),
                                      approx=True)               # EUP, free slot
                rows.append(jnp.dot(p, vb,
                                    preferred_element_type=jnp.float32))  # (S, DH)
            head_outs.append(jnp.concatenate(rows, axis=0))       # (N, DH)
        attn2d = jnp.concatenate(head_outs, axis=1)               # (N, D)

        mha = jnp.dot(attn2d, wo_ref[l],
                      preferred_element_type=jnp.float32) + bo_ref[l]
        x = x + mha                           # dropout_1 = identity (eval)

        # ---------------- feed-forward sub-layer (pre-norm) -------------------
        x2 = layer_norm(x, g2_ref[l], be2_ref[l])
        hid = jnp.maximum(
            jnp.dot(x2, w1_ref[l], preferred_element_type=jnp.float32)
            + b1_ref[l], 0.0)                                      # (N, DFF)
        ffn = jnp.dot(hid, w2_ref[l],
                      preferred_element_type=jnp.float32) + b2_ref[l]
        x = x + ffn                           # dropout_2 = identity (eval)

    o_ref[...] = layer_norm(x, gl_ref[...], bl_ref[...]).astype(o_ref.dtype)


# ----------------------------- wrapper ---------------------------------------
def _full_block(shape):
    n = len(shape)
    return pl.BlockSpec(shape, lambda i, _n=n: (0,) * _n)


def encoder_forward(src, src_mask, params, pe_tiled):
    # src: (B, S) int32 token ids; src_mask: (B, 1, S) float32 (1=keep, 0=pad)
    x_emb = params["embed"][src].reshape(N, D)        # gather = JAX glue

    args = (
        x_emb, pe_tiled, src_mask,
        params["g1"], params["be1"], params["wqkv"], params["bqkv"],
        params["wo"], params["bo"],
        params["g2"], params["be2"], params["w1"], params["b1"],
        params["w2"], params["b2"],
        params["gamma_last"], params["beta_last"],
    )
    out2d = pl.pallas_call(
        encoder_kernel,
        out_shape=jax.ShapeDtypeStruct((N, D), DTYPE),
        grid=(1,),
        in_specs=[_full_block(a.shape) for a in args],
        out_specs=pl.BlockSpec((N, D), lambda i: (0, 0)),
        compiler_params=pltpu.CompilerParams(
            dimension_semantics=("arbitrary",)),
    )(*args)
    return out2d.reshape(B, S, D)


# ----------------------------- parameter init --------------------------------
def init_params(key):
    def dense(k, din, dout):
        return jax.random.normal(k, (din, dout), DTYPE) * 0.02

    keys = jax.random.split(key, 1 + N_ENCODER)
    embed = jax.random.normal(keys[0], (VOCAB, D), DTYPE) * 0.02

    wqkv, bqkv, wo, bo, w1, b1, w2, b2 = [], [], [], [], [], [], [], []
    g1, be1, g2, be2 = [], [], [], []
    for li in range(N_ENCODER):
        lk = jax.random.split(keys[1 + li], 6)
        wq = dense(lk[0], D, D)
        wk = dense(lk[1], D, D)
        wv = dense(lk[2], D, D)
        wqkv.append(jnp.concatenate([wq, wk, wv], axis=1))        # (D, 3D)
        bqkv.append(jnp.zeros((1, 3 * D), DTYPE))
        wo.append(dense(lk[3], D, D)); bo.append(jnp.zeros((1, D), DTYPE))
        w1.append(dense(lk[4], D, DFF)); b1.append(jnp.zeros((1, DFF), DTYPE))
        w2.append(dense(lk[5], DFF, D)); b2.append(jnp.zeros((1, D), DTYPE))
        g1.append(jnp.ones((1, D), DTYPE)); be1.append(jnp.zeros((1, D), DTYPE))
        g2.append(jnp.ones((1, D), DTYPE)); be2.append(jnp.zeros((1, D), DTYPE))

    stack = lambda xs: jnp.stack(xs, axis=0)
    return {
        "embed": embed,
        "wqkv": stack(wqkv), "bqkv": stack(bqkv),
        "wo": stack(wo), "bo": stack(bo),
        "w1": stack(w1), "b1": stack(b1),
        "w2": stack(w2), "b2": stack(b2),
        "g1": stack(g1), "be1": stack(be1),
        "g2": stack(g2), "be2": stack(be2),
        "gamma_last": jnp.ones((1, D), DTYPE),
        "beta_last": jnp.zeros((1, D), DTYPE),
    }


def sinusoidal_pe(seq_len, d_model):
    pos = jnp.arange(seq_len, dtype=jnp.float32)[:, None]
    i = jnp.arange(0, d_model, 2, dtype=jnp.float32)[None, :]
    angle = pos / jnp.power(10000.0, i / d_model)
    pe = jnp.zeros((seq_len, d_model), DTYPE)
    pe = pe.at[:, 0::2].set(jnp.sin(angle))
    pe = pe.at[:, 1::2].set(jnp.cos(angle))
    return pe


# ----------------------------- main -------------------------------------------
if __name__ == "__main__":
    key = jax.random.PRNGKey(0)
    kp, ks = jax.random.split(key)

    params = init_params(kp)
    src = jax.random.randint(ks, (B, S), 0, VOCAB, dtype=jnp.int32)

    # mask: 1 = valid token, 0 = padding (mask out last 2 tokens of batch 1)
    src_mask = jnp.ones((B, 1, S), DTYPE)
    src_mask = src_mask.at[1, 0, S - 2:].set(0.0)

    # PE precomputed once outside jit, tiled over the batch
    pe_tiled = jnp.tile(sinusoidal_pe(S, D), (B, 1))              # (B*S, D)

    fwd = jax.jit(encoder_forward)
    out = fwd(src, src_mask, params, pe_tiled)
    out = jax.block_until_ready(out)

    assert out.shape == (B, S, D)
    assert jnp.all(jnp.isfinite(out))
    print("KERNEL_OK")
</pallas_src>

<mosaic_0001>
module attributes {stable_mosaic.version = 11 : i64} {
  func.func @encoder_kernel(%arg0: i32, %arg1: memref<16x32xf32, #tpu.memory_space<vmem>>, %arg2: memref<16x32xf32, #tpu.memory_space<vmem>>, %arg3: memref<2x1x8xf32, #tpu.memory_space<vmem>>, %arg4: memref<2x1x32xf32, #tpu.memory_space<vmem>>, %arg5: memref<2x1x32xf32, #tpu.memory_space<vmem>>, %arg6: memref<2x32x96xf32, #tpu.memory_space<vmem>>, %arg7: memref<2x1x96xf32, #tpu.memory_space<vmem>>, %arg8: memref<2x32x32xf32, #tpu.memory_space<vmem>>, %arg9: memref<2x1x32xf32, #tpu.memory_space<vmem>>, %arg10: memref<2x1x32xf32, #tpu.memory_space<vmem>>, %arg11: memref<2x1x32xf32, #tpu.memory_space<vmem>>, %arg12: memref<2x32x64xf32, #tpu.memory_space<vmem>>, %arg13: memref<2x1x64xf32, #tpu.memory_space<vmem>>, %arg14: memref<2x64x32xf32, #tpu.memory_space<vmem>>, %arg15: memref<2x1x32xf32, #tpu.memory_space<vmem>>, %arg16: memref<1x32xf32, #tpu.memory_space<vmem>>, %arg17: memref<1x32xf32, #tpu.memory_space<vmem>>, %arg18: memref<16x32xf32, #tpu.memory_space<vmem>>) attributes {dimension_semantics = [#tpu.dimension_semantics<arbitrary>], iteration_bounds = array<i64: 1>, scalar_prefetch = 0 : i64, scratch_operands = 0 : i64, tpu.core_type = #tpu.core_type<tc>, window_params = [{pipeline_mode = #tpu.pipeline_mode<synchronous>, transform_indices = @transform_0, window_bounds = array<i64: 16, 32>}, {pipeline_mode = #tpu.pipeline_mode<synchronous>, transform_indices = @transform_1, window_bounds = array<i64: 16, 32>}, {pipeline_mode = #tpu.pipeline_mode<synchronous>, transform_indices = @transform_2, window_bounds = array<i64: 2, 1, 8>}, {pipeline_mode = #tpu.pipeline_mode<synchronous>, transform_indices = @transform_3, window_bounds = array<i64: 2, 1, 32>}, {pipeline_mode = #tpu.pipeline_mode<synchronous>, transform_indices = @transform_4, window_bounds = array<i64: 2, 1, 32>}, {pipeline_mode = #tpu.pipeline_mode<synchronous>, transform_indices = @transform_5, window_bounds = array<i64: 2, 32, 96>}, {pipeline_mode = #tpu.pipeline_mode<synchronous>, transform_indices = @transform_6, window_bounds = array<i64: 2, 1, 96>}, {pipeline_mode = #tpu.pipeline_mode<synchronous>, transform_indices = @transform_7, window_bounds = array<i64: 2, 32, 32>}, {pipeline_mode = #tpu.pipeline_mode<synchronous>, transform_indices = @transform_8, window_bounds = array<i64: 2, 1, 32>}, {pipeline_mode = #tpu.pipeline_mode<synchronous>, transform_indices = @transform_9, window_bounds = array<i64: 2, 1, 32>}, {pipeline_mode = #tpu.pipeline_mode<synchronous>, transform_indices = @transform_10, window_bounds = array<i64: 2, 1, 32>}, {pipeline_mode = #tpu.pipeline_mode<synchronous>, transform_indices = @transform_11, window_bounds = array<i64: 2, 32, 64>}, {pipeline_mode = #tpu.pipeline_mode<synchronous>, transform_indices = @transform_12, window_bounds = array<i64: 2, 1, 64>}, {pipeline_mode = #tpu.pipeline_mode<synchronous>, transform_indices = @transform_13, window_bounds = array<i64: 2, 64, 32>}, {pipeline_mode = #tpu.pipeline_mode<synchronous>, transform_indices = @transform_14, window_bounds = array<i64: 2, 1, 32>}, {pipeline_mode = #tpu.pipeline_mode<synchronous>, transform_indices = @transform_15, window_bounds = array<i64: 1, 32>}, {pipeline_mode = #tpu.pipeline_mode<synchronous>, transform_indices = @transform_16, window_bounds = array<i64: 1, 32>}, {pipeline_mode = #tpu.pipeline_mode<synchronous>, transform_indices = @transform_17, window_bounds = array<i64: 16, 32>}]} {
    %c0 = arith.constant 0 : index
    %c0_0 = arith.constant 0 : index
    %0 = vector.load %arg1[%c0, %c0_0] : memref<16x32xf32, #tpu.memory_space<vmem>>, vector<16x32xf32>
    %cst = arith.constant 5.65685415 : f32
    %1 = vector.broadcast %cst : f32 to vector<16x32xf32>
    %2 = arith.mulf %0, %1 : vector<16x32xf32>
    %c0_1 = arith.constant 0 : index
    %c0_2 = arith.constant 0 : index
    %3 = vector.load %arg2[%c0_1, %c0_2] : memref<16x32xf32, #tpu.memory_space<vmem>>, vector<16x32xf32>
    %4 = arith.addf %2, %3 : vector<16x32xf32>
    %c0_3 = arith.constant 0 : index
    %c0_4 = arith.constant 0 : index
    %c0_5 = arith.constant 0 : index
    %5 = vector.load %arg3[%c0_3, %c0_4, %c0_5] : memref<2x1x8xf32, #tpu.memory_space<vmem>>, vector<2x1x8xf32>
    %c0_6 = arith.constant 0 : index
    %c0_7 = arith.constant 0 : index
    %c0_8 = arith.constant 0 : index
    %6 = vector.load %arg4[%c0_6, %c0_7, %c0_8] : memref<2x1x32xf32, #tpu.memory_space<vmem>>, vector<1x1x32xf32>
    %7 = vector.shape_cast %6 : vector<1x1x32xf32> to vector<1x32xf32>
    %c0_9 = arith.constant 0 : index
    %c0_10 = arith.constant 0 : index
    %c0_11 = arith.constant 0 : index
    %8 = vector.load %arg5[%c0_9, %c0_10, %c0_11] : memref<2x1x32xf32, #tpu.memory_space<vmem>>, vector<1x1x32xf32>
    %9 = vector.shape_cast %8 : vector<1x1x32xf32> to vector<1x32xf32>
    %cst_12 = arith.constant dense<0.000000e+00> : vector<16xf32>
    %10 = vector.multi_reduction <add>, %4, %cst_12 [1] : vector<16x32xf32> to vector<16xf32>
    %11 = vector.shape_cast %10 : vector<16xf32> to vector<16x1xf32>
    %cst_13 = arith.constant 3.200000e+01 : f32
    %12 = vector.broadcast %cst_13 : f32 to vector<16x1xf32>
    %13 = arith.divf %11, %12 : vector<16x1xf32>
    %14 = vector.broadcast %13 : vector<16x1xf32> to vector<16x32xf32>
    %15 = arith.subf %4, %14 : vector<16x32xf32>
    %16 = arith.mulf %15, %15 : vector<16x32xf32>
    %cst_14 = arith.constant dense<0.000000e+00> : vector<16xf32>
    %17 = vector.multi_reduction <add>, %16, %cst_14 [1] : vector<16x32xf32> to vector<16xf32>
    %18 = vector.shape_cast %17 : vector<16xf32> to vector<16x1xf32>
    %cst_15 = arith.constant 3.200000e+01 : f32
    %19 = vector.broadcast %cst_15 : f32 to vector<16x1xf32>
    %20 = arith.divf %18, %19 : vector<16x1xf32>
    %21 = vector.broadcast %13 : vector<16x1xf32> to vector<16x32xf32>
    %22 = arith.subf %4, %21 : vector<16x32xf32>
    %cst_16 = arith.constant 9.99999997E-7 : f32
    %23 = vector.broadcast %cst_16 : f32 to vector<16x1xf32>
    %24 = arith.addf %20, %23 : vector<16x1xf32>
    %25 = math.rsqrt %24 : vector<16x1xf32>
    %26 = vector.broadcast %25 : vector<16x1xf32> to vector<16x32xf32>
    %27 = arith.mulf %22, %26 : vector<16x32xf32>
    %28 = vector.broadcast %7 : vector<1x32xf32> to vector<16x32xf32>
    %29 = arith.mulf %27, %28 : vector<16x32xf32>
    %30 = vector.broadcast %9 : vector<1x32xf32> to vector<16x32xf32>
    %31 = arith.addf %29, %30 : vector<16x32xf32>
    %c0_17 = arith.constant 0 : index
    %c0_18 = arith.constant 0 : index
    %c0_19 = arith.constant 0 : index
    %32 = vector.load %arg6[%c0_17, %c0_18, %c0_19] : memref<2x32x96xf32, #tpu.memory_space<vmem>>, vector<1x32x96xf32>
    %33 = vector.shape_cast %32 : vector<1x32x96xf32> to vector<32x96xf32>
    %cst_20 = arith.constant dense<0.000000e+00> : vector<16x96xf32>
    %34 = tpu.matmul %31, %33, %cst_20 {dimension_numbers = #tpu.dot_dimension_numbers<[1], [0], [0], [1], [0, 0, 1, 1], [], []>} : vector<16x32xf32>, vector<32x96xf32>, vector<16x96xf32> -> vector<16x96xf32>
    %c0_21 = arith.constant 0 : index
    %c0_22 = arith.constant 0 : index
    %c0_23 = arith.constant 0 : index
    %35 = vector.load %arg7[%c0_21, %c0_22, %c0_23] : memref<2x1x96xf32, #tpu.memory_space<vmem>>, vector<1x1x96xf32>
    %36 = vector.shape_cast %35 : vector<1x1x96xf32> to vector<1x96xf32>
    %37 = vector.broadcast %36 : vector<1x96xf32> to vector<16x96xf32>
    %38 = arith.addf %34, %37 : vector<16x96xf32>
    %39 = vector.extract_strided_slice %38 {offsets = [0, 0], sizes = [16, 32], strides = [1, 1]} : vector<16x96xf32> to vector<16x32xf32>
    %40 = vector.extract_strided_slice %38 {offsets = [0, 32], sizes = [16, 32], strides = [1, 1]} : vector<16x96xf32> to vector<16x32xf32>
    %41 = vector.extract_strided_slice %38 {offsets = [0, 64], sizes = [16, 32], strides = [1, 1]} : vector<16x96xf32> to vector<16x32xf32>
    %42 = vector.extract_strided_slice %39 {offsets = [0, 0], sizes = [16, 8], strides = [1, 1]} : vector<16x32xf32> to vector<16x8xf32>
    %43 = vector.extract_strided_slice %40 {offsets = [0, 0], sizes = [16, 8], strides = [1, 1]} : vector<16x32xf32> to vector<16x8xf32>
    %44 = vector.extract_strided_slice %41 {offsets = [0, 0], sizes = [16, 8], strides = [1, 1]} : vector<16x32xf32> to vector<16x8xf32>
    %45 = vector.extract_strided_slice %42 {offsets = [0, 0], sizes = [8, 8], strides = [1, 1]} : vector<16x8xf32> to vector<8x8xf32>
    %46 = vector.extract_strided_slice %43 {offsets = [0, 0], sizes = [8, 8], strides = [1, 1]} : vector<16x8xf32> to vector<8x8xf32>
    %47 = vector.extract_strided_slice %44 {offsets = [0, 0], sizes = [8, 8], strides = [1, 1]} : vector<16x8xf32> to vector<8x8xf32>
    %48 = tpu.transpose %46, [1, 0] : vector<8x8xf32> -> vector<8x8xf32>
    %cst_24 = arith.constant dense<0.000000e+00> : vector<8x8xf32>
    %49 = tpu.matmul %45, %48, %cst_24 {dimension_numbers = #tpu.dot_dimension_numbers<[1], [0], [0], [1], [0, 0, 1, 1], [], []>} : vector<8x8xf32>, vector<8x8xf32>, vector<8x8xf32> -> vector<8x8xf32>
    %cst_25 = arith.constant 0.353553385 : f32
    %50 = vector.broadcast %cst_25 : f32 to vector<8x8xf32>
    %51 = arith.mulf %49, %50 : vector<8x8xf32>
    %52 = vector.extract_strided_slice %5 {offsets = [0, 0, 0], sizes = [1, 1, 8], strides = [1, 1, 1]} : vector<2x1x8xf32> to vector<1x1x8xf32>
    %53 = vector.shape_cast %52 : vector<1x1x8xf32> to vector<1x8xf32>
    %cst_26 = arith.constant 0.000000e+00 : f32
    %54 = vector.broadcast %cst_26 : f32 to vector<1x8xf32>
    %55 = arith.cmpf oeq, %53, %54 : vector<1x8xf32>
    %cst_27 = arith.constant -1.000000e+09 : f32
    %56 = vector.shape_cast %55 : vector<1x8xi1> to vector<1x8xi1>
    %57 = vector.broadcast %56 : vector<1x8xi1> to vector<8x8xi1>
    %58 = vector.broadcast %cst_27 : f32 to vector<8x8xf32>
    %59 = arith.select %57, %58, %51 : vector<8x8xi1>, vector<8x8xf32>
    %cst_28 = arith.constant dense<0xFF800000> : vector<8xf32>
    %60 = vector.multi_reduction <maximumf>, %59, %cst_28 [1] : vector<8x8xf32> to vector<8xf32>
    %61 = vector.shape_cast %60 : vector<8xf32> to vector<8x1xf32>
    %62 = vector.broadcast %61 : vector<8x1xf32> to vector<8x8xf32>
    %63 = arith.subf %59, %62 : vector<8x8xf32>
    %64 = math.exp %63 : vector<8x8xf32>
    %cst_29 = arith.constant dense<0.000000e+00> : vector<8xf32>
    %65 = vector.multi_reduction <add>, %64, %cst_29 [1] : vector<8x8xf32> to vector<8xf32>
    %66 = vector.shape_cast %65 : vector<8xf32> to vector<8x1xf32>
    %67 = tpu.reciprocal %66 {approx = true} : vector<8x1xf32> -> vector<8x1xf32>
    %68 = vector.broadcast %67 : vector<8x1xf32> to vector<8x8xf32>
    %69 = arith.mulf %64, %68 : vector<8x8xf32>
    %cst_30 = arith.constant dense<0.000000e+00> : vector<8x8xf32>
    %70 = tpu.matmul %69, %47, %cst_30 {dimension_numbers = #tpu.dot_dimension_numbers<[1], [0], [0], [1], [0, 0, 1, 1], [], []>} : vector<8x8xf32>, vector<8x8xf32>, vector<8x8xf32> -> vector<8x8xf32>
    %71 = vector.extract_strided_slice %42 {offsets = [8, 0], sizes = [8, 8], strides = [1, 1]} : vector<16x8xf32> to vector<8x8xf32>
    %72 = vector.extract_strided_slice %43 {offsets = [8, 0], sizes = [8, 8], strides = [1, 1]} : vector<16x8xf32> to vector<8x8xf32>
    %73 = vector.extract_strided_slice %44 {offsets = [8, 0], sizes = [8, 8], strides = [1, 1]} : vector<16x8xf32> to vector<8x8xf32>
    %74 = tpu.transpose %72, [1, 0] : vector<8x8xf32> -> vector<8x8xf32>
    %cst_31 = arith.constant dense<0.000000e+00> : vector<8x8xf32>
    %75 = tpu.matmul %71, %74, %cst_31 {dimension_numbers = #tpu.dot_dimension_numbers<[1], [0], [0], [1], [0, 0, 1, 1], [], []>} : vector<8x8xf32>, vector<8x8xf32>, vector<8x8xf32> -> vector<8x8xf32>
    %cst_32 = arith.constant 0.353553385 : f32
    %76 = vector.broadcast %cst_32 : f32 to vector<8x8xf32>
    %77 = arith.mulf %75, %76 : vector<8x8xf32>
    %78 = vector.extract_strided_slice %5 {offsets = [1, 0, 0], sizes = [1, 1, 8], strides = [1, 1, 1]} : vector<2x1x8xf32> to vector<1x1x8xf32>
    %79 = vector.shape_cast %78 : vector<1x1x8xf32> to vector<1x8xf32>
    %cst_33 = arith.constant 0.000000e+00 : f32
    %80 = vector.broadcast %cst_33 : f32 to vector<1x8xf32>
    %81 = arith.cmpf oeq, %79, %80 : vector<1x8xf32>
    %cst_34 = arith.constant -1.000000e+09 : f32
    %82 = vector.shape_cast %81 : vector<1x8xi1> to vector<1x8xi1>
    %83 = vector.broadcast %82 : vector<1x8xi1> to vector<8x8xi1>
    %84 = vector.broadcast %cst_34 : f32 to vector<8x8xf32>
    %85 = arith.select %83, %84, %77 : vector<8x8xi1>, vector<8x8xf32>
    %cst_35 = arith.constant dense<0xFF800000> : vector<8xf32>
    %86 = vector.multi_reduction <maximumf>, %85, %cst_35 [1] : vector<8x8xf32> to vector<8xf32>
    %87 = vector.shape_cast %86 : vector<8xf32> to vector<8x1xf32>
    %88 = vector.broadcast %87 : vector<8x1xf32> to vector<8x8xf32>
    %89 = arith.subf %85, %88 : vector<8x8xf32>
    %90 = math.exp %89 : vector<8x8xf32>
    %cst_36 = arith.constant dense<0.000000e+00> : vector<8xf32>
    %91 = vector.multi_reduction <add>, %90, %cst_36 [1] : vector<8x8xf32> to vector<8xf32>
    %92 = vector.shape_cast %91 : vector<8xf32> to vector<8x1xf32>
    %93 = tpu.reciprocal %92 {approx = true} : vector<8x1xf32> -> vector<8x1xf32>
    %94 = vector.broadcast %93 : vector<8x1xf32> to vector<8x8xf32>
    %95 = arith.mulf %90, %94 : vector<8x8xf32>
    %cst_37 = arith.constant dense<0.000000e+00> : vector<8x8xf32>
    %96 = tpu.matmul %95, %73, %cst_37 {dimension_numbers = #tpu.dot_dimension_numbers<[1], [0], [0], [1], [0, 0, 1, 1], [], []>} : vector<8x8xf32>, vector<8x8xf32>, vector<8x8xf32> -> vector<8x8xf32>
    %97 = tpu.concatenate %70, %96 in 0 : vector<8x8xf32>, vector<8x8xf32> -> vector<16x8xf32>
    %98 = vector.extract_strided_slice %39 {offsets = [0, 8], sizes = [16, 8], strides = [1, 1]} : vector<16x32xf32> to vector<16x8xf32>
    %99 = vector.extract_strided_slice %40 {offsets = [0, 8], sizes = [16, 8], strides = [1, 1]} : vector<16x32xf32> to vector<16x8xf32>
    %100 = vector.extract_strided_slice %41 {offsets = [0, 8], sizes = [16, 8], strides = [1, 1]} : vector<16x32xf32> to vector<16x8xf32>
    %101 = vector.extract_strided_slice %98 {offsets = [0, 0], sizes = [8, 8], strides = [1, 1]} : vector<16x8xf32> to vector<8x8xf32>
    %102 = vector.extract_strided_slice %99 {offsets = [0, 0], sizes = [8, 8], strides = [1, 1]} : vector<16x8xf32> to vector<8x8xf32>
    %103 = vector.extract_strided_slice %100 {offsets = [0, 0], sizes = [8, 8], strides = [1, 1]} : vector<16x8xf32> to vector<8x8xf32>
    %104 = tpu.transpose %102, [1, 0] : vector<8x8xf32> -> vector<8x8xf32>
    %cst_38 = arith.constant dense<0.000000e+00> : vector<8x8xf32>
    %105 = tpu.matmul %101, %104, %cst_38 {dimension_numbers = #tpu.dot_dimension_numbers<[1], [0], [0], [1], [0, 0, 1, 1], [], []>} : vector<8x8xf32>, vector<8x8xf32>, vector<8x8xf32> -> vector<8x8xf32>
    %cst_39 = arith.constant 0.353553385 : f32
    %106 = vector.broadcast %cst_39 : f32 to vector<8x8xf32>
    %107 = arith.mulf %105, %106 : vector<8x8xf32>
    %108 = vector.extract_strided_slice %5 {offsets = [0, 0, 0], sizes = [1, 1, 8], strides = [1, 1, 1]} : vector<2x1x8xf32> to vector<1x1x8xf32>
    %109 = vector.shape_cast %108 : vector<1x1x8xf32> to vector<1x8xf32>
    %cst_40 = arith.constant 0.000000e+00 : f32
    %110 = vector.broadcast %cst_40 : f32 to vector<1x8xf32>
    %111 = arith.cmpf oeq, %109, %110 : vector<1x8xf32>
    %cst_41 = arith.constant -1.000000e+09 : f32
    %112 = vector.shape_cast %111 : vector<1x8xi1> to vector<1x8xi1>
    %113 = vector.broadcast %112 : vector<1x8xi1> to vector<8x8xi1>
    %114 = vector.broadcast %cst_41 : f32 to vector<8x8xf32>
    %115 = arith.select %113, %114, %107 : vector<8x8xi1>, vector<8x8xf32>
    %cst_42 = arith.constant dense<0xFF800000> : vector<8xf32>
    %116 = vector.multi_reduction <maximumf>, %115, %cst_42 [1] : vector<8x8xf32> to vector<8xf32>
    %117 = vector.shape_cast %116 : vector<8xf32> to vector<8x1xf32>
    %118 = vector.broadcast %117 : vector<8x1xf32> to vector<8x8xf32>
    %119 = arith.subf %115, %118 : vector<8x8xf32>
    %120 = math.exp %119 : vector<8x8xf32>
    %cst_43 = arith.constant dense<0.000000e+00> : vector<8xf32>
    %121 = vector.multi_reduction <add>, %120, %cst_43 [1] : vector<8x8xf32> to vector<8xf32>
    %122 = vector.shape_cast %121 : vector<8xf32> to vector<8x1xf32>
    %123 = tpu.reciprocal %122 {approx = true} : vector<8x1xf32> -> vector<8x1xf32>
    %124 = vector.broadcast %123 : vector<8x1xf32> to vector<8x8xf32>
    %125 = arith.mulf %120, %124 : vector<8x8xf32>
    %cst_44 = arith.constant dense<0.000000e+00> : vector<8x8xf32>
    %126 = tpu.matmul %125, %103, %cst_44 {dimension_numbers = #tpu.dot_dimension_numbers<[1], [0], [0], [1], [0, 0, 1, 1], [], []>} : vector<8x8xf32>, vector<8x8xf32>, vector<8x8xf32> -> vector<8x8xf32>
    %127 = vector.extract_strided_slice %98 {offsets = [8, 0], sizes = [8, 8], strides = [1, 1]} : vector<16x8xf32> to vector<8x8xf32>
    %128 = vector.extract_strided_slice %99 {offsets = [8, 0], sizes = [8, 8], strides = [1, 1]} : vector<16x8xf32> to vector<8x8xf32>
    %129 = vector.extract_strided_slice %100 {offsets = [8, 0], sizes = [8, 8], strides = [1, 1]} : vector<16x8xf32> to vector<8x8xf32>
    %130 = tpu.transpose %128, [1, 0] : vector<8x8xf32> -> vector<8x8xf32>
    %cst_45 = arith.constant dense<0.000000e+00> : vector<8x8xf32>
    %131 = tpu.matmul %127, %130, %cst_45 {dimension_numbers = #tpu.dot_dimension_numbers<[1], [0], [0], [1], [0, 0, 1, 1], [], []>} : vector<8x8xf32>, vector<8x8xf32>, vector<8x8xf32> -> vector<8x8xf32>
    %cst_46 = arith.constant 0.353553385 : f32
    %132 = vector.broadcast %cst_46 : f32 to vector<8x8xf32>
    %133 = arith.mulf %131, %132 : vector<8x8xf32>
    %134 = vector.extract_strided_slice %5 {offsets = [1, 0, 0], sizes = [1, 1, 8], strides = [1, 1, 1]} : vector<2x1x8xf32> to vector<1x1x8xf32>
    %135 = vector.shape_cast %134 : vector<1x1x8xf32> to vector<1x8xf32>
    %cst_47 = arith.constant 0.000000e+00 : f32
    %136 = vector.broadcast %cst_47 : f32 to vector<1x8xf32>
    %137 = arith.cmpf oeq, %135, %136 : vector<1x8xf32>
    %cst_48 = arith.constant -1.000000e+09 : f32
    %138 = vector.shape_cast %137 : vector<1x8xi1> to vector<1x8xi1>
    %139 = vector.broadcast %138 : vector<1x8xi1> to vector<8x8xi1>
    %140 = vector.broadcast %cst_48 : f32 to vector<8x8xf32>
    %141 = arith.select %139, %140, %133 : vector<8x8xi1>, vector<8x8xf32>
    %cst_49 = arith.constant dense<0xFF800000> : vector<8xf32>
    %142 = vector.multi_reduction <maximumf>, %141, %cst_49 [1] : vector<8x8xf32> to vector<8xf32>
    %143 = vector.shape_cast %142 : vector<8xf32> to vector<8x1xf32>
    %144 = vector.broadcast %143 : vector<8x1xf32> to vector<8x8xf32>
    %145 = arith.subf %141, %144 : vector<8x8xf32>
    %146 = math.exp %145 : vector<8x8xf32>
    %cst_50 = arith.constant dense<0.000000e+00> : vector<8xf32>
    %147 = vector.multi_reduction <add>, %146, %cst_50 [1] : vector<8x8xf32> to vector<8xf32>
    %148 = vector.shape_cast %147 : vector<8xf32> to vector<8x1xf32>
    %149 = tpu.reciprocal %148 {approx = true} : vector<8x1xf32> -> vector<8x1xf32>
    %150 = vector.broadcast %149 : vector<8x1xf32> to vector<8x8xf32>
    %151 = arith.mulf %146, %150 : vector<8x8xf32>
    %cst_51 = arith.constant dense<0.000000e+00> : vector<8x8xf32>
    %152 = tpu.matmul %151, %129, %cst_51 {dimension_numbers = #tpu.dot_dimension_numbers<[1], [0], [0], [1], [0, 0, 1, 1], [], []>} : vector<8x8xf32>, vector<8x8xf32>, vector<8x8xf32> -> vector<8x8xf32>
    %153 = tpu.concatenate %126, %152 in 0 : vector<8x8xf32>, vector<8x8xf32> -> vector<16x8xf32>
    %154 = vector.extract_strided_slice %39 {offsets = [0, 16], sizes = [16, 8], strides = [1, 1]} : vector<16x32xf32> to vector<16x8xf32>
    %155 = vector.extract_strided_slice %40 {offsets = [0, 16], sizes = [16, 8], strides = [1, 1]} : vector<16x32xf32> to vector<16x8xf32>
    %156 = vector.extract_strided_slice %41 {offsets = [0, 16], sizes = [16, 8], strides = [1, 1]} : vector<16x32xf32> to vector<16x8xf32>
    %157 = vector.extract_strided_slice %154 {offsets = [0, 0], sizes = [8, 8], strides = [1, 1]} : vector<16x8xf32> to vector<8x8xf32>
    %158 = vector.extract_strided_slice %155 {offsets = [0, 0], sizes = [8, 8], strides = [1, 1]} : vector<16x8xf32> to vector<8x8xf32>
    %159 = vector.extract_strided_slice %156 {offsets = [0, 0], sizes = [8, 8], strides = [1, 1]} : vector<16x8xf32> to vector<8x8xf32>
    %160 = tpu.transpose %158, [1, 0] : vector<8x8xf32> -> vector<8x8xf32>
    %cst_52 = arith.constant dense<0.000000e+00> : vector<8x8xf32>
    %161 = tpu.matmul %157, %160, %cst_52 {dimension_numbers = #tpu.dot_dimension_numbers<[1], [0], [0], [1], [0, 0, 1, 1], [], []>} : vector<8x8xf32>, vector<8x8xf32>, vector<8x8xf32> -> vector<8x8xf32>
    %cst_53 = arith.constant 0.353553385 : f32
    %162 = vector.broadcast %cst_53 : f32 to vector<8x8xf32>
    %163 = arith.mulf %161, %162 : vector<8x8xf32>
    %164 = vector.extract_strided_slice %5 {offsets = [0, 0, 0], sizes = [1, 1, 8], strides = [1, 1, 1]} : vector<2x1x8xf32> to vector<1x1x8xf32>
    %165 = vector.shape_cast %164 : vector<1x1x8xf32> to vector<1x8xf32>
    %cst_54 = arith.constant 0.000000e+00 : f32
    %166 = vector.broadcast %cst_54 : f32 to vector<1x8xf32>
    %167 = arith.cmpf oeq, %165, %166 : vector<1x8xf32>
    %cst_55 = arith.constant -1.000000e+09 : f32
    %168 = vector.shape_cast %167 : vector<1x8xi1> to vector<1x8xi1>
    %169 = vector.broadcast %168 : vector<1x8xi1> to vector<8x8xi1>
    %170 = vector.broadcast %cst_55 : f32 to vector<8x8xf32>
    %171 = arith.select %169, %170, %163 : vector<8x8xi1>, vector<8x8xf32>
    %cst_56 = arith.constant dense<0xFF800000> : vector<8xf32>
    %172 = vector.multi_reduction <maximumf>, %171, %cst_56 [1] : vector<8x8xf32> to vector<8xf32>
    %173 = vector.shape_cast %172 : vector<8xf32> to vector<8x1xf32>
    %174 = vector.broadcast %173 : vector<8x1xf32> to vector<8x8xf32>
    %175 = arith.subf %171, %174 : vector<8x8xf32>
    %176 = math.exp %175 : vector<8x8xf32>
    %cst_57 = arith.constant dense<0.000000e+00> : vector<8xf32>
    %177 = vector.multi_reduction <add>, %176, %cst_57 [1] : vector<8x8xf32> to vector<8xf32>
    %178 = vector.shape_cast %177 : vector<8xf32> to vector<8x1xf32>
    %179 = tpu.reciprocal %178 {approx = true} : vector<8x1xf32> -> vector<8x1xf32>
    %180 = vector.broadcast %179 : vector<8x1xf32> to vector<8x8xf32>
    %181 = arith.mulf %176, %180 : vector<8x8xf32>
    %cst_58 = arith.constant dense<0.000000e+00> : vector<8x8xf32>
    %182 = tpu.matmul %181, %159, %cst_58 {dimension_numbers = #tpu.dot_dimension_numbers<[1], [0], [0], [1], [0, 0, 1, 1], [], []>} : vector<8x8xf32>, vector<8x8xf32>, vector<8x8xf32> -> vector<8x8xf32>
    %183 = vector.extract_strided_slice %154 {offsets = [8, 0], sizes = [8, 8], strides = [1, 1]} : vector<16x8xf32> to vector<8x8xf32>
    %184 = vector.extract_strided_slice %155 {offsets = [8, 0], sizes = [8, 8], strides = [1, 1]} : vector<16x8xf32> to vector<8x8xf32>
    %185 = vector.extract_strided_slice %156 {offsets = [8, 0], sizes = [8, 8], strides = [1, 1]} : vector<16x8xf32> to vector<8x8xf32>
    %186 = tpu.transpose %184, [1, 0] : vector<8x8xf32> -> vector<8x8xf32>
    %cst_59 = arith.constant dense<0.000000e+00> : vector<8x8xf32>
    %187 = tpu.matmul %183, %186, %cst_59 {dimension_numbers = #tpu.dot_dimension_numbers<[1], [0], [0], [1], [0, 0, 1, 1], [], []>} : vector<8x8xf32>, vector<8x8xf32>, vector<8x8xf32> -> vector<8x8xf32>
    %cst_60 = arith.constant 0.353553385 : f32
    %188 = vector.broadcast %cst_60 : f32 to vector<8x8xf32>
    %189 = arith.mulf %187, %188 : vector<8x8xf32>
    %190 = vector.extract_strided_slice %5 {offsets = [1, 0, 0], sizes = [1, 1, 8], strides = [1, 1, 1]} : vector<2x1x8xf32> to vector<1x1x8xf32>
    %191 = vector.shape_cast %190 : vector<1x1x8xf32> to vector<1x8xf32>
    %cst_61 = arith.constant 0.000000e+00 : f32
    %192 = vector.broadcast %cst_61 : f32 to vector<1x8xf32>
    %193 = arith.cmpf oeq, %191, %192 : vector<1x8xf32>
    %cst_62 = arith.constant -1.000000e+09 : f32
    %194 = vector.shape_cast %193 : vector<1x8xi1> to vector<1x8xi1>
    %195 = vector.broadcast %194 : vector<1x8xi1> to vector<8x8xi1>
    %196 = vector.broadcast %cst_62 : f32 to vector<8x8xf32>
    %197 = arith.select %195, %196, %189 : vector<8x8xi1>, vector<8x8xf32>
    %cst_63 = arith.constant dense<0xFF800000> : vector<8xf32>
    %198 = vector.multi_reduction <maximumf>, %197, %cst_63 [1] : vector<8x8xf32> to vector<8xf32>
    %199 = vector.shape_cast %198 : vector<8xf32> to vector<8x1xf32>
    %200 = vector.broadcast %199 : vector<8x1xf32> to vector<8x8xf32>
    %201 = arith.subf %197, %200 : vector<8x8xf32>
    %202 = math.exp %201 : vector<8x8xf32>
    %cst_64 = arith.constant dense<0.000000e+00> : vector<8xf32>
    %203 = vector.multi_reduction <add>, %202, %cst_64 [1] : vector<8x8xf32> to vector<8xf32>
    %204 = vector.shape_cast %203 : vector<8xf32> to vector<8x1xf32>
    %205 = tpu.reciprocal %204 {approx = true} : vector<8x1xf32> -> vector<8x1xf32>
    %206 = vector.broadcast %205 : vector<8x1xf32> to vector<8x8xf32>
    %207 = arith.mulf %202, %206 : vector<8x8xf32>
    %cst_65 = arith.constant dense<0.000000e+00> : vector<8x8xf32>
    %208 = tpu.matmul %207, %185, %cst_65 {dimension_numbers = #tpu.dot_dimension_numbers<[1], [0], [0], [1], [0, 0, 1, 1], [], []>} : vector<8x8xf32>, vector<8x8xf32>, vector<8x8xf32> -> vector<8x8xf32>
    %209 = tpu.concatenate %182, %208 in 0 : vector<8x8xf32>, vector<8x8xf32> -> vector<16x8xf32>
    %210 = vector.extract_strided_slice %39 {offsets = [0, 24], sizes = [16, 8], strides = [1, 1]} : vector<16x32xf32> to vector<16x8xf32>
    %211 = vector.extract_strided_slice %40 {offsets = [0, 24], sizes = [16, 8], strides = [1, 1]} : vector<16x32xf32> to vector<16x8xf32>
    %212 = vector.extract_strided_slice %41 {offsets = [0, 24], sizes = [16, 8], strides = [1, 1]} : vector<16x32xf32> to vector<16x8xf32>
    %213 = vector.extract_strided_slice %210 {offsets = [0, 0], sizes = [8, 8], strides = [1, 1]} : vector<16x8xf32> to vector<8x8xf32>
    %214 = vector.extract_strided_slice %211 {offsets = [0, 0], sizes = [8, 8], strides = [1, 1]} : vector<16x8xf32> to vector<8x8xf32>
    %215 = vector.extract_strided_slice %212 {offsets = [0, 0], sizes = [8, 8], strides = [1, 1]} : vector<16x8xf32> to vector<8x8xf32>
    %216 = tpu.transpose %214, [1, 0] : vector<8x8xf32> -> vector<8x8xf32>
    %cst_66 = arith.constant dense<0.000000e+00> : vector<8x8xf32>
    %217 = tpu.matmul %213, %216, %cst_66 {dimension_numbers = #tpu.dot_dimension_numbers<[1], [0], [0], [1], [0, 0, 1, 1], [], []>} : vector<8x8xf32>, vector<8x8xf32>, vector<8x8xf32> -> vector<8x8xf32>
    %cst_67 = arith.constant 0.353553385 : f32
    %218 = vector.broadcast %cst_67 : f32 to vector<8x8xf32>
    %219 = arith.mulf %217, %218 : vector<8x8xf32>
    %220 = vector.extract_strided_slice %5 {offsets = [0, 0, 0], sizes = [1, 1, 8], strides = [1, 1, 1]} : vector<2x1x8xf32> to vector<1x1x8xf32>
    %221 = vector.shape_cast %220 : vector<1x1x8xf32> to vector<1x8xf32>
    %cst_68 = arith.constant 0.000000e+00 : f32
    %222 = vector.broadcast %cst_68 : f32 to vector<1x8xf32>
    %223 = arith.cmpf oeq, %221, %222 : vector<1x8xf32>
    %cst_69 = arith.constant -1.000000e+09 : f32
    %224 = vector.shape_cast %223 : vector<1x8xi1> to vector<1x8xi1>
    %225 = vector.broadcast %224 : vector<1x8xi1> to vector<8x8xi1>
    %226 = vector.broadcast %cst_69 : f32 to vector<8x8xf32>
    %227 = arith.select %225, %226, %219 : vector<8x8xi1>, vector<8x8xf32>
    %cst_70 = arith.constant dense<0xFF800000> : vector<8xf32>
    %228 = vector.multi_reduction <maximumf>, %227, %cst_70 [1] : vector<8x8xf32> to vector<8xf32>
    %229 = vector.shape_cast %228 : vector<8xf32> to vector<8x1xf32>
    %230 = vector.broadcast %229 : vector<8x1xf32> to vector<8x8xf32>
    %231 = arith.subf %227, %230 : vector<8x8xf32>
    %232 = math.exp %231 : vector<8x8xf32>
    %cst_71 = arith.constant dense<0.000000e+00> : vector<8xf32>
    %233 = vector.multi_reduction <add>, %232, %cst_71 [1] : vector<8x8xf32> to vector<8xf32>
    %234 = vector.shape_cast %233 : vector<8xf32> to vector<8x1xf32>
    %235 = tpu.reciprocal %234 {approx = true} : vector<8x1xf32> -> vector<8x1xf32>
    %236 = vector.broadcast %235 : vector<8x1xf32> to vector<8x8xf32>
    %237 = arith.mulf %232, %236 : vector<8x8xf32>
    %cst_72 = arith.constant dense<0.000000e+00> : vector<8x8xf32>
    %238 = tpu.matmul %237, %215, %cst_72 {dimension_numbers = #tpu.dot_dimension_numbers<[1], [0], [0], [1], [0, 0, 1, 1], [], []>} : vector<8x8xf32>, vector<8x8xf32>, vector<8x8xf32> -> vector<8x8xf32>
    %239 = vector.extract_strided_slice %210 {offsets = [8, 0], sizes = [8, 8], strides = [1, 1]} : vector<16x8xf32> to vector<8x8xf32>
    %240 = vector.extract_strided_slice %211 {offsets = [8, 0], sizes = [8, 8], strides = [1, 1]} : vector<16x8xf32> to vector<8x8xf32>
    %241 = vector.extract_strided_slice %212 {offsets = [8, 0], sizes = [8, 8], strides = [1, 1]} : vector<16x8xf32> to vector<8x8xf32>
    %242 = tpu.transpose %240, [1, 0] : vector<8x8xf32> -> vector<8x8xf32>
    %cst_73 = arith.constant dense<0.000000e+00> : vector<8x8xf32>
    %243 = tpu.matmul %239, %242, %cst_73 {dimension_numbers = #tpu.dot_dimension_numbers<[1], [0], [0], [1], [0, 0, 1, 1], [], []>} : vector<8x8xf32>, vector<8x8xf32>, vector<8x8xf32> -> vector<8x8xf32>
    %cst_74 = arith.constant 0.353553385 : f32
    %244 = vector.broadcast %cst_74 : f32 to vector<8x8xf32>
    %245 = arith.mulf %243, %244 : vector<8x8xf32>
    %246 = vector.extract_strided_slice %5 {offsets = [1, 0, 0], sizes = [1, 1, 8], strides = [1, 1, 1]} : vector<2x1x8xf32> to vector<1x1x8xf32>
    %247 = vector.shape_cast %246 : vector<1x1x8xf32> to vector<1x8xf32>
    %cst_75 = arith.constant 0.000000e+00 : f32
    %248 = vector.broadcast %cst_75 : f32 to vector<1x8xf32>
    %249 = arith.cmpf oeq, %247, %248 : vector<1x8xf32>
    %cst_76 = arith.constant -1.000000e+09 : f32
    %250 = vector.shape_cast %249 : vector<1x8xi1> to vector<1x8xi1>
    %251 = vector.broadcast %250 : vector<1x8xi1> to vector<8x8xi1>
    %252 = vector.broadcast %cst_76 : f32 to vector<8x8xf32>
    %253 = arith.select %251, %252, %245 : vector<8x8xi1>, vector<8x8xf32>
    %cst_77 = arith.constant dense<0xFF800000> : vector<8xf32>
    %254 = vector.multi_reduction <maximumf>, %253, %cst_77 [1] : vector<8x8xf32> to vector<8xf32>
    %255 = vector.shape_cast %254 : vector<8xf32> to vector<8x1xf32>
    %256 = vector.broadcast %255 : vector<8x1xf32> to vector<8x8xf32>
    %257 = arith.subf %253, %256 : vector<8x8xf32>
    %258 = math.exp %257 : vector<8x8xf32>
    %cst_78 = arith.constant dense<0.000000e+00> : vector<8xf32>
    %259 = vector.multi_reduction <add>, %258, %cst_78 [1] : vector<8x8xf32> to vector<8xf32>
    %260 = vector.shape_cast %259 : vector<8xf32> to vector<8x1xf32>
    %261 = tpu.reciprocal %260 {approx = true} : vector<8x1xf32> -> vector<8x1xf32>
    %262 = vector.broadcast %261 : vector<8x1xf32> to vector<8x8xf32>
    %263 = arith.mulf %258, %262 : vector<8x8xf32>
    %cst_79 = arith.constant dense<0.000000e+00> : vector<8x8xf32>
    %264 = tpu.matmul %263, %241, %cst_79 {dimension_numbers = #tpu.dot_dimension_numbers<[1], [0], [0], [1], [0, 0, 1, 1], [], []>} : vector<8x8xf32>, vector<8x8xf32>, vector<8x8xf32> -> vector<8x8xf32>
    %265 = tpu.concatenate %238, %264 in 0 : vector<8x8xf32>, vector<8x8xf32> -> vector<16x8xf32>
    %266 = tpu.concatenate %97, %153, %209, %265 in 1 : vector<16x8xf32>, vector<16x8xf32>, vector<16x8xf32>, vector<16x8xf32> -> vector<16x32xf32>
    %c0_80 = arith.constant 0 : index
    %c0_81 = arith.constant 0 : index
    %c0_82 = arith.constant 0 : index
    %267 = vector.load %arg8[%c0_80, %c0_81, %c0_82] : memref<2x32x32xf32, #tpu.memory_space<vmem>>, vector<1x32x32xf32>
    %268 = vector.shape_cast %267 : vector<1x32x32xf32> to vector<32x32xf32>
    %cst_83 = arith.constant dense<0.000000e+00> : vector<16x32xf32>
    %269 = tpu.matmul %266, %268, %cst_83 {dimension_numbers = #tpu.dot_dimension_numbers<[1], [0], [0], [1], [0, 0, 1, 1], [], []>} : vector<16x32xf32>, vector<32x32xf32>, vector<16x32xf32> -> vector<16x32xf32>
    %c0_84 = arith.constant 0 : index
    %c0_85 = arith.constant 0 : index
    %c0_86 = arith.constant 0 : index
    %270 = vector.load %arg9[%c0_84, %c0_85, %c0_86] : memref<2x1x32xf32, #tpu.memory_space<vmem>>, vector<1x1x32xf32>
    %271 = vector.shape_cast %270 : vector<1x1x32xf32> to vector<1x32xf32>
    %272 = vector.broadcast %271 : vector<1x32xf32> to vector<16x32xf32>
    %273 = arith.addf %269, %272 : vector<16x32xf32>
    %274 = arith.addf %4, %273 : vector<16x32xf32>
    %c0_87 = arith.constant 0 : index
    %c0_88 = arith.constant 0 : index
    %c0_89 = arith.constant 0 : index
    %275 = vector.load %arg10[%c0_87, %c0_88, %c0_89] : memref<2x1x32xf32, #tpu.memory_space<vmem>>, vector<1x1x32xf32>
    %276 = vector.shape_cast %275 : vector<1x1x32xf32> to vector<1x32xf32>
    %c0_90 = arith.constant 0 : index
    %c0_91 = arith.constant 0 : index
    %c0_92 = arith.constant 0 : index
    %277 = vector.load %arg11[%c0_90, %c0_91, %c0_92] : memref<2x1x32xf32, #tpu.memory_space<vmem>>, vector<1x1x32xf32>
    %278 = vector.shape_cast %277 : vector<1x1x32xf32> to vector<1x32xf32>
    %cst_93 = arith.constant dense<0.000000e+00> : vector<16xf32>
    %279 = vector.multi_reduction <add>, %274, %cst_93 [1] : vector<16x32xf32> to vector<16xf32>
    %280 = vector.shape_cast %279 : vector<16xf32> to vector<16x1xf32>
    %cst_94 = arith.constant 3.200000e+01 : f32
    %281 = vector.broadcast %cst_94 : f32 to vector<16x1xf32>
    %282 = arith.divf %280, %281 : vector<16x1xf32>
    %283 = vector.broadcast %282 : vector<16x1xf32> to vector<16x32xf32>
    %284 = arith.subf %274, %283 : vector<16x32xf32>
    %285 = arith.mulf %284, %284 : vector<16x32xf32>
    %cst_95 = arith.constant dense<0.000000e+00> : vector<16xf32>
    %286 = vector.multi_reduction <add>, %285, %cst_95 [1] : vector<16x32xf32> to vector<16xf32>
    %287 = vector.shape_cast %286 : vector<16xf32> to vector<16x1xf32>
    %cst_96 = arith.constant 3.200000e+01 : f32
    %288 = vector.broadcast %cst_96 : f32 to vector<16x1xf32>
    %289 = arith.divf %287, %288 : vector<16x1xf32>
    %290 = vector.broadcast %282 : vector<16x1xf32> to vector<16x32xf32>
    %291 = arith.subf %274, %290 : vector<16x32xf32>
    %cst_97 = arith.constant 9.99999997E-7 : f32
    %292 = vector.broadcast %cst_97 : f32 to vector<16x1xf32>
    %293 = arith.addf %289, %292 : vector<16x1xf32>
    %294 = math.rsqrt %293 : vector<16x1xf32>
    %295 = vector.broadcast %294 : vector<16x1xf32> to vector<16x32xf32>
    %296 = arith.mulf %291, %295 : vector<16x32xf32>
    %297 = vector.broadcast %276 : vector<1x32xf32> to vector<16x32xf32>
    %298 = arith.mulf %296, %297 : vector<16x32xf32>
    %299 = vector.broadcast %278 : vector<1x32xf32> to vector<16x32xf32>
    %300 = arith.addf %298, %299 : vector<16x32xf32>
    %c0_98 = arith.constant 0 : index
    %c0_99 = arith.constant 0 : index
    %c0_100 = arith.constant 0 : index
    %301 = vector.load %arg12[%c0_98, %c0_99, %c0_100] : memref<2x32x64xf32, #tpu.memory_space<vmem>>, vector<1x32x64xf32>
    %302 = vector.shape_cast %301 : vector<1x32x64xf32> to vector<32x64xf32>
    %cst_101 = arith.constant dense<0.000000e+00> : vector<16x64xf32>
    %303 = tpu.matmul %300, %302, %cst_101 {dimension_numbers = #tpu.dot_dimension_numbers<[1], [0], [0], [1], [0, 0, 1, 1], [], []>} : vector<16x32xf32>, vector<32x64xf32>, vector<16x64xf32> -> vector<16x64xf32>
    %c0_102 = arith.constant 0 : index
    %c0_103 = arith.constant 0 : index
    %c0_104 = arith.constant 0 : index
    %304 = vector.load %arg13[%c0_102, %c0_103, %c0_104] : memref<2x1x64xf32, #tpu.memory_space<vmem>>, vector<1x1x64xf32>
    %305 = vector.shape_cast %304 : vector<1x1x64xf32> to vector<1x64xf32>
    %306 = vector.broadcast %305 : vector<1x64xf32> to vector<16x64xf32>
    %307 = arith.addf %303, %306 : vector<16x64xf32>
    %cst_105 = arith.constant 0.000000e+00 : f32
    %308 = vector.broadcast %cst_105 : f32 to vector<16x64xf32>
    %309 = arith.maximumf %307, %308 : vector<16x64xf32>
    %c0_106 = arith.constant 0 : index
    %c0_107 = arith.constant 0 : index
    %c0_108 = arith.constant 0 : index
    %310 = vector.load %arg14[%c0_106, %c0_107, %c0_108] : memref<2x64x32xf32, #tpu.memory_space<vmem>>, vector<1x64x32xf32>
    %311 = vector.shape_cast %310 : vector<1x64x32xf32> to vector<64x32xf32>
    %cst_109 = arith.constant dense<0.000000e+00> : vector<16x32xf32>
    %312 = tpu.matmul %309, %311, %cst_109 {dimension_numbers = #tpu.dot_dimension_numbers<[1], [0], [0], [1], [0, 0, 1, 1], [], []>} : vector<16x64xf32>, vector<64x32xf32>, vector<16x32xf32> -> vector<16x32xf32>
    %c0_110 = arith.constant 0 : index
    %c0_111 = arith.constant 0 : index
    %c0_112 = arith.constant 0 : index
    %313 = vector.load %arg15[%c0_110, %c0_111, %c0_112] : memref<2x1x32xf32, #tpu.memory_space<vmem>>, vector<1x1x32xf32>
    %314 = vector.shape_cast %313 : vector<1x1x32xf32> to vector<1x32xf32>
    %315 = vector.broadcast %314 : vector<1x32xf32> to vector<16x32xf32>
    %316 = arith.addf %312, %315 : vector<16x32xf32>
    %317 = arith.addf %274, %316 : vector<16x32xf32>
    %c1 = arith.constant 1 : index
    %c0_113 = arith.constant 0 : index
    %c0_114 = arith.constant 0 : index
    %318 = vector.load %arg4[%c1, %c0_113, %c0_114] : memref<2x1x32xf32, #tpu.memory_space<vmem>>, vector<1x1x32xf32>
    %319 = vector.shape_cast %318 : vector<1x1x32xf32> to vector<1x32xf32>
    %c1_115 = arith.constant 1 : index
    %c0_116 = arith.constant 0 : index
    %c0_117 = arith.constant 0 : index
    %320 = vector.load %arg5[%c1_115, %c0_116, %c0_117] : memref<2x1x32xf32, #tpu.memory_space<vmem>>, vector<1x1x32xf32>
    %321 = vector.shape_cast %320 : vector<1x1x32xf32> to vector<1x32xf32>
    %cst_118 = arith.constant dense<0.000000e+00> : vector<16xf32>
    %322 = vector.multi_reduction <add>, %317, %cst_118 [1] : vector<16x32xf32> to vector<16xf32>
    %323 = vector.shape_cast %322 : vector<16xf32> to vector<16x1xf32>
    %cst_119 = arith.constant 3.200000e+01 : f32
    %324 = vector.broadcast %cst_119 : f32 to vector<16x1xf32>
    %325 = arith.divf %323, %324 : vector<16x1xf32>
    %326 = vector.broadcast %325 : vector<16x1xf32> to vector<16x32xf32>
    %327 = arith.subf %317, %326 : vector<16x32xf32>
    %328 = arith.mulf %327, %327 : vector<16x32xf32>
    %cst_120 = arith.constant dense<0.000000e+00> : vector<16xf32>
    %329 = vector.multi_reduction <add>, %328, %cst_120 [1] : vector<16x32xf32> to vector<16xf32>
    %330 = vector.shape_cast %329 : vector<16xf32> to vector<16x1xf32>
    %cst_121 = arith.constant 3.200000e+01 : f32
    %331 = vector.broadcast %cst_121 : f32 to vector<16x1xf32>
    %332 = arith.divf %330, %331 : vector<16x1xf32>
    %333 = vector.broadcast %325 : vector<16x1xf32> to vector<16x32xf32>
    %334 = arith.subf %317, %333 : vector<16x32xf32>
    %cst_122 = arith.constant 9.99999997E-7 : f32
    %335 = vector.broadcast %cst_122 : f32 to vector<16x1xf32>
    %336 = arith.addf %332, %335 : vector<16x1xf32>
    %337 = math.rsqrt %336 : vector<16x1xf32>
    %338 = vector.broadcast %337 : vector<16x1xf32> to vector<16x32xf32>
    %339 = arith.mulf %334, %338 : vector<16x32xf32>
    %340 = vector.broadcast %319 : vector<1x32xf32> to vector<16x32xf32>
    %341 = arith.mulf %339, %340 : vector<16x32xf32>
    %342 = vector.broadcast %321 : vector<1x32xf32> to vector<16x32xf32>
    %343 = arith.addf %341, %342 : vector<16x32xf32>
    %c1_123 = arith.constant 1 : index
    %c0_124 = arith.constant 0 : index
    %c0_125 = arith.constant 0 : index
    %344 = vector.load %arg6[%c1_123, %c0_124, %c0_125] : memref<2x32x96xf32, #tpu.memory_space<vmem>>, vector<1x32x96xf32>
    %345 = vector.shape_cast %344 : vector<1x32x96xf32> to vector<32x96xf32>
    %cst_126 = arith.constant dense<0.000000e+00> : vector<16x96xf32>
    %346 = tpu.matmul %343, %345, %cst_126 {dimension_numbers = #tpu.dot_dimension_numbers<[1], [0], [0], [1], [0, 0, 1, 1], [], []>} : vector<16x32xf32>, vector<32x96xf32>, vector<16x96xf32> -> vector<16x96xf32>
    %c1_127 = arith.constant 1 : index
    %c0_128 = arith.constant 0 : index
    %c0_129 = arith.constant 0 : index
    %347 = vector.load %arg7[%c1_127, %c0_128, %c0_129] : memref<2x1x96xf32, #tpu.memory_space<vmem>>, vector<1x1x96xf32>
    %348 = vector.shape_cast %347 : vector<1x1x96xf32> to vector<1x96xf32>
    %349 = vector.broadcast %348 : vector<1x96xf32> to vector<16x96xf32>
    %350 = arith.addf %346, %349 : vector<16x96xf32>
    %351 = vector.extract_strided_slice %350 {offsets = [0, 0], sizes = [16, 32], strides = [1, 1]} : vector<16x96xf32> to vector<16x32xf32>
    %352 = vector.extract_strided_slice %350 {offsets = [0, 32], sizes = [16, 32], strides = [1, 1]} : vector<16x96xf32> to vector<16x32xf32>
    %353 = vector.extract_strided_slice %350 {offsets = [0, 64], sizes = [16, 32], strides = [1, 1]} : vector<16x96xf32> to vector<16x32xf32>
    %354 = vector.extract_strided_slice %351 {offsets = [0, 0], sizes = [16, 8], strides = [1, 1]} : vector<16x32xf32> to vector<16x8xf32>
    %355 = vector.extract_strided_slice %352 {offsets = [0, 0], sizes = [16, 8], strides = [1, 1]} : vector<16x32xf32> to vector<16x8xf32>
    %356 = vector.extract_strided_slice %353 {offsets = [0, 0], sizes = [16, 8], strides = [1, 1]} : vector<16x32xf32> to vector<16x8xf32>
    %357 = vector.extract_strided_slice %354 {offsets = [0, 0], sizes = [8, 8], strides = [1, 1]} : vector<16x8xf32> to vector<8x8xf32>
    %358 = vector.extract_strided_slice %355 {offsets = [0, 0], sizes = [8, 8], strides = [1, 1]} : vector<16x8xf32> to vector<8x8xf32>
    %359 = vector.extract_strided_slice %356 {offsets = [0, 0], sizes = [8, 8], strides = [1, 1]} : vector<16x8xf32> to vector<8x8xf32>
    %360 = tpu.transpose %358, [1, 0] : vector<8x8xf32> -> vector<8x8xf32>
    %cst_130 = arith.constant dense<0.000000e+00> : vector<8x8xf32>
    %361 = tpu.matmul %357, %360, %cst_130 {dimension_numbers = #tpu.dot_dimension_numbers<[1], [0], [0], [1], [0, 0, 1, 1], [], []>} : vector<8x8xf32>, vector<8x8xf32>, vector<8x8xf32> -> vector<8x8xf32>
    %cst_131 = arith.constant 0.353553385 : f32
    %362 = vector.broadcast %cst_131 : f32 to vector<8x8xf32>
    %363 = arith.mulf %361, %362 : vector<8x8xf32>
    %364 = vector.extract_strided_slice %5 {offsets = [0, 0, 0], sizes = [1, 1, 8], strides = [1, 1, 1]} : vector<2x1x8xf32> to vector<1x1x8xf32>
    %365 = vector.shape_cast %364 : vector<1x1x8xf32> to vector<1x8xf32>
    %cst_132 = arith.constant 0.000000e+00 : f32
    %366 = vector.broadcast %cst_132 : f32 to vector<1x8xf32>
    %367 = arith.cmpf oeq, %365, %366 : vector<1x8xf32>
    %cst_133 = arith.constant -1.000000e+09 : f32
    %368 = vector.shape_cast %367 : vector<1x8xi1> to vector<1x8xi1>
    %369 = vector.broadcast %368 : vector<1x8xi1> to vector<8x8xi1>
    %370 = vector.broadcast %cst_133 : f32 to vector<8x8xf32>
    %371 = arith.select %369, %370, %363 : vector<8x8xi1>, vector<8x8xf32>
    %cst_134 = arith.constant dense<0xFF800000> : vector<8xf32>
    %372 = vector.multi_reduction <maximumf>, %371, %cst_134 [1] : vector<8x8xf32> to vector<8xf32>
    %373 = vector.shape_cast %372 : vector<8xf32> to vector<8x1xf32>
    %374 = vector.broadcast %373 : vector<8x1xf32> to vector<8x8xf32>
    %375 = arith.subf %371, %374 : vector<8x8xf32>
    %376 = math.exp %375 : vector<8x8xf32>
    %cst_135 = arith.constant dense<0.000000e+00> : vector<8xf32>
    %377 = vector.multi_reduction <add>, %376, %cst_135 [1] : vector<8x8xf32> to vector<8xf32>
    %378 = vector.shape_cast %377 : vector<8xf32> to vector<8x1xf32>
    %379 = tpu.reciprocal %378 {approx = true} : vector<8x1xf32> -> vector<8x1xf32>
    %380 = vector.broadcast %379 : vector<8x1xf32> to vector<8x8xf32>
    %381 = arith.mulf %376, %380 : vector<8x8xf32>
    %cst_136 = arith.constant dense<0.000000e+00> : vector<8x8xf32>
    %382 = tpu.matmul %381, %359, %cst_136 {dimension_numbers = #tpu.dot_dimension_numbers<[1], [0], [0], [1], [0, 0, 1, 1], [], []>} : vector<8x8xf32>, vector<8x8xf32>, vector<8x8xf32> -> vector<8x8xf32>
    %383 = vector.extract_strided_slice %354 {offsets = [8, 0], sizes = [8, 8], strides = [1, 1]} : vector<16x8xf32> to vector<8x8xf32>
    %384 = vector.extract_strided_slice %355 {offsets = [8, 0], sizes = [8, 8], strides = [1, 1]} : vector<16x8xf32> to vector<8x8xf32>
    %385 = vector.extract_strided_slice %356 {offsets = [8, 0], sizes = [8, 8], strides = [1, 1]} : vector<16x8xf32> to vector<8x8xf32>
    %386 = tpu.transpose %384, [1, 0] : vector<8x8xf32> -> vector<8x8xf32>
    %cst_137 = arith.constant dense<0.000000e+00> : vector<8x8xf32>
    %387 = tpu.matmul %383, %386, %cst_137 {dimension_numbers = #tpu.dot_dimension_numbers<[1], [0], [0], [1], [0, 0, 1, 1], [], []>} : vector<8x8xf32>, vector<8x8xf32>, vector<8x8xf32> -> vector<8x8xf32>
    %cst_138 = arith.constant 0.353553385 : f32
    %388 = vector.broadcast %cst_138 : f32 to vector<8x8xf32>
    %389 = arith.mulf %387, %388 : vector<8x8xf32>
    %390 = vector.extract_strided_slice %5 {offsets = [1, 0, 0], sizes = [1, 1, 8], strides = [1, 1, 1]} : vector<2x1x8xf32> to vector<1x1x8xf32>
    %391 = vector.shape_cast %390 : vector<1x1x8xf32> to vector<1x8xf32>
    %cst_139 = arith.constant 0.000000e+00 : f32
    %392 = vector.broadcast %cst_139 : f32 to vector<1x8xf32>
    %393 = arith.cmpf oeq, %391, %392 : vector<1x8xf32>
    %cst_140 = arith.constant -1.000000e+09 : f32
    %394 = vector.shape_cast %393 : vector<1x8xi1> to vector<1x8xi1>
    %395 = vector.broadcast %394 : vector<1x8xi1> to vector<8x8xi1>
    %396 = vector.broadcast %cst_140 : f32 to vector<8x8xf32>
    %397 = arith.select %395, %396, %389 : vector<8x8xi1>, vector<8x8xf32>
    %cst_141 = arith.constant dense<0xFF800000> : vector<8xf32>
    %398 = vector.multi_reduction <maximumf>, %397, %cst_141 [1] : vector<8x8xf32> to vector<8xf32>
    %399 = vector.shape_cast %398 : vector<8xf32> to vector<8x1xf32>
    %400 = vector.broadcast %399 : vector<8x1xf32> to vector<8x8xf32>
    %401 = arith.subf %397, %400 : vector<8x8xf32>
    %402 = math.exp %401 : vector<8x8xf32>
    %cst_142 = arith.constant dense<0.000000e+00> : vector<8xf32>
    %403 = vector.multi_reduction <add>, %402, %cst_142 [1] : vector<8x8xf32> to vector<8xf32>
    %404 = vector.shape_cast %403 : vector<8xf32> to vector<8x1xf32>
    %405 = tpu.reciprocal %404 {approx = true} : vector<8x1xf32> -> vector<8x1xf32>
    %406 = vector.broadcast %405 : vector<8x1xf32> to vector<8x8xf32>
    %407 = arith.mulf %402, %406 : vector<8x8xf32>
    %cst_143 = arith.constant dense<0.000000e+00> : vector<8x8xf32>
    %408 = tpu.matmul %407, %385, %cst_143 {dimension_numbers = #tpu.dot_dimension_numbers<[1], [0], [0], [1], [0, 0, 1, 1], [], []>} : vector<8x8xf32>, vector<8x8xf32>, vector<8x8xf32> -> vector<8x8xf32>
    %409 = tpu.concatenate %382, %408 in 0 : vector<8x8xf32>, vector<8x8xf32> -> vector<16x8xf32>
    %410 = vector.extract_strided_slice %351 {offsets = [0, 8], sizes = [16, 8], strides = [1, 1]} : vector<16x32xf32> to vector<16x8xf32>
    %411 = vector.extract_strided_slice %352 {offsets = [0, 8], sizes = [16, 8], strides = [1, 1]} : vector<16x32xf32> to vector<16x8xf32>
    %412 = vector.extract_strided_slice %353 {offsets = [0, 8], sizes = [16, 8], strides = [1, 1]} : vector<16x32xf32> to vector<16x8xf32>
    %413 = vector.extract_strided_slice %410 {offsets = [0, 0], sizes = [8, 8], strides = [1, 1]} : vector<16x8xf32> to vector<8x8xf32>
    %414 = vector.extract_strided_slice %411 {offsets = [0, 0], sizes = [8, 8], strides = [1, 1]} : vector<16x8xf32> to vector<8x8xf32>
    %415 = vector.extract_strided_slice %412 {offsets = [0, 0], sizes = [8, 8], strides = [1, 1]} : vector<16x8xf32> to vector<8x8xf32>
    %416 = tpu.transpose %414, [1, 0] : vector<8x8xf32> -> vector<8x8xf32>
    %cst_144 = arith.constant dense<0.000000e+00> : vector<8x8xf32>
    %417 = tpu.matmul %413, %416, %cst_144 {dimension_numbers = #tpu.dot_dimension_numbers<[1], [0], [0], [1], [0, 0, 1, 1], [], []>} : vector<8x8xf32>, vector<8x8xf32>, vector<8x8xf32> -> vector<8x8xf32>
    %cst_145 = arith.constant 0.353553385 : f32
    %418 = vector.broadcast %cst_145 : f32 to vector<8x8xf32>
    %419 = arith.mulf %417, %418 : vector<8x8xf32>
    %420 = vector.extract_strided_slice %5 {offsets = [0, 0, 0], sizes = [1, 1, 8], strides = [1, 1, 1]} : vector<2x1x8xf32> to vector<1x1x8xf32>
    %421 = vector.shape_cast %420 : vector<1x1x8xf32> to vector<1x8xf32>
    %cst_146 = arith.constant 0.000000e+00 : f32
    %422 = vector.broadcast %cst_146 : f32 to vector<1x8xf32>
    %423 = arith.cmpf oeq, %421, %422 : vector<1x8xf32>
    %cst_147 = arith.constant -1.000000e+09 : f32
    %424 = vector.shape_cast %423 : vector<1x8xi1> to vector<1x8xi1>
    %425 = vector.broadcast %424 : vector<1x8xi1> to vector<8x8xi1>
    %426 = vector.broadcast %cst_147 : f32 to vector<8x8xf32>
    %427 = arith.select %425, %426, %419 : vector<8x8xi1>, vector<8x8xf32>
    %cst_148 = arith.constant dense<0xFF800000> : vector<8xf32>
    %428 = vector.multi_reduction <maximumf>, %427, %cst_148 [1] : vector<8x8xf32> to vector<8xf32>
    %429 = vector.shape_cast %428 : vector<8xf32> to vector<8x1xf32>
    %430 = vector.broadcast %429 : vector<8x1xf32> to vector<8x8xf32>
    %431 = arith.subf %427, %430 : vector<8x8xf32>
    %432 = math.exp %431 : vector<8x8xf32>
    %cst_149 = arith.constant dense<0.000000e+00> : vector<8xf32>
    %433 = vector.multi_reduction <add>, %432, %cst_149 [1] : vector<8x8xf32> to vector<8xf32>
    %434 = vector.shape_cast %433 : vector<8xf32> to vector<8x1xf32>
    %435 = tpu.reciprocal %434 {approx = true} : vector<8x1xf32> -> vector<8x1xf32>
    %436 = vector.broadcast %435 : vector<8x1xf32> to vector<8x8xf32>
    %437 = arith.mulf %432, %436 : vector<8x8xf32>
    %cst_150 = arith.constant dense<0.000000e+00> : vector<8x8xf32>
    %438 = tpu.matmul %437, %415, %cst_150 {dimension_numbers = #tpu.dot_dimension_numbers<[1], [0], [0], [1], [0, 0, 1, 1], [], []>} : vector<8x8xf32>, vector<8x8xf32>, vector<8x8xf32> -> vector<8x8xf32>
    %439 = vector.extract_strided_slice %410 {offsets = [8, 0], sizes = [8, 8], strides = [1, 1]} : vector<16x8xf32> to vector<8x8xf32>
    %440 = vector.extract_strided_slice %411 {offsets = [8, 0], sizes = [8, 8], strides = [1, 1]} : vector<16x8xf32> to vector<8x8xf32>
    %441 = vector.extract_strided_slice %412 {offsets = [8, 0], sizes = [8, 8], strides = [1, 1]} : vector<16x8xf32> to vector<8x8xf32>
    %442 = tpu.transpose %440, [1, 0] : vector<8x8xf32> -> vector<8x8xf32>
    %cst_151 = arith.constant dense<0.000000e+00> : vector<8x8xf32>
    %443 = tpu.matmul %439, %442, %cst_151 {dimension_numbers = #tpu.dot_dimension_numbers<[1], [0], [0], [1], [0, 0, 1, 1], [], []>} : vector<8x8xf32>, vector<8x8xf32>, vector<8x8xf32> -> vector<8x8xf32>
    %cst_152 = arith.constant 0.353553385 : f32
    %444 = vector.broadcast %cst_152 : f32 to vector<8x8xf32>
    %445 = arith.mulf %443, %444 : vector<8x8xf32>
    %446 = vector.extract_strided_slice %5 {offsets = [1, 0, 0], sizes = [1, 1, 8], strides = [1, 1, 1]} : vector<2x1x8xf32> to vector<1x1x8xf32>
    %447 = vector.shape_cast %446 : vector<1x1x8xf32> to vector<1x8xf32>
    %cst_153 = arith.constant 0.000000e+00 : f32
    %448 = vector.broadcast %cst_153 : f32 to vector<1x8xf32>
    %449 = arith.cmpf oeq, %447, %448 : vector<1x8xf32>
    %cst_154 = arith.constant -1.000000e+09 : f32
    %450 = vector.shape_cast %449 : vector<1x8xi1> to vector<1x8xi1>
    %451 = vector.broadcast %450 : vector<1x8xi1> to vector<8x8xi1>
    %452 = vector.broadcast %cst_154 : f32 to vector<8x8xf32>
    %453 = arith.select %451, %452, %445 : vector<8x8xi1>, vector<8x8xf32>
    %cst_155 = arith.constant dense<0xFF800000> : vector<8xf32>
    %454 = vector.multi_reduction <maximumf>, %453, %cst_155 [1] : vector<8x8xf32> to vector<8xf32>
    %455 = vector.shape_cast %454 : vector<8xf32> to vector<8x1xf32>
    %456 = vector.broadcast %455 : vector<8x1xf32> to vector<8x8xf32>
    %457 = arith.subf %453, %456 : vector<8x8xf32>
    %458 = math.exp %457 : vector<8x8xf32>
    %cst_156 = arith.constant dense<0.000000e+00> : vector<8xf32>
    %459 = vector.multi_reduction <add>, %458, %cst_156 [1] : vector<8x8xf32> to vector<8xf32>
    %460 = vector.shape_cast %459 : vector<8xf32> to vector<8x1xf32>
    %461 = tpu.reciprocal %460 {approx = true} : vector<8x1xf32> -> vector<8x1xf32>
    %462 = vector.broadcast %461 : vector<8x1xf32> to vector<8x8xf32>
    %463 = arith.mulf %458, %462 : vector<8x8xf32>
    %cst_157 = arith.constant dense<0.000000e+00> : vector<8x8xf32>
    %464 = tpu.matmul %463, %441, %cst_157 {dimension_numbers = #tpu.dot_dimension_numbers<[1], [0], [0], [1], [0, 0, 1, 1], [], []>} : vector<8x8xf32>, vector<8x8xf32>, vector<8x8xf32> -> vector<8x8xf32>
    %465 = tpu.concatenate %438, %464 in 0 : vector<8x8xf32>, vector<8x8xf32> -> vector<16x8xf32>
    %466 = vector.extract_strided_slice %351 {offsets = [0, 16], sizes = [16, 8], strides = [1, 1]} : vector<16x32xf32> to vector<16x8xf32>
    %467 = vector.extract_strided_slice %352 {offsets = [0, 16], sizes = [16, 8], strides = [1, 1]} : vector<16x32xf32> to vector<16x8xf32>
    %468 = vector.extract_strided_slice %353 {offsets = [0, 16], sizes = [16, 8], strides = [1, 1]} : vector<16x32xf32> to vector<16x8xf32>
    %469 = vector.extract_strided_slice %466 {offsets = [0, 0], sizes = [8, 8], strides = [1, 1]} : vector<16x8xf32> to vector<8x8xf32>
    %470 = vector.extract_strided_slice %467 {offsets = [0, 0], sizes = [8, 8], strides = [1, 1]} : vector<16x8xf32> to vector<8x8xf32>
    %471 = vector.extract_strided_slice %468 {offsets = [0, 0], sizes = [8, 8], strides = [1, 1]} : vector<16x8xf32> to vector<8x8xf32>
    %472 = tpu.transpose %470, [1, 0] : vector<8x8xf32> -> vector<8x8xf32>
    %cst_158 = arith.constant dense<0.000000e+00> : vector<8x8xf32>
    %473 = tpu.matmul %469, %472, %cst_158 {dimension_numbers = #tpu.dot_dimension_numbers<[1], [0], [0], [1], [0, 0, 1, 1], [], []>} : vector<8x8xf32>, vector<8x8xf32>, vector<8x8xf32> -> vector<8x8xf32>
    %cst_159 = arith.constant 0.353553385 : f32
    %474 = vector.broadcast %cst_159 : f32 to vector<8x8xf32>
    %475 = arith.mulf %473, %474 : vector<8x8xf32>
    %476 = vector.extract_strided_slice %5 {offsets = [0, 0, 0], sizes = [1, 1, 8], strides = [1, 1, 1]} : vector<2x1x8xf32> to vector<1x1x8xf32>
    %477 = vector.shape_cast %476 : vector<1x1x8xf32> to vector<1x8xf32>
    %cst_160 = arith.constant 0.000000e+00 : f32
    %478 = vector.broadcast %cst_160 : f32 to vector<1x8xf32>
    %479 = arith.cmpf oeq, %477, %478 : vector<1x8xf32>
    %cst_161 = arith.constant -1.000000e+09 : f32
    %480 = vector.shape_cast %479 : vector<1x8xi1> to vector<1x8xi1>
    %481 = vector.broadcast %480 : vector<1x8xi1> to vector<8x8xi1>
    %482 = vector.broadcast %cst_161 : f32 to vector<8x8xf32>
    %483 = arith.select %481, %482, %475 : vector<8x8xi1>, vector<8x8xf32>
    %cst_162 = arith.constant dense<0xFF800000> : vector<8xf32>
    %484 = vector.multi_reduction <maximumf>, %483, %cst_162 [1] : vector<8x8xf32> to vector<8xf32>
    %485 = vector.shape_cast %484 : vector<8xf32> to vector<8x1xf32>
    %486 = vector.broadcast %485 : vector<8x1xf32> to vector<8x8xf32>
    %487 = arith.subf %483, %486 : vector<8x8xf32>
    %488 = math.exp %487 : vector<8x8xf32>
    %cst_163 = arith.constant dense<0.000000e+00> : vector<8xf32>
    %489 = vector.multi_reduction <add>, %488, %cst_163 [1] : vector<8x8xf32> to vector<8xf32>
    %490 = vector.shape_cast %489 : vector<8xf32> to vector<8x1xf32>
    %491 = tpu.reciprocal %490 {approx = true} : vector<8x1xf32> -> vector<8x1xf32>
    %492 = vector.broadcast %491 : vector<8x1xf32> to vector<8x8xf32>
    %493 = arith.mulf %488, %492 : vector<8x8xf32>
    %cst_164 = arith.constant dense<0.000000e+00> : vector<8x8xf32>
    %494 = tpu.matmul %493, %471, %cst_164 {dimension_numbers = #tpu.dot_dimension_numbers<[1], [0], [0], [1], [0, 0, 1, 1], [], []>} : vector<8x8xf32>, vector<8x8xf32>, vector<8x8xf32> -> vector<8x8xf32>
    %495 = vector.extract_strided_slice %466 {offsets = [8, 0], sizes = [8, 8], strides = [1, 1]} : vector<16x8xf32> to vector<8x8xf32>
    %496 = vector.extract_strided_slice %467 {offsets = [8, 0], sizes = [8, 8], strides = [1, 1]} : vector<16x8xf32> to vector<8x8xf32>
    %497 = vector.extract_strided_slice %468 {offsets = [8, 0], sizes = [8, 8], strides = [1, 1]} : vector<16x8xf32> to vector<8x8xf32>
    %498 = tpu.transpose %496, [1, 0] : vector<8x8xf32> -> vector<8x8xf32>
    %cst_165 = arith.constant dense<0.000000e+00> : vector<8x8xf32>
    %499 = tpu.matmul %495, %498, %cst_165 {dimension_numbers = #tpu.dot_dimension_numbers<[1], [0], [0], [1], [0, 0, 1, 1], [], []>} : vector<8x8xf32>, vector<8x8xf32>, vector<8x8xf32> -> vector<8x8xf32>
    %cst_166 = arith.constant 0.353553385 : f32
    %500 = vector.broadcast %cst_166 : f32 to vector<8x8xf32>
    %501 = arith.mulf %499, %500 : vector<8x8xf32>
    %502 = vector.extract_strided_slice %5 {offsets = [1, 0, 0], sizes = [1, 1, 8], strides = [1, 1, 1]} : vector<2x1x8xf32> to vector<1x1x8xf32>
    %503 = vector.shape_cast %502 : vector<1x1x8xf32> to vector<1x8xf32>
    %cst_167 = arith.constant 0.000000e+00 : f32
    %504 = vector.broadcast %cst_167 : f32 to vector<1x8xf32>
    %505 = arith.cmpf oeq, %503, %504 : vector<1x8xf32>
    %cst_168 = arith.constant -1.000000e+09 : f32
    %506 = vector.shape_cast %505 : vector<1x8xi1> to vector<1x8xi1>
    %507 = vector.broadcast %506 : vector<1x8xi1> to vector<8x8xi1>
    %508 = vector.broadcast %cst_168 : f32 to vector<8x8xf32>
    %509 = arith.select %507, %508, %501 : vector<8x8xi1>, vector<8x8xf32>
    %cst_169 = arith.constant dense<0xFF800000> : vector<8xf32>
    %510 = vector.multi_reduction <maximumf>, %509, %cst_169 [1] : vector<8x8xf32> to vector<8xf32>
    %511 = vector.shape_cast %510 : vector<8xf32> to vector<8x1xf32>
    %512 = vector.broadcast %511 : vector<8x1xf32> to vector<8x8xf32>
    %513 = arith.subf %509, %512 : vector<8x8xf32>
    %514 = math.exp %513 : vector<8x8xf32>
    %cst_170 = arith.constant dense<0.000000e+00> : vector<8xf32>
    %515 = vector.multi_reduction <add>, %514, %cst_170 [1] : vector<8x8xf32> to vector<8xf32>
    %516 = vector.shape_cast %515 : vector<8xf32> to vector<8x1xf32>
    %517 = tpu.reciprocal %516 {approx = true} : vector<8x1xf32> -> vector<8x1xf32>
    %518 = vector.broadcast %517 : vector<8x1xf32> to vector<8x8xf32>
    %519 = arith.mulf %514, %518 : vector<8x8xf32>
    %cst_171 = arith.constant dense<0.000000e+00> : vector<8x8xf32>
    %520 = tpu.matmul %519, %497, %cst_171 {dimension_numbers = #tpu.dot_dimension_numbers<[1], [0], [0], [1], [0, 0, 1, 1], [], []>} : vector<8x8xf32>, vector<8x8xf32>, vector<8x8xf32> -> vector<8x8xf32>
    %521 = tpu.concatenate %494, %520 in 0 : vector<8x8xf32>, vector<8x8xf32> -> vector<16x8xf32>
    %522 = vector.extract_strided_slice %351 {offsets = [0, 24], sizes = [16, 8], strides = [1, 1]} : vector<16x32xf32> to vector<16x8xf32>
    %523 = vector.extract_strided_slice %352 {offsets = [0, 24], sizes = [16, 8], strides = [1, 1]} : vector<16x32xf32> to vector<16x8xf32>
    %524 = vector.extract_strided_slice %353 {offsets = [0, 24], sizes = [16, 8], strides = [1, 1]} : vector<16x32xf32> to vector<16x8xf32>
    %525 = vector.extract_strided_slice %522 {offsets = [0, 0], sizes = [8, 8], strides = [1, 1]} : vector<16x8xf32> to vector<8x8xf32>
    %526 = vector.extract_strided_slice %523 {offsets = [0, 0], sizes = [8, 8], strides = [1, 1]} : vector<16x8xf32> to vector<8x8xf32>
    %527 = vector.extract_strided_slice %524 {offsets = [0, 0], sizes = [8, 8], strides = [1, 1]} : vector<16x8xf32> to vector<8x8xf32>
    %528 = tpu.transpose %526, [1, 0] : vector<8x8xf32> -> vector<8x8xf32>
    %cst_172 = arith.constant dense<0.000000e+00> : vector<8x8xf32>
    %529 = tpu.matmul %525, %528, %cst_172 {dimension_numbers = #tpu.dot_dimension_numbers<[1], [0], [0], [1], [0, 0, 1, 1], [], []>} : vector<8x8xf32>, vector<8x8xf32>, vector<8x8xf32> -> vector<8x8xf32>
    %cst_173 = arith.constant 0.353553385 : f32
    %530 = vector.broadcast %cst_173 : f32 to vector<8x8xf32>
    %531 = arith.mulf %529, %530 : vector<8x8xf32>
    %532 = vector.extract_strided_slice %5 {offsets = [0, 0, 0], sizes = [1, 1, 8], strides = [1, 1, 1]} : vector<2x1x8xf32> to vector<1x1x8xf32>
    %533 = vector.shape_cast %532 : vector<1x1x8xf32> to vector<1x8xf32>
    %cst_174 = arith.constant 0.000000e+00 : f32
    %534 = vector.broadcast %cst_174 : f32 to vector<1x8xf32>
    %535 = arith.cmpf oeq, %533, %534 : vector<1x8xf32>
    %cst_175 = arith.constant -1.000000e+09 : f32
    %536 = vector.shape_cast %535 : vector<1x8xi1> to vector<1x8xi1>
    %537 = vector.broadcast %536 : vector<1x8xi1> to vector<8x8xi1>
    %538 = vector.broadcast %cst_175 : f32 to vector<8x8xf32>
    %539 = arith.select %537, %538, %531 : vector<8x8xi1>, vector<8x8xf32>
    %cst_176 = arith.constant dense<0xFF800000> : vector<8xf32>
    %540 = vector.multi_reduction <maximumf>, %539, %cst_176 [1] : vector<8x8xf32> to vector<8xf32>
    %541 = vector.shape_cast %540 : vector<8xf32> to vector<8x1xf32>
    %542 = vector.broadcast %541 : vector<8x1xf32> to vector<8x8xf32>
    %543 = arith.subf %539, %542 : vector<8x8xf32>
    %544 = math.exp %543 : vector<8x8xf32>
    %cst_177 = arith.constant dense<0.000000e+00> : vector<8xf32>
    %545 = vector.multi_reduction <add>, %544, %cst_177 [1] : vector<8x8xf32> to vector<8xf32>
    %546 = vector.shape_cast %545 : vector<8xf32> to vector<8x1xf32>
    %547 = tpu.reciprocal %546 {approx = true} : vector<8x1xf32> -> vector<8x1xf32>
    %548 = vector.broadcast %547 : vector<8x1xf32> to vector<8x8xf32>
    %549 = arith.mulf %544, %548 : vector<8x8xf32>
    %cst_178 = arith.constant dense<0.000000e+00> : vector<8x8xf32>
    %550 = tpu.matmul %549, %527, %cst_178 {dimension_numbers = #tpu.dot_dimension_numbers<[1], [0], [0], [1], [0, 0, 1, 1], [], []>} : vector<8x8xf32>, vector<8x8xf32>, vector<8x8xf32> -> vector<8x8xf32>
    %551 = vector.extract_strided_slice %522 {offsets = [8, 0], sizes = [8, 8], strides = [1, 1]} : vector<16x8xf32> to vector<8x8xf32>
    %552 = vector.extract_strided_slice %523 {offsets = [8, 0], sizes = [8, 8], strides = [1, 1]} : vector<16x8xf32> to vector<8x8xf32>
    %553 = vector.extract_strided_slice %524 {offsets = [8, 0], sizes = [8, 8], strides = [1, 1]} : vector<16x8xf32> to vector<8x8xf32>
    %554 = tpu.transpose %552, [1, 0] : vector<8x8xf32> -> vector<8x8xf32>
    %cst_179 = arith.constant dense<0.000000e+00> : vector<8x8xf32>
    %555 = tpu.matmul %551, %554, %cst_179 {dimension_numbers = #tpu.dot_dimension_numbers<[1], [0], [0], [1], [0, 0, 1, 1], [], []>} : vector<8x8xf32>, vector<8x8xf32>, vector<8x8xf32> -> vector<8x8xf32>
    %cst_180 = arith.constant 0.353553385 : f32
    %556 = vector.broadcast %cst_180 : f32 to vector<8x8xf32>
    %557 = arith.mulf %555, %556 : vector<8x8xf32>
    %558 = vector.extract_strided_slice %5 {offsets = [1, 0, 0], sizes = [1, 1, 8], strides = [1, 1, 1]} : vector<2x1x8xf32> to vector<1x1x8xf32>
    %559 = vector.shape_cast %558 : vector<1x1x8xf32> to vector<1x8xf32>
    %cst_181 = arith.constant 0.000000e+00 : f32
    %560 = vector.broadcast %cst_181 : f32 to vector<1x8xf32>
    %561 = arith.cmpf oeq, %559, %560 : vector<1x8xf32>
    %cst_182 = arith.constant -1.000000e+09 : f32
    %562 = vector.shape_cast %561 : vector<1x8xi1> to vector<1x8xi1>
    %563 = vector.broadcast %562 : vector<1x8xi1> to vector<8x8xi1>
    %564 = vector.broadcast %cst_182 : f32 to vector<8x8xf32>
    %565 = arith.select %563, %564, %557 : vector<8x8xi1>, vector<8x8xf32>
    %cst_183 = arith.constant dense<0xFF800000> : vector<8xf32>
    %566 = vector.multi_reduction <maximumf>, %565, %cst_183 [1] : vector<8x8xf32> to vector<8xf32>
    %567 = vector.shape_cast %566 : vector<8xf32> to vector<8x1xf32>
    %568 = vector.broadcast %567 : vector<8x1xf32> to vector<8x8xf32>
    %569 = arith.subf %565, %568 : vector<8x8xf32>
    %570 = math.exp %569 : vector<8x8xf32>
    %cst_184 = arith.constant dense<0.000000e+00> : vector<8xf32>
    %571 = vector.multi_reduction <add>, %570, %cst_184 [1] : vector<8x8xf32> to vector<8xf32>
    %572 = vector.shape_cast %571 : vector<8xf32> to vector<8x1xf32>
    %573 = tpu.reciprocal %572 {approx = true} : vector<8x1xf32> -> vector<8x1xf32>
    %574 = vector.broadcast %573 : vector<8x1xf32> to vector<8x8xf32>
    %575 = arith.mulf %570, %574 : vector<8x8xf32>
    %cst_185 = arith.constant dense<0.000000e+00> : vector<8x8xf32>
    %576 = tpu.matmul %575, %553, %cst_185 {dimension_numbers = #tpu.dot_dimension_numbers<[1], [0], [0], [1], [0, 0, 1, 1], [], []>} : vector<8x8xf32>, vector<8x8xf32>, vector<8x8xf32> -> vector<8x8xf32>
    %577 = tpu.concatenate %550, %576 in 0 : vector<8x8xf32>, vector<8x8xf32> -> vector<16x8xf32>
    %578 = tpu.concatenate %409, %465, %521, %577 in 1 : vector<16x8xf32>, vector<16x8xf32>, vector<16x8xf32>, vector<16x8xf32> -> vector<16x32xf32>
    %c1_186 = arith.constant 1 : index
    %c0_187 = arith.constant 0 : index
    %c0_188 = arith.constant 0 : index
    %579 = vector.load %arg8[%c1_186, %c0_187, %c0_188] : memref<2x32x32xf32, #tpu.memory_space<vmem>>, vector<1x32x32xf32>
    %580 = vector.shape_cast %579 : vector<1x32x32xf32> to vector<32x32xf32>
    %cst_189 = arith.constant dense<0.000000e+00> : vector<16x32xf32>
    %581 = tpu.matmul %578, %580, %cst_189 {dimension_numbers = #tpu.dot_dimension_numbers<[1], [0], [0], [1], [0, 0, 1, 1], [], []>} : vector<16x32xf32>, vector<32x32xf32>, vector<16x32xf32> -> vector<16x32xf32>
    %c1_190 = arith.constant 1 : index
    %c0_191 = arith.constant 0 : index
    %c0_192 = arith.constant 0 : index
    %582 = vector.load %arg9[%c1_190, %c0_191, %c0_192] : memref<2x1x32xf32, #tpu.memory_space<vmem>>, vector<1x1x32xf32>
    %583 = vector.shape_cast %582 : vector<1x1x32xf32> to vector<1x32xf32>
    %584 = vector.broadcast %583 : vector<1x32xf32> to vector<16x32xf32>
    %585 = arith.addf %581, %584 : vector<16x32xf32>
    %586 = arith.addf %317, %585 : vector<16x32xf32>
    %c1_193 = arith.constant 1 : index
    %c0_194 = arith.constant 0 : index
    %c0_195 = arith.constant 0 : index
    %587 = vector.load %arg10[%c1_193, %c0_194, %c0_195] : memref<2x1x32xf32, #tpu.memory_space<vmem>>, vector<1x1x32xf32>
    %588 = vector.shape_cast %587 : vector<1x1x32xf32> to vector<1x32xf32>
    %c1_196 = arith.constant 1 : index
    %c0_197 = arith.constant 0 : index
    %c0_198 = arith.constant 0 : index
    %589 = vector.load %arg11[%c1_196, %c0_197, %c0_198] : memref<2x1x32xf32, #tpu.memory_space<vmem>>, vector<1x1x32xf32>
    %590 = vector.shape_cast %589 : vector<1x1x32xf32> to vector<1x32xf32>
    %cst_199 = arith.constant dense<0.000000e+00> : vector<16xf32>
    %591 = vector.multi_reduction <add>, %586, %cst_199 [1] : vector<16x32xf32> to vector<16xf32>
    %592 = vector.shape_cast %591 : vector<16xf32> to vector<16x1xf32>
    %cst_200 = arith.constant 3.200000e+01 : f32
    %593 = vector.broadcast %cst_200 : f32 to vector<16x1xf32>
    %594 = arith.divf %592, %593 : vector<16x1xf32>
    %595 = vector.broadcast %594 : vector<16x1xf32> to vector<16x32xf32>
    %596 = arith.subf %586, %595 : vector<16x32xf32>
    %597 = arith.mulf %596, %596 : vector<16x32xf32>
    %cst_201 = arith.constant dense<0.000000e+00> : vector<16xf32>
    %598 = vector.multi_reduction <add>, %597, %cst_201 [1] : vector<16x32xf32> to vector<16xf32>
    %599 = vector.shape_cast %598 : vector<16xf32> to vector<16x1xf32>
    %cst_202 = arith.constant 3.200000e+01 : f32
    %600 = vector.broadcast %cst_202 : f32 to vector<16x1xf32>
    %601 = arith.divf %599, %600 : vector<16x1xf32>
    %602 = vector.broadcast %594 : vector<16x1xf32> to vector<16x32xf32>
    %603 = arith.subf %586, %602 : vector<16x32xf32>
    %cst_203 = arith.constant 9.99999997E-7 : f32
    %604 = vector.broadcast %cst_203 : f32 to vector<16x1xf32>
    %605 = arith.addf %601, %604 : vector<16x1xf32>
    %606 = math.rsqrt %605 : vector<16x1xf32>
    %607 = vector.broadcast %606 : vector<16x1xf32> to vector<16x32xf32>
    %608 = arith.mulf %603, %607 : vector<16x32xf32>
    %609 = vector.broadcast %588 : vector<1x32xf32> to vector<16x32xf32>
    %610 = arith.mulf %608, %609 : vector<16x32xf32>
    %611 = vector.broadcast %590 : vector<1x32xf32> to vector<16x32xf32>
    %612 = arith.addf %610, %611 : vector<16x32xf32>
    %c1_204 = arith.constant 1 : index
    %c0_205 = arith.constant 0 : index
    %c0_206 = arith.constant 0 : index
    %613 = vector.load %arg12[%c1_204, %c0_205, %c0_206] : memref<2x32x64xf32, #tpu.memory_space<vmem>>, vector<1x32x64xf32>
    %614 = vector.shape_cast %613 : vector<1x32x64xf32> to vector<32x64xf32>
    %cst_207 = arith.constant dense<0.000000e+00> : vector<16x64xf32>
    %615 = tpu.matmul %612, %614, %cst_207 {dimension_numbers = #tpu.dot_dimension_numbers<[1], [0], [0], [1], [0, 0, 1, 1], [], []>} : vector<16x32xf32>, vector<32x64xf32>, vector<16x64xf32> -> vector<16x64xf32>
    %c1_208 = arith.constant 1 : index
    %c0_209 = arith.constant 0 : index
    %c0_210 = arith.constant 0 : index
    %616 = vector.load %arg13[%c1_208, %c0_209, %c0_210] : memref<2x1x64xf32, #tpu.memory_space<vmem>>, vector<1x1x64xf32>
    %617 = vector.shape_cast %616 : vector<1x1x64xf32> to vector<1x64xf32>
    %618 = vector.broadcast %617 : vector<1x64xf32> to vector<16x64xf32>
    %619 = arith.addf %615, %618 : vector<16x64xf32>
    %cst_211 = arith.constant 0.000000e+00 : f32
    %620 = vector.broadcast %cst_211 : f32 to vector<16x64xf32>
    %621 = arith.maximumf %619, %620 : vector<16x64xf32>
    %c1_212 = arith.constant 1 : index
    %c0_213 = arith.constant 0 : index
    %c0_214 = arith.constant 0 : index
    %622 = vector.load %arg14[%c1_212, %c0_213, %c0_214] : memref<2x64x32xf32, #tpu.memory_space<vmem>>, vector<1x64x32xf32>
    %623 = vector.shape_cast %622 : vector<1x64x32xf32> to vector<64x32xf32>
    %cst_215 = arith.constant dense<0.000000e+00> : vector<16x32xf32>
    %624 = tpu.matmul %621, %623, %cst_215 {dimension_numbers = #tpu.dot_dimension_numbers<[1], [0], [0], [1], [0, 0, 1, 1], [], []>} : vector<16x64xf32>, vector<64x32xf32>, vector<16x32xf32> -> vector<16x32xf32>
    %c1_216 = arith.constant 1 : index
    %c0_217 = arith.constant 0 : index
    %c0_218 = arith.constant 0 : index
    %625 = vector.load %arg15[%c1_216, %c0_217, %c0_218] : memref<2x1x32xf32, #tpu.memory_space<vmem>>, vector<1x1x32xf32>
    %626 = vector.shape_cast %625 : vector<1x1x32xf32> to vector<1x32xf32>
    %627 = vector.broadcast %626 : vector<1x32xf32> to vector<16x32xf32>
    %628 = arith.addf %624, %627 : vector<16x32xf32>
    %629 = arith.addf %586, %628 : vector<16x32xf32>
    %c0_219 = arith.constant 0 : index
    %c0_220 = arith.constant 0 : index
    %630 = vector.load %arg16[%c0_219, %c0_220] : memref<1x32xf32, #tpu.memory_space<vmem>>, vector<1x32xf32>
    %c0_221 = arith.constant 0 : index
    %c0_222 = arith.constant 0 : index
    %631 = vector.load %arg17[%c0_221, %c0_222] : memref<1x32xf32, #tpu.memory_space<vmem>>, vector<1x32xf32>
    %cst_223 = arith.constant dense<0.000000e+00> : vector<16xf32>
    %632 = vector.multi_reduction <add>, %629, %cst_223 [1] : vector<16x32xf32> to vector<16xf32>
    %633 = vector.shape_cast %632 : vector<16xf32> to vector<16x1xf32>
    %cst_224 = arith.constant 3.200000e+01 : f32
    %634 = vector.broadcast %cst_224 : f32 to vector<16x1xf32>
    %635 = arith.divf %633, %634 : vector<16x1xf32>
    %636 = vector.broadcast %635 : vector<16x1xf32> to vector<16x32xf32>
    %637 = arith.subf %629, %636 : vector<16x32xf32>
    %638 = arith.mulf %637, %637 : vector<16x32xf32>
    %cst_225 = arith.constant dense<0.000000e+00> : vector<16xf32>
    %639 = vector.multi_reduction <add>, %638, %cst_225 [1] : vector<16x32xf32> to vector<16xf32>
    %640 = vector.shape_cast %639 : vector<16xf32> to vector<16x1xf32>
    %cst_226 = arith.constant 3.200000e+01 : f32
    %641 = vector.broadcast %cst_226 : f32 to vector<16x1xf32>
    %642 = arith.divf %640, %641 : vector<16x1xf32>
    %643 = vector.broadcast %635 : vector<16x1xf32> to vector<16x32xf32>
    %644 = arith.subf %629, %643 : vector<16x32xf32>
    %cst_227 = arith.constant 9.99999997E-7 : f32
    %645 = vector.broadcast %cst_227 : f32 to vector<16x1xf32>
    %646 = arith.addf %642, %645 : vector<16x1xf32>
    %647 = math.rsqrt %646 : vector<16x1xf32>
    %648 = vector.broadcast %647 : vector<16x1xf32> to vector<16x32xf32>
    %649 = arith.mulf %644, %648 : vector<16x32xf32>
    %650 = vector.broadcast %630 : vector<1x32xf32> to vector<16x32xf32>
    %651 = arith.mulf %649, %650 : vector<16x32xf32>
    %652 = vector.broadcast %631 : vector<1x32xf32> to vector<16x32xf32>
    %653 = arith.addf %651, %652 : vector<16x32xf32>
    %c0_228 = arith.constant 0 : index
    %c0_229 = arith.constant 0 : index
    %654 = vector.load %arg18[%c0_228, %c0_229] : memref<16x32xf32, #tpu.memory_space<vmem>>, vector<16x32xf32>
    tpu.vector_store %arg18[%c0_228, %c0_229], %653 {strides = array<i32>} : memref<16x32xf32, #tpu.memory_space<vmem>>, vector<16x32xf32>,
    return
  }
  func.func @transform_0(%arg0: i32) -> (i32, i32) {
    %c0_i32 = arith.constant 0 : i32
    %c0_i32_0 = arith.constant 0 : i32
    %c0_i32_1 = arith.constant 0 : i32
    return %c0_i32, %c0_i32_0 : i32, i32
  }
  func.func @transform_1(%arg0: i32) -> (i32, i32) {
    %c0_i32 = arith.constant 0 : i32
    %c0_i32_0 = arith.constant 0 : i32
    %c0_i32_1 = arith.constant 0 : i32
    return %c0_i32, %c0_i32_0 : i32, i32
  }
  func.func @transform_2(%arg0: i32) -> (i32, i32, i32) {
    %c0_i32 = arith.constant 0 : i32
    %c0_i32_0 = arith.constant 0 : i32
    %c0_i32_1 = arith.constant 0 : i32
    %c0_i32_2 = arith.constant 0 : i32
    return %c0_i32, %c0_i32_0, %c0_i32_1 : i32, i32, i32
  }
  func.func @transform_3(%arg0: i32) -> (i32, i32, i32) {
    %c0_i32 = arith.constant 0 : i32
    %c0_i32_0 = arith.constant 0 : i32
    %c0_i32_1 = arith.constant 0 : i32
    %c0_i32_2 = arith.constant 0 : i32
    return %c0_i32, %c0_i32_0, %c0_i32_1 : i32, i32, i32
  }
  func.func @transform_4(%arg0: i32) -> (i32, i32, i32) {
    %c0_i32 = arith.constant 0 : i32
    %c0_i32_0 = arith.constant 0 : i32
    %c0_i32_1 = arith.constant 0 : i32
    %c0_i32_2 = arith.constant 0 : i32
    return %c0_i32, %c0_i32_0, %c0_i32_1 : i32, i32, i32
  }
  func.func @transform_5(%arg0: i32) -> (i32, i32, i32) {
    %c0_i32 = arith.constant 0 : i32
    %c0_i32_0 = arith.constant 0 : i32
    %c0_i32_1 = arith.constant 0 : i32
    %c0_i32_2 = arith.constant 0 : i32
    return %c0_i32, %c0_i32_0, %c0_i32_1 : i32, i32, i32
  }
  func.func @transform_6(%arg0: i32) -> (i32, i32, i32) {
    %c0_i32 = arith.constant 0 : i32
    %c0_i32_0 = arith.constant 0 : i32
    %c0_i32_1 = arith.constant 0 : i32
    %c0_i32_2 = arith.constant 0 : i32
    return %c0_i32, %c0_i32_0, %c0_i32_1 : i32, i32, i32
  }
  func.func @transform_7(%arg0: i32) -> (i32, i32, i32) {
    %c0_i32 = arith.constant 0 : i32
    %c0_i32_0 = arith.constant 0 : i32
    %c0_i32_1 = arith.constant 0 : i32
    %c0_i32_2 = arith.constant 0 : i32
    return %c0_i32, %c0_i32_0, %c0_i32_1 : i32, i32, i32
  }
  func.func @transform_8(%arg0: i32) -> (i32, i32, i32) {
    %c0_i32 = arith.constant 0 : i32
    %c0_i32_0 = arith.constant 0 : i32
    %c0_i32_1 = arith.constant 0 : i32
    %c0_i32_2 = arith.constant 0 : i32
    return %c0_i32, %c0_i32_0, %c0_i32_1 : i32, i32, i32
  }
  func.func @transform_9(%arg0: i32) -> (i32, i32, i32) {
    %c0_i32 = arith.constant 0 : i32
    %c0_i32_0 = arith.constant 0 : i32
    %c0_i32_1 = arith.constant 0 : i32
    %c0_i32_2 = arith.constant 0 : i32
    return %c0_i32, %c0_i32_0, %c0_i32_1 : i32, i32, i32
  }
  func.func @transform_10(%arg0: i32) -> (i32, i32, i32) {
    %c0_i32 = arith.constant 0 : i32
    %c0_i32_0 = arith.constant 0 : i32
    %c0_i32_1 = arith.constant 0 : i32
    %c0_i32_2 = arith.constant 0 : i32
    return %c0_i32, %c0_i32_0, %c0_i32_1 : i32, i32, i32
  }
  func.func @transform_11(%arg0: i32) -> (i32, i32, i32) {
    %c0_i32 = arith.constant 0 : i32
    %c0_i32_0 = arith.constant 0 : i32
    %c0_i32_1 = arith.constant 0 : i32
    %c0_i32_2 = arith.constant 0 : i32
    return %c0_i32, %c0_i32_0, %c0_i32_1 : i32, i32, i32
  }
  func.func @transform_12(%arg0: i32) -> (i32, i32, i32) {
    %c0_i32 = arith.constant 0 : i32
    %c0_i32_0 = arith.constant 0 : i32
    %c0_i32_1 = arith.constant 0 : i32
    %c0_i32_2 = arith.constant 0 : i32
    return %c0_i32, %c0_i32_0, %c0_i32_1 : i32, i32, i32
  }
  func.func @transform_13(%arg0: i32) -> (i32, i32, i32) {
    %c0_i32 = arith.constant 0 : i32
    %c0_i32_0 = arith.constant 0 : i32
    %c0_i32_1 = arith.constant 0 : i32
    %c0_i32_2 = arith.constant 0 : i32
    return %c0_i32, %c0_i32_0, %c0_i32_1 : i32, i32, i32
  }
  func.func @transform_14(%arg0: i32) -> (i32, i32, i32) {
    %c0_i32 = arith.constant 0 : i32
    %c0_i32_0 = arith.constant 0 : i32
    %c0_i32_1 = arith.constant 0 : i32
    %c0_i32_2 = arith.constant 0 : i32
    return %c0_i32, %c0_i32_0, %c0_i32_1 : i32, i32, i32
  }
  func.func @transform_15(%arg0: i32) -> (i32, i32) {
    %c0_i32 = arith.constant 0 : i32
    %c0_i32_0 = arith.constant 0 : i32
    %c0_i32_1 = arith.constant 0 : i32
    return %c0_i32, %c0_i32_0 : i32, i32
  }
  func.func @transform_16(%arg0: i32) -> (i32, i32) {
    %c0_i32 = arith.constant 0 : i32
    %c0_i32_0 = arith.constant 0 : i32
    %c0_i32_1 = arith.constant 0 : i32
    return %c0_i32, %c0_i32_0 : i32, i32
  }
  func.func @transform_17(%arg0: i32) -> (i32, i32) {
    %c0_i32 = arith.constant 0 : i32
    %c0_i32_0 = arith.constant 0 : i32
    %c0_i32_1 = arith.constant 0 : i32
    return %c0_i32, %c0_i32_0 : i32, i32
  }
}

</mosaic_0001>

<bundles_post_ra>
// kernel: encoder_forward.1
= control target key start
LH: loop header
LB: loop body
LE: loop exit
PB: predicated region body
PF: predicated region fallthrough
CT: control target
= control target key end

     0   :  { %s5209_s0 = inlined_call_operand.vmem [shape: f32[16,32], index: 0, kind: input, shape index: {}]   ;;  %s5210_s1 = inlined_call_operand.vmem [shape: f32[16,32], index: 1, kind: input, shape index: {}]   ;;  %s5211_s2 = inlined_call_operand.vmem [shape: f32[2,1,8], index: 2, kind: input, shape index: {}]   ;;  %s5212_s3 = inlined_call_operand.vmem [shape: f32[2,1,32], index: 3, kind: input, shape index: {}]   ;;  %s5213_s4 = inlined_call_operand.vmem [shape: f32[2,1,32], index: 4, kind: input, shape index: {}]   ;;  %s5214_s5 = inlined_call_operand.vmem [shape: f32[2,32,96], index: 5, kind: input, shape index: {}]   ;;  %s5215_s6 = inlined_call_operand.vmem [shape: f32[2,1,96], index: 6, kind: input, shape index: {}]   ;;  %s5216_s7 = inlined_call_operand.vmem [shape: f32[2,32,32], index: 7, kind: input, shape index: {}]   ;;  %s5217_s8 = inlined_call_operand.vmem [shape: f32[2,1,32], index: 8, kind: input, shape index: {}]   ;;  %s5218_s9 = inlined_call_operand.vmem [shape: f32[2,1,32], index: 9, kind: input, shape index: {}]   ;;  %s5219_s10 = inlined_call_operand.vmem [shape: f32[2,1,32], index: 10, kind: input, shape index: {}]   ;;  %s5220_s11 = inlined_call_operand.vmem [shape: f32[2,32,64], index: 11, kind: input, shape index: {}]   ;;  %s5221_s12 = inlined_call_operand.vmem [shape: f32[2,1,64], index: 12, kind: input, shape index: {}]   ;;  %s5222_s13 = inlined_call_operand.vmem [shape: f32[2,64,32], index: 13, kind: input, shape index: {}]   ;;  %s5223_s14 = inlined_call_operand.vmem [shape: f32[2,1,32], index: 14, kind: input, shape index: {}]   ;;  %s5224_s15 = inlined_call_operand.vmem [shape: f32[1,32], index: 15, kind: input, shape index: {}]   ;;  %s5225_s16 = inlined_call_operand.vmem [shape: f32[1,32], index: 16, kind: input, shape index: {}]   ;;  %s5226_s17 = inlined_call_operand.hbm [shape: f32[16,32], index: 17, kind: output, shape index: {}]  }
   0x1   :  { %5242 = sst [smem:[#allocation5_spill]] %s5209_s0 }
   0x2   :  { %5243 = sst [smem:[#allocation6_spill]] %s5210_s1 }
   0x3   :  { %5244 = sst [smem:[#allocation7_spill]] %s5221_s12 }
   0x4   :  { %s5245_s26 = sld [smem:[#allocation5_spill]]  ;;  %vm69_vm0 = vcmask 261120  }
   0x5   :  { %s5246_s12 = sld [smem:[#allocation6_spill]] }
   0xa   :  { %v57_v0 = vld [vmem:[%s5245_s26] sm:$0xff]  ;;  %v58_v2 = vld [vmem:[%s5245_s26 + $0x8] sm:$0xff] }
   0xb   :  { %v61_v1 = vld [vmem:[%s5246_s12] sm:$0xff]  ;;  %v59_v3 = vmul.f32 5.656854, %v57_v0  ;;  %v60_v4 = vmul.f32 5.656854, %v58_v2  ;;  %v62_v5 = vld [vmem:[%s5246_s12 + $0x8] sm:$0xff] }
   0xc   :  { %22 = vsyncpa [#allocation3], 0  ;;  %v116_v20 = vld [vmem:[%s5214_s5 + $0x18] sm:$0xff]  ;;  %v115_v21 = vld [vmem:[%s5214_s5 + $0x10] sm:$0xff]  ;;  %v4440_v40 = vmov 0.0   ;;  %vm4441_vm1 = vmmov 0   ;;  %v286_v60 = vlaneseq }
   0xd   :  { %v4561_v6 = vadd.f32 %v61_v1, %v59_v3  ;;  %v4563_v7 = vadd.f32 %v62_v5, %v60_v4  ;;  %4051 = vmatprep.subr.mxu1 %v116_v20  ;;  %v114_v22 = vld [vmem:[%s5214_s5 + $0x8] sm:$0xff]  ;;  %v113_v23 = vld [vmem:[%s5214_s5] sm:$0xff]  ;;  %4072 = vmatprep.subr.mxu0 %v4440_v40  ;;  %s4442_s30 = smov 96   ;;  %s4443_s18 = smov 88   ;;  %vm208_vm2 = vcmask 64512   ;;  %v4449_v1 = vmov 0  }
   0xe   :  { %4052 = vmatpush3.msra.mxu1 %v116_v20  ;;  %v3821_v31 = vld [vmem:[%s5212_s3] ss:$0 sm:$0xff]  ;;  %4074 = vmatprep.mubr.msk.f32.mxu0 %vm4441_vm1, %v4440_v40  ;;  %s4444_s12 = smov 120   ;;  %s4445_s19 = smov 80   ;;  %v66_v61 = vld [vmem:[%s5211_s2 + $0x1] sm:$0x1] }
   0xf   :  { %v70_v8 = vsel %vm69_vm0, %v4561_v6, 0.0  ;;  %v73_v9 = vsel %vm69_vm0, %v4563_v7, 0.0  ;;  %4053 = vmatprep.subr.mxu1 %v115_v21  ;;  %v3822_v33 = vld [vmem:[%s5213_s4] ss:$0 sm:$0xff]  ;;  %s4446_s1 = smov 112   ;;  %s4447_s20 = smov 72  }
  0x10   :  { %71 = vadd.xlane.f32.xlu0 %v70_v8  ;;  %4054 = vmatpush3.msra.mxu1 %v115_v21  ;;  %v3823_v41 = vld [vmem:[%s5215_s6] ss:$0 sm:$0xff]  ;;  %s4448_s21 = smov 104   ;;  %v287_v62 = vshrl.u32 %v286_v60, 7  ;;  %vm457_vm3 = vcmp.eq.f32.partialorder %v66_v61, 0.0  ;;  %s5236_s26 = smov 56  }
  0x11   :  { %4055 = vmatprep.subr.mxu1 %v114_v22  ;;  %v65_v63 = vld [vmem:[%s5211_s2] sm:$0x1]  ;;  %v458_v2 = vsel %vm457_vm3, 1, %v4449_v1  ;;  %s4450_s2 = smov 64   ;;  %s5234_s27 = smov 48   ;;  %vm1580_vm7 = vcmask 130048  }
  0x12   :  { %4056 = vmatpush3.msra.mxu1 %v114_v22  ;;  %v288_v0 = vsub.s32 0, %v287_v62  ;;  %vm284_vm4 = vcmp.eq.f32.partialorder %v65_v63, 0.0  ;;  %s5230_s28 = smov 40   ;;  %s5232_s29 = smov 8   ;;  %vm1583_vm8 = vcmask 195584   ;;  %vm1833_vm9 = vcmask 523264  }
  0x13   :  { %4057 = vmatprep.subr.mxu1 %v113_v23  ;;  %v285_v3 = vsel %vm284_vm4, 1, %v4449_v1  ;;  %s5240_s0 = smov 16   ;;  %s5238_s22 = smov 24  }
  0x14   :  { %74 = vadd.xlane.f32.xlu0 %v73_v9  ;;  %4058 = vmatpush3.msra.mxu1 %v113_v23  ;;  %v4679_v4 = vrot.slane %v458_v2, %v288_v0  ;;  %v4681_v5 = vrot.slane %v285_v3, %v288_v0 }
  0x15   :  { %4062 = vmatprep.subr.mxu1 %v4440_v40 }
  0x16   :  { %vm463_vm5 = vcmp.eq.s32.totalorder %v4679_v4, 1  ;;  %vm290_vm6 = vcmp.eq.s32.totalorder %v4681_v5, 1 }
  0x99   :  { %v72_v10 = vpop.xlane.xlu0 %71 }
  0x9a   :  { %v77_v11 = vmul.f32 0.03125, %v72_v10 }
  0x9c   :  { %v79_v12 = vsub.f32 %v4561_v6, %v77_v11 }
  0x9d   :  { %v75_v13 = vpop.xlane.xlu0 %74 }
  0x9e   :  { %v78_v14 = vmul.f32 0.03125, %v75_v13  ;;  %v81_v15 = vmul.f32 %v79_v12, %v79_v12 }
  0xa0   :  { %v80_v16 = vsub.f32 %v4563_v7, %v78_v14  ;;  %v83_v17 = vsel %vm69_vm0, %v81_v15, 0.0 }
  0xa1   :  { %84 = vadd.xlane.f32.xlu1 %v83_v17 }
  0xa2   :  { %v82_v18 = vmul.f32 %v80_v16, %v80_v16 }
  0xa4   :  { %v86_v19 = vsel %vm69_vm0, %v82_v18, 0.0 }
  0xa5   :  { %87 = vadd.xlane.f32.xlu1 %v86_v19 }
 0x12a   :  { %v85_v24 = vpop.xlane.xlu1 %84 }
 0x12b   :  { %v89_v25 = vmul.f32 0.03125, %v85_v24 }
 0x12d   :  { %v91_v26 = vadd.f32 1e-06, %v89_v25 }
 0x12e   :  { %v88_v27 = vpop.xlane.xlu1 %87 }
 0x12f   :  { %4334 = vrsqrt.f32 %v91_v26  ;;  %v90_v28 = vmul.f32 0.03125, %v88_v27 }
 0x131   :  { %v92_v29 = vadd.f32 1e-06, %v90_v28 }
 0x133   :  { %4336 = vrsqrt.f32 %v92_v29 }
 0x13c   :  { %v4335_v30 = vpop.eup %4334 }
 0x13d   :  { %v95_v32 = vmul.f32 %v4335_v30, %v79_v12 }
 0x13f   :  { %v103_v34 = vmul.f32 %v3821_v31, %v95_v32 }
 0x140   :  { %v4337_v35 = vpop.eup %4336 }
 0x141   :  { %v96_v36 = vmul.f32 %v4337_v35, %v80_v16  ;;  %v111_v37 = vadd.f32 %v3822_v33, %v103_v34 }
 0x143   :  { %v104_v38 = vmul.f32 %v3821_v31, %v96_v36  ;;  %4059 = vmatprep.mubr.msk.f32.mxu1 %vm69_vm0, %v111_v37 }
 0x145   :  { %v112_v39 = vadd.f32 %v3822_v33, %v104_v38 }
 0x147   :  { %4060 = vmatmul.mubr.msk.f32.vlgmr.msra.gmra.mxu1 %vm69_vm0, %v112_v39 }
 0x148   :  { %4064 = vmatprep.mubr.msk.f32.mxu1 %vm4441_vm1, %v4440_v40 }
 0x207   :  { %v4061_v42 = vpop.f32.mrf.mxu1 }
 0x208   :  { %v4602_v43 = vadd.f32 %v4061_v42, %v3823_v41 }
 0x209   :  { %v196_v44 = vpop.f32.mrf.mxu1 }
 0x20a   :  { %v4604_v45 = vadd.f32 %v3823_v41, %v196_v44  ;;  %380 = vrot.lane.b32.xlu1 %v4602_v43, %s4442_s30 }
 0x20c   :  { %206 = vrot.lane.b32.xlu0 %v4604_v45, %s4442_s30 }
 0x20e   :  { %554 = vrot.lane.b32.xlu1 %v4604_v45, %s4443_s18 }
 0x210   :  { %721 = vrot.lane.b32.xlu0 %v4602_v43, %s4443_s18 }
 0x212   :  { %552 = vrot.lane.b32.xlu1 %v4604_v45, %s4444_s12 }
 0x214   :  { %888 = vrot.lane.b32.xlu0 %v4604_v45, %s4445_s19 }
 0x216   :  { %719 = vrot.lane.b32.xlu1 %v4602_v43, %s4444_s12 }
 0x218   :  { %1055 = vrot.lane.b32.xlu0 %v4602_v43, %s4445_s19 }
 0x21a   :  { %886 = vrot.lane.b32.xlu1 %v4604_v45, %s4446_s1 }
 0x21c   :  { %1222 = vrot.lane.b32.xlu0 %v4604_v45, %s4447_s20 }
 0x21e   :  { %1053 = vrot.lane.b32.xlu1 %v4602_v43, %s4446_s1 }
 0x220   :  { %1389 = vrot.lane.b32.xlu0 %v4602_v43, %s4447_s20 }
 0x222   :  { %1220 = vrot.lane.b32.xlu1 %v4604_v45, %s4448_s21 }
 0x226   :  { %1387 = vrot.lane.b32.xlu1 %v4602_v43, %s4448_s21 }
 0x27c   :  { %v381_v46 = vpop.permute.xlu1 %380 }
 0x27d   :  { %4073 = vmatpush3.xpose.msk.msra.mxu0 %vm208_vm2, %v381_v46 }
 0x27e   :  { %v207_v47 = vpop.permute.xlu0 %206  ;;  %4082 = vmatprep.subr.mxu0 %v4440_v40 }
 0x27f   :  { %4063 = vmatpush3.xpose.msk.msra.mxu1 %vm208_vm2, %v207_v47 }
 0x280   :  { %4075 = vmatmul.mubr.msk.f32.vlgmr.msra.gmra.mxu0 %vm208_vm2, %v4602_v43  ;;  %v555_v48 = vpop.permute.xlu1 %554  ;;  %4067 = vmatprep.subr.mxu1 %v4440_v40 }
 0x281   :  { %4083 = vmatpush3.xpose.msk.msra.mxu0 %vm208_vm2, %v555_v48  ;;  %4084 = vmatprep.mubr.msk.f32.mxu0 %vm4441_vm1, %v4440_v40 }
 0x282   :  { %4065 = vmatmul.mubr.msk.f32.vlgmr.msra.gmra.mxu1 %vm208_vm2, %v4604_v45  ;;  %v722_v49 = vpop.permute.xlu0 %721  ;;  %4092 = vmatprep.subr.mxu0 %v4440_v40 }
 0x283   :  { %4069 = vmatprep.mubr.msk.f32.mxu1 %vm4441_vm1, %v4440_v40 }
 0x284   :  { %v553_v50 = vpop.permute.xlu1 %552 }
 0x285   :  { %4085 = vmatmul.mubr.msk.f32.vlgmr.msra.gmra.mxu0 %vm208_vm2, %v553_v50 }
 0x286   :  { %4093 = vmatpush3.xpose.msk.msra.mxu0 %vm208_vm2, %v722_v49  ;;  %v889_v51 = vpop.permute.xlu0 %888  ;;  %4094 = vmatprep.mubr.msk.f32.mxu0 %vm4441_vm1, %v4440_v40 }
 0x287   :  { %4102 = vmatprep.subr.mxu0 %v4440_v40 }
 0x288   :  { %v720_v52 = vpop.permute.xlu1 %719 }
 0x289   :  { %4095 = vmatmul.mubr.msk.f32.vlgmr.msra.gmra.mxu0 %vm208_vm2, %v720_v52 }
 0x28a   :  { %4103 = vmatpush3.xpose.msk.msra.mxu0 %vm208_vm2, %v889_v51  ;;  %v1056_v53 = vpop.permute.xlu0 %1055  ;;  %4104 = vmatprep.mubr.msk.f32.mxu0 %vm4441_vm1, %v4440_v40 }
 0x28b   :  { %4112 = vmatprep.subr.mxu0 %v4440_v40 }
 0x28c   :  { %v887_v54 = vpop.permute.xlu1 %886 }
 0x28d   :  { %4105 = vmatmul.mubr.msk.f32.vlgmr.msra.gmra.mxu0 %vm208_vm2, %v887_v54 }
 0x28e   :  { %4113 = vmatpush3.xpose.msk.msra.mxu0 %vm208_vm2, %v1056_v53  ;;  %4114 = vmatprep.mubr.msk.f32.mxu0 %vm4441_vm1, %v4440_v40  ;;  %v1223_v55 = vpop.permute.xlu0 %1222 }
 0x28f   :  { %4122 = vmatprep.subr.mxu0 %v4440_v40 }
 0x290   :  { %v1054_v56 = vpop.permute.xlu1 %1053 }
 0x291   :  { %4115 = vmatmul.mubr.msk.f32.vlgmr.msra.gmra.mxu0 %vm208_vm2, %v1054_v56 }
 0x292   :  { %4123 = vmatpush3.xpose.msk.msra.mxu0 %vm208_vm2, %v1223_v55  ;;  %4124 = vmatprep.mubr.msk.f32.mxu0 %vm4441_vm1, %v4440_v40  ;;  %v1390_v58 = vpop.permute.xlu0 %1389 }
 0x293   :  { %4132 = vmatprep.subr.mxu0 %v4440_v40 }
 0x294   :  { %v1221_v57 = vpop.permute.xlu1 %1220 }
 0x295   :  { %4125 = vmatmul.mubr.msk.f32.vlgmr.msra.gmra.mxu0 %vm208_vm2, %v1221_v57 }
 0x296   :  { %4133 = vmatpush3.xpose.msk.msra.mxu0 %vm208_vm2, %v1390_v58  ;;  %4134 = vmatprep.mubr.msk.f32.mxu0 %vm4441_vm1, %v4440_v40 }
 0x298   :  { %v1388_v59 = vpop.permute.xlu1 %1387 }
 0x299   :  { %4135 = vmatmul.mubr.msk.f32.vlgmr.msra.gmra.mxu0 %vm208_vm2, %v1388_v59 }
 0x340   :  { %v452_v8 = vpop.f32.mrf.mxu0 }
 0x341   :  { %v456_v9 = vmul.f32 0.35355338, %v452_v8 }
 0x342   :  { %v279_v10 = vpop.f32.mrf.mxu1  ;;  %v4076_v11 = vpop.f32.mrf.mxu0 }
 0x343   :  { %v283_v12 = vmul.f32 0.35355338, %v279_v10  ;;  %v464_v13 = vsel %vm463_vm5, -1e+09, %v456_v9 }
 0x344   :  { %v4066_v14 = vpop.f32.mrf.mxu1  ;;  %v465_v15 = vsel %vm208_vm2, %v464_v13, -inf }
 0x345   :  { %466 = vmax.xlane.f32.xlu1 %v465_v15  ;;  %v626_v16 = vpop.f32.mrf.mxu0  ;;  %v291_v17 = vsel %vm290_vm6, -1e+09, %v283_v12 }
 0x346   :  { %v630_v18 = vmul.f32 0.35355338, %v626_v16  ;;  %v292_v19 = vsel %vm208_vm2, %v291_v17, -inf }
 0x347   :  { %v4086_v20 = vpop.f32.mrf.mxu0  ;;  %293 = vmax.xlane.f32.xlu0 %v292_v19 }
 0x348   :  { %v4693_v21 = vsel %vm290_vm6, -1e+09, %v630_v18 }
 0x349   :  { %v793_v22 = vpop.f32.mrf.mxu0  ;;  %v632_v23 = vsel %vm208_vm2, %v4693_v21, -inf }
 0x34a   :  { %v797_v24 = vmul.f32 0.35355338, %v793_v22 }
 0x34b   :  { %633 = vmax.xlane.f32.xlu0 %v632_v23  ;;  %v4096_v25 = vpop.f32.mrf.mxu0 }
 0x34c   :  { %v4699_v26 = vsel %vm463_vm5, -1e+09, %v797_v24 }
 0x34d   :  { %v960_v27 = vpop.f32.mrf.mxu0  ;;  %v799_v28 = vsel %vm208_vm2, %v4699_v26, -inf }
 0x34e   :  { %v964_v29 = vmul.f32 0.35355338, %v960_v27 }
 0x34f   :  { %800 = vmax.xlane.f32.xlu0 %v799_v28  ;;  %v4106_v30 = vpop.f32.mrf.mxu0 }
 0x350   :  { %v965_v31 = vsel %vm290_vm6, -1e+09, %v964_v29 }
 0x351   :  { %v1127_v32 = vpop.f32.mrf.mxu0  ;;  %v966_v33 = vsel %vm208_vm2, %v965_v31, -inf }
 0x352   :  { %v1131_v34 = vmul.f32 0.35355338, %v1127_v32 }
 0x353   :  { %967 = vmax.xlane.f32.xlu0 %v966_v33  ;;  %v4116_v35 = vpop.f32.mrf.mxu0 }
 0x354   :  { %v4708_v36 = vsel %vm463_vm5, -1e+09, %v1131_v34 }
 0x355   :  { %v1294_v37 = vpop.f32.mrf.mxu0  ;;  %v1133_v38 = vsel %vm208_vm2, %v4708_v36, -inf }
 0x356   :  { %v1298_v39 = vmul.f32 0.35355338, %v1294_v37  ;;  %1134 = vmax.xlane.f32.xlu1 %v1133_v38 }
 0x357   :  { %v4126_v41 = vpop.f32.mrf.mxu0 }
 0x358   :  { %v1299_v42 = vsel %vm290_vm6, -1e+09, %v1298_v39 }
 0x359   :  { %v1461_v44 = vpop.f32.mrf.mxu0  ;;  %v1300_v46 = vsel %vm208_vm2, %v1299_v42, -inf }
 0x35a   :  { %1301 = vmax.xlane.f32.xlu0 %v1300_v46  ;;  %v1465_v48 = vmul.f32 0.35355338, %v1461_v44 }
 0x35b   :  { %v4136_v47 = vpop.f32.mrf.mxu0 }
 0x35c   :  { %v1466_v49 = vsel %vm463_vm5, -1e+09, %v1465_v48 }
 0x35d   :  { %v1467_v50 = vsel %vm208_vm2, %v1466_v49, -inf }
 0x367   :  { %303 = vrot.lane.b32.xlu1 %v4604_v45, %s4450_s2 }
 0x38b   :  { %1468 = vmax.xlane.f32.xlu1 %v1467_v50 }
 0x3ce   :  { %v467_v51 = vpop.xlane.xlu1 %466 }
 0x3cf   :  { %v468_v52 = vsub.f32 %v464_v13, %v467_v51 }
 0x3d0   :  { %v294_v53 = vpop.xlane.xlu0 %293 }
 0x3d1   :  { %v469_v54 = vmul.f32 1.442695, %v468_v52  ;;  %v295_v55 = vsub.f32 %v291_v17, %v294_v53 }
 0x3d3   :  { %4338 = vpow2.f32 %v469_v54  ;;  %v296_v56 = vmul.f32 1.442695, %v295_v55 }
 0x3d4   :  { %v634_v63 = vpop.xlane.xlu0 %633 }
 0x3d5   :  { %4340 = vpow2.f32 %v296_v56  ;;  %v635_v1 = vsub.f32 %v4693_v21, %v634_v63 }
 0x3d7   :  { %v636_v3 = vmul.f32 1.442695, %v635_v1 }
 0x3d8   :  { %v801_v0 = vpop.xlane.xlu0 %800 }
 0x3d9   :  { %v802_v10 = vsub.f32 %v4699_v26, %v801_v0  ;;  %4342 = vpow2.f32 %v636_v3 }
 0x3db   :  { %v803_v13 = vmul.f32 1.442695, %v802_v10 }
 0x3dc   :  { %v968_v2 = vpop.xlane.xlu0 %967 }
 0x3dd   :  { %v969_v8 = vsub.f32 %v965_v31, %v968_v2 }
 0x3df   :  { %v1135_v57 = vpop.xlane.xlu1 %1134  ;;  %v970_v11 = vmul.f32 1.442695, %v969_v8 }
 0x3e0   :  { %v4720_v58 = vpop.eup %4338  ;;  %v1136_v28 = vsub.f32 %v4708_v36, %v1135_v57 }
 0x3e1   :  { %v471_v59 = vsel %vm208_vm2, %v4720_v58, 0.0  ;;  %4344 = vpow2.f32 %v970_v11 }
 0x3e2   :  { %v4724_v60 = vpop.eup %4340  ;;  %472 = vadd.xlane.f32.xlu1 %v471_v59  ;;  %4346 = vpow2.f32 %v803_v13  ;;  %v1137_v29 = vmul.f32 1.442695, %v1136_v28 }
 0x3e3   :  { %v304_v61 = vpop.permute.xlu1 %303  ;;  %v298_v62 = vsel %vm208_vm2, %v4724_v60, 0.0  ;;  %v1302_v9 = vpop.xlane.xlu0 %1301 }
 0x3e4   :  { %4068 = vmatpush3.msra.mxu1 %v304_v61  ;;  %299 = vadd.xlane.f32.xlu0 %v298_v62  ;;  %v1303_v12 = vsub.f32 %v1299_v42, %v1302_v9 }
 0x3e5   :  { %4077 = vmatprep.subr.mxu1 %v4440_v40 }
 0x3e6   :  { %v1304_v14 = vmul.f32 1.442695, %v1303_v12  ;;  %v4343_v16 = vpop.eup %4342 }
 0x3e7   :  { %v638_v19 = vsel %vm208_vm2, %v4343_v16, 0.0 }
 0x3e8   :  { %4348 = vpow2.f32 %v1304_v14  ;;  %v1589_v14 = vld [vmem:[%s5216_s7 + $0x18] sm:$0xff] }
 0x3e9   :  { %4142 = vmatprep.subr.mxu0 %v1589_v14 }
 0x3ea   :  { %4143 = vmatpush3.msra.mxu0 %v1589_v14 }
 0x3ee   :  { %v4740_v20 = vpop.eup %4344 }
 0x3ef   :  { %v4347_v21 = vpop.eup %4346  ;;  %v972_v22 = vsel %vm208_vm2, %v4740_v20, 0.0 }
 0x3f0   :  { %v805_v24 = vsel %vm208_vm2, %v4347_v21, 0.0 }
 0x3f3   :  { %643 = vrot.lane.b32.xlu1 %v4604_v45, %s5236_s26 }
 0x3f5   :  { %v4744_v23 = vpop.eup %4348 }
 0x3f6   :  { %v1306_v25 = vsel %vm208_vm2, %v4744_v23, 0.0 }
 0x3f7   :  { %810 = vrot.lane.b32.xlu1 %v4602_v43, %s5236_s26 }
 0x3fa   :  { %476 = vrot.lane.b32.xlu0 %v4602_v43, %s4450_s2 }
 0x3fb   :  { %977 = vrot.lane.b32.xlu1 %v4604_v45, %s5234_s27 }
 0x414   :  { %v1469_v15 = vpop.xlane.xlu1 %1468 }
 0x415   :  { %v1470_v17 = vsub.f32 %v1466_v49, %v1469_v15  ;;  %v1588_v15 = vld [vmem:[%s5216_s7 + $0x10] sm:$0xff] }
 0x416   :  { %4144 = vmatprep.subr.mxu0 %v1588_v15 }
 0x417   :  { %v1471_v18 = vmul.f32 1.442695, %v1470_v17  ;;  %4145 = vmatpush3.msra.mxu0 %v1588_v15  ;;  %v1586_v17 = vld [vmem:[%s5216_s7] sm:$0xff] }
 0x419   :  { %4350 = vpow2.f32 %v1471_v18  ;;  %639 = vadd.xlane.f32.xlu0 %v638_v19 }
 0x41a   :  { %4352 = vpow2.f32 %v1137_v29 }
 0x41d   :  { %973 = vadd.xlane.f32.xlu0 %v972_v22 }
 0x41f   :  { %806 = vadd.xlane.f32.xlu1 %v805_v24 }
 0x421   :  { %1307 = vadd.xlane.f32.xlu0 %v1306_v25 }
 0x426   :  { %v4749_v26 = vpop.eup %4350 }
 0x427   :  { %v1473_v27 = vsel %vm208_vm2, %v4749_v26, 0.0  ;;  %v4353_v30 = vpop.eup %4352 }
 0x428   :  { %1474 = vadd.xlane.f32.xlu0 %v1473_v27  ;;  %v1139_v31 = vsel %vm208_vm2, %v4353_v30, 0.0 }
 0x430   :  { %1144 = vrot.lane.b32.xlu1 %v4602_v43, %s5234_s27 }
 0x43e   :  { %1311 = vrot.lane.b32.xlu0 %v4604_v45, %s5230_s28 }
 0x454   :  { %1140 = vadd.xlane.f32.xlu1 %v1139_v31 }
 0x465   :  { %1478 = vrot.lane.b32.xlu1 %v4602_v43, %s5230_s28  ;;  %s5253_s28 = smov 24  }
 0x46b   :  { %v473_v32 = vpop.xlane.xlu1 %472 }
 0x46d   :  { %v300_v33 = vpop.xlane.xlu0 %299 }
 0x46e   :  { %4354 = vrcp.f32 %v300_v33 }
 0x46f   :  { %4356 = vrcp.f32 %v473_v32  ;;  %v644_v43 = vpop.permute.xlu1 %643 }
 0x471   :  { %v477_v37 = vpop.permute.xlu0 %476 }
 0x473   :  { %v811_v38 = vpop.permute.xlu1 %810 }
 0x477   :  { %v978_v41 = vpop.permute.xlu1 %977 }
 0x47b   :  { %v4355_v34 = vpop.eup %4354 }
 0x47c   :  { %v302_v35 = vmul.f32 %v4355_v34, %v4724_v60  ;;  %v4357_v36 = vpop.eup %4356 }
 0x47d   :  { %v475_v45 = vmul.f32 %v4357_v36, %v4720_v58  ;;  %v3850_v36 = vld [vmem:[%s5217_s8] ss:$0 sm:$0xff] }
 0x47e   :  { %4070 = vmatmul.mubr.msk.f32.vlgmr.msra.gmra.mxu1 %vm208_vm2, %v302_v35 }
 0x47f   :  { %4078 = vmatpush3.msra.mxu1 %v477_v37  ;;  %4079 = vmatprep.mubr.msk.f32.mxu1 %vm4441_vm1, %v4440_v40 }
 0x480   :  { %4087 = vmatprep.subr.mxu1 %v4440_v40 }
 0x482   :  { %4080 = vmatmul.mubr.msk.f32.vlgmr.msra.gmra.mxu1 %vm208_vm2, %v475_v45 }
 0x483   :  { %4088 = vmatpush3.msra.mxu1 %v644_v43  ;;  %4089 = vmatprep.mubr.msk.f32.mxu1 %vm4441_vm1, %v4440_v40 }
 0x484   :  { %4097 = vmatprep.subr.mxu1 %v4440_v40 }
 0x4a2   :  { %v640_v39 = vpop.xlane.xlu0 %639 }
 0x4a3   :  { %4358 = vrcp.f32 %v640_v39 }
 0x4a6   :  { %v974_v42 = vpop.xlane.xlu0 %973 }
 0x4a8   :  { %v807_v44 = vpop.xlane.xlu1 %806 }
 0x4a9   :  { %4360 = vrcp.f32 %v807_v44 }
 0x4aa   :  { %4362 = vrcp.f32 %v974_v42  ;;  %v1308_v53 = vpop.xlane.xlu0 %1307 }
 0x4ac   :  { %v1145_v52 = vpop.permute.xlu1 %1144 }
 0x4b0   :  { %v4359_v46 = vpop.eup %4358 }
 0x4b1   :  { %v642_v47 = vmul.f32 %v4359_v46, %v4343_v16  ;;  %v1475_v55 = vpop.xlane.xlu0 %1474  ;;  %v1587_v16 = vld [vmem:[%s5216_s7 + $0x8] sm:$0xff] }
 0x4b2   :  { %4146 = vmatprep.subr.mxu0 %v1587_v16 }
 0x4b3   :  { %4090 = vmatmul.mubr.msk.f32.vlgmr.msra.gmra.mxu1 %vm208_vm2, %v642_v47  ;;  %4147 = vmatpush3.msra.mxu0 %v1587_v16 }
 0x4b4   :  { %4098 = vmatpush3.msra.mxu1 %v811_v38  ;;  %4099 = vmatprep.mubr.msk.f32.mxu1 %vm4441_vm1, %v4440_v40 }
 0x4b5   :  { %4107 = vmatprep.subr.mxu1 %v4440_v40  ;;  %v1312_v59 = vpop.permute.xlu0 %1311  ;;  %4148 = vmatprep.subr.mxu0 %v1586_v17 }
 0x4b6   :  { %v4361_v48 = vpop.eup %4360  ;;  %4149 = vmatpush3.msra.mxu0 %v1586_v17 }
 0x4b7   :  { %v809_v49 = vmul.f32 %v4361_v48, %v4347_v21  ;;  %v4363_v50 = vpop.eup %4362 }
 0x4b8   :  { %v976_v51 = vmul.f32 %v4363_v50, %v4740_v20 }
 0x4b9   :  { %4100 = vmatmul.mubr.msk.f32.vlgmr.msra.gmra.mxu1 %vm208_vm2, %v809_v49 }
 0x4ba   :  { %4108 = vmatpush3.msra.mxu1 %v978_v41  ;;  %4109 = vmatprep.mubr.msk.f32.mxu1 %vm4441_vm1, %v4440_v40 }
 0x4bb   :  { %4117 = vmatprep.subr.mxu1 %v4440_v40 }
 0x4bd   :  { %4110 = vmatmul.mubr.msk.f32.vlgmr.msra.gmra.mxu1 %vm208_vm2, %v976_v51 }
 0x4be   :  { %4118 = vmatpush3.msra.mxu1 %v1145_v52  ;;  %4119 = vmatprep.mubr.msk.f32.mxu1 %vm4441_vm1, %v4440_v40 }
 0x4bf   :  { %4127 = vmatprep.subr.mxu1 %v4440_v40 }
 0x4dd   :  { %v1141_v54 = vpop.xlane.xlu1 %1140 }
 0x4de   :  { %4364 = vrcp.f32 %v1141_v54  ;;  %v1727_v54 = vld [vmem:[%s5220_s11 + $0x18] sm:$0xff] }
 0x4df   :  { %4366 = vrcp.f32 %v1308_v53 }
 0x4e0   :  { %4368 = vrcp.f32 %v1475_v55  ;;  %v1726_v55 = vld [vmem:[%s5220_s11 + $0x10] sm:$0xff] }
 0x4e1   :  { %v1479_v62 = vpop.permute.xlu1 %1478 }
 0x4eb   :  { %v4365_v56 = vpop.eup %4364 }
 0x4ec   :  { %v1143_v57 = vmul.f32 %v4365_v56, %v4353_v30  ;;  %v4367_v58 = vpop.eup %4366  ;;  %v1725_v56 = vld [vmem:[%s5220_s11 + $0x8] sm:$0xff] }
 0x4ed   :  { %v1310_v60 = vmul.f32 %v4367_v58, %v4744_v23  ;;  %v4369_v61 = vpop.eup %4368  ;;  %v1825_v58 = vld [vmem:[%s5222_s13 + $0x38] sm:$0xff] }
 0x4ee   :  { %4120 = vmatmul.mubr.msk.f32.vlgmr.msra.gmra.mxu1 %vm208_vm2, %v1143_v57  ;;  %v1477_v63 = vmul.f32 %v4369_v61, %v4749_v26  ;;  %v1724_v57 = vld [vmem:[%s5220_s11] sm:$0xff]  ;;  %4164 = vmatprep.subr.mxu0 %v1825_v58 }
 0x4ef   :  { %4128 = vmatpush3.msra.mxu1 %v1312_v59  ;;  %4129 = vmatprep.mubr.msk.f32.mxu1 %vm4441_vm1, %v4440_v40  ;;  %v1824_v59 = vld [vmem:[%s5222_s13 + $0x30] sm:$0xff]  ;;  %v1822_v61 = vld [vmem:[%s5222_s13 + $0x20] sm:$0xff] }
 0x4f0   :  { %4137 = vmatprep.subr.mxu1 %v4440_v40 }
 0x4f2   :  { %4130 = vmatmul.mubr.msk.f32.vlgmr.msra.gmra.mxu1 %vm208_vm2, %v1310_v60  ;;  %v1823_v60 = vld [vmem:[%s5222_s13 + $0x28] sm:$0xff] }
 0x4f3   :  { %4138 = vmatpush3.msra.mxu1 %v1479_v62  ;;  %4139 = vmatprep.mubr.msk.f32.mxu1 %vm4441_vm1, %v4440_v40 }
 0x4f4   :  { %4153 = vmatprep.subr.mxu1 %v1727_v54 }
 0x4f6   :  { %4140 = vmatmul.mubr.msk.f32.vlgmr.msra.gmra.mxu1 %vm208_vm2, %v1477_v63 }
 0x4f7   :  { %4154 = vmatpush3.msra.mxu1 %v1727_v54 }
 0x4f8   :  { %4155 = vmatprep.subr.mxu1 %v1726_v55 }
 0x4f9   :  { %4156 = vmatpush3.msra.mxu1 %v1726_v55 }
 0x4fa   :  { %4157 = vmatprep.subr.mxu1 %v1725_v56 }
 0x4fb   :  { %4158 = vmatpush3.msra.mxu1 %v1725_v56 }
 0x4fc   :  { %4159 = vmatprep.subr.mxu1 %v1724_v57 }
 0x4fd   :  { %4160 = vmatpush3.msra.mxu1 %v1724_v57 }
 0x53e   :  { %v375_v0 = vpop.f32.mrf.mxu1 }
 0x540   :  { %v4071_v1 = vpop.f32.mrf.mxu1 }
 0x542   :  { %v548_v2 = vpop.f32.mrf.mxu1 }
 0x544   :  { %v4081_v3 = vpop.f32.mrf.mxu1 }
 0x573   :  { %v715_v8 = vpop.f32.mrf.mxu1 }
 0x574   :  { %1556 = vrot.lane.b32.xlu0 %v715_v8, %s5232_s29 }
 0x575   :  { %v4091_v9 = vpop.f32.mrf.mxu1 }
 0x576   :  { %v3853_v9 = vld [vmem:[%s5218_s9] ss:$0 sm:$0xff] }
 0x579   :  { %v882_v10 = vpop.f32.mrf.mxu1 }
 0x57a   :  { %1558 = vrot.lane.b32.xlu1 %v882_v10, %s5232_s29 }
 0x57b   :  { %v4101_v11 = vpop.f32.mrf.mxu1 }
 0x57c   :  { %v3854_v11 = vld [vmem:[%s5219_s10] ss:$0 sm:$0xff] }
 0x57d   :  { %v1049_v12 = vpop.f32.mrf.mxu1 }
 0x57e   :  { %1564 = vrot.lane.b32.xlu0 %v1049_v12, %s5240_s0 }
 0x57f   :  { %v4111_v13 = vpop.f32.mrf.mxu1 }
 0x5ae   :  { %v1216_v18 = vpop.f32.mrf.mxu1 }
 0x5af   :  { %1566 = vrot.lane.b32.xlu1 %v1216_v18, %s5240_s0  ;;  %v1821_v18 = vld [vmem:[%s5222_s13 + $0x18] sm:$0xff] }
 0x5b0   :  { %v4121_v19 = vpop.f32.mrf.mxu1 }
 0x5b1   :  { %v1820_v19 = vld [vmem:[%s5222_s13 + $0x10] sm:$0xff] }
 0x5b2   :  { %v1383_v20 = vpop.f32.mrf.mxu1 }
 0x5b3   :  { %1572 = vrot.lane.b32.xlu0 %v1383_v20, %s5238_s22  ;;  %v1819_v20 = vld [vmem:[%s5222_s13 + $0x8] sm:$0xff] }
 0x5b4   :  { %v4131_v21 = vpop.f32.mrf.mxu1 }
 0x5b5   :  { %v1818_v21 = vld [vmem:[%s5222_s13] sm:$0xff] }
 0x5b6   :  { %v1550_v22 = vpop.f32.mrf.mxu1 }
 0x5b7   :  { %1574 = vrot.lane.b32.xlu1 %v1550_v22, %s5238_s22  ;;  %s5247_s22 = sld [smem:[#allocation7_spill]] }
 0x5b8   :  { %v4141_v23 = vpop.f32.mrf.mxu1 }
 0x5bd   :  { %v3855_v22 = vld [vmem:[%s5247_s22] ss:$0 sm:$0xff] }
 0x5e6   :  { %v1557_v24 = vpop.permute.xlu0 %1556 }
 0x5e7   :  { %v1578_v27 = vsel %vm208_vm2, %v375_v0, %v1557_v24 }
 0x5ec   :  { %v1559_v25 = vpop.permute.xlu1 %1558 }
 0x5ed   :  { %v1579_v32 = vsel %vm208_vm2, %v548_v2, %v1559_v25 }
 0x5f0   :  { %v1565_v26 = vpop.permute.xlu0 %1564 }
 0x5f1   :  { %v1581_v28 = vsel %vm1580_vm7, %v1578_v27, %v1565_v26 }
 0x621   :  { %v1567_v29 = vpop.permute.xlu1 %1566 }
 0x622   :  { %v1582_v33 = vsel %vm1580_vm7, %v1579_v32, %v1567_v29  ;;  %v3858_v29 = vld [vmem:[%s5223_s14] ss:$0 sm:$0xff] }
 0x625   :  { %v1573_v30 = vpop.permute.xlu0 %1572 }
 0x626   :  { %v1584_v31 = vsel %vm1583_vm8, %v1581_v28, %v1573_v30 }
 0x627   :  { %4150 = vmatprep.mubr.msk.f32.mxu0 %vm69_vm0, %v1584_v31 }
 0x629   :  { %v1575_v34 = vpop.permute.xlu1 %1574 }
 0x62a   :  { %v1585_v35 = vsel %vm1583_vm8, %v1582_v33, %v1575_v34 }
 0x62b   :  { %4151 = vmatmul.mubr.msk.f32.vlgmr.msra.gmra.mxu0 %vm69_vm0, %v1585_v35 }
 0x62c   :  { %4165 = vmatpush3.msra.mxu0 %v1825_v58  ;;  %v3863_v58 = vld [vmem:[%s5212_s3 + $0x1] ss:$0 sm:$0xff] }
 0x62d   :  { %4166 = vmatprep.subr.mxu0 %v1824_v59 }
 0x62e   :  { %4167 = vmatpush3.msra.mxu0 %v1824_v59 }
 0x62f   :  { %4168 = vmatprep.subr.mxu0 %v1823_v60 }
 0x630   :  { %4169 = vmatpush3.msra.mxu0 %v1823_v60 }
 0x631   :  { %4170 = vmatprep.subr.mxu0 %v1822_v61 }
 0x632   :  { %4171 = vmatpush3.msra.mxu0 %v1822_v61 }
 0x633   :  { %4172 = vmatprep.subr.mxu0 %v1821_v18 }
 0x634   :  { %4173 = vmatpush3.msra.mxu0 %v1821_v18 }
 0x635   :  { %4174 = vmatprep.subr.mxu0 %v1820_v19 }
 0x636   :  { %4175 = vmatpush3.msra.mxu0 %v1820_v19 }
 0x637   :  { %4176 = vmatprep.subr.mxu0 %v1819_v20 }
 0x638   :  { %4177 = vmatpush3.msra.mxu0 %v1819_v20 }
 0x639   :  { %4178 = vmatprep.subr.mxu0 %v1818_v21 }
 0x63a   :  { %4179 = vmatpush3.msra.mxu0 %v1818_v21 }
 0x63b   :  { %4204 = vmatprep.subr.mxu0 %v4440_v40 }
 0x6eb   :  { %v4152_v37 = vpop.f32.mrf.mxu0 }
 0x6ec   :  { %v1675_v45 = vadd.f32 %v4152_v37, %v3850_v36 }
 0x6ed   :  { %v1669_v43 = vpop.f32.mrf.mxu0 }
 0x6ee   :  { %v4824_v38 = vadd.f32 %v1675_v45, %v4563_v7  ;;  %v1670_v39 = vadd.f32 %v3850_v36, %v1669_v43 }
 0x6f0   :  { %v4827_v41 = vadd.f32 %v1670_v39, %v4561_v6  ;;  %v1685_v42 = vsel %vm69_vm0, %v4824_v38, 0.0 }
 0x6f1   :  { %1686 = vadd.xlane.f32.xlu1 %v1685_v42 }
 0x6f2   :  { %v1682_v44 = vsel %vm69_vm0, %v4827_v41, 0.0 }
 0x6f3   :  { %1683 = vadd.xlane.f32.xlu0 %v1682_v44 }
 0x77a   :  { %v1687_v46 = vpop.xlane.xlu1 %1686 }
 0x77b   :  { %v1689_v47 = vmul.f32 0.03125, %v1687_v46 }
 0x77c   :  { %v1684_v48 = vpop.xlane.xlu0 %1683 }
 0x77d   :  { %v1688_v49 = vmul.f32 0.03125, %v1684_v48  ;;  %v1691_v50 = vsub.f32 %v4824_v38, %v1689_v47 }
 0x77f   :  { %v1690_v7 = vsub.f32 %v4827_v41, %v1688_v49  ;;  %v1693_v52 = vmul.f32 %v1691_v50, %v1691_v50  ;;  %v3868_v49 = vld [vmem:[%s5214_s5 + $0x38] sm:$0xff] }
 0x780   :  { %4183 = vmatprep.subr.mxu1 %v3868_v49 }
 0x781   :  { %v1692_v51 = vmul.f32 %v1690_v7, %v1690_v7  ;;  %v1697_v53 = vsel %vm69_vm0, %v1693_v52, 0.0 }
 0x783   :  { %v1694_v6 = vsel %vm69_vm0, %v1692_v51, 0.0  ;;  %v3865_v51 = vld [vmem:[%s5214_s5 + $0x20] sm:$0xff] }
 0x784   :  { %1695 = vadd.xlane.f32.xlu0 %v1694_v6 }
 0x788   :  { %1698 = vadd.xlane.f32.xlu0 %v1697_v53 }
 0x80d   :  { %v1696_v62 = vpop.xlane.xlu0 %1695 }
 0x80e   :  { %v1700_v63 = vmul.f32 0.03125, %v1696_v62 }
 0x810   :  { %v1702_v0 = vadd.f32 1e-06, %v1700_v63  ;;  %v3864_v63 = vld [vmem:[%s5213_s4 + $0x1] ss:$0 sm:$0xff]  ;;  %s5248_s4 = smov 56  }
 0x811   :  { %v1699_v1 = vpop.xlane.xlu0 %1698 }
 0x812   :  { %4370 = vrsqrt.f32 %v1702_v0  ;;  %v1701_v2 = vmul.f32 0.03125, %v1699_v1 }
 0x814   :  { %v1703_v3 = vadd.f32 1e-06, %v1701_v2 }
 0x816   :  { %4372 = vrsqrt.f32 %v1703_v3  ;;  %v3870_v3 = vld [vmem:[%s5215_s6 + $0x1] ss:$0 sm:$0xff]  ;;  %s5249_s6 = smov 48  }
 0x81f   :  { %v4371_v8 = vpop.eup %4370 }
 0x820   :  { %v1706_v10 = vmul.f32 %v4371_v8, %v1690_v7  ;;  %v3866_v7 = vld [vmem:[%s5214_s5 + $0x28] sm:$0xff] }
 0x822   :  { %v1714_v12 = vmul.f32 %v3853_v9, %v1706_v10 }
 0x823   :  { %v4373_v13 = vpop.eup %4372 }
 0x824   :  { %v1707_v14 = vmul.f32 %v4373_v13, %v1691_v50  ;;  %v1722_v15 = vadd.f32 %v3854_v11, %v1714_v12  ;;  %v3867_v50 = vld [vmem:[%s5214_s5 + $0x30] sm:$0xff] }
 0x826   :  { %v1715_v16 = vmul.f32 %v3853_v9, %v1707_v14  ;;  %4161 = vmatprep.mubr.msk.f32.mxu1 %vm69_vm0, %v1722_v15 }
 0x828   :  { %v1723_v17 = vadd.f32 %v3854_v11, %v1715_v16 }
 0x82a   :  { %4162 = vmatmul.mubr.msk.f32.vlgmr.msra.gmra.mxu1 %vm69_vm0, %v1723_v17 }
 0x82b   :  { %4184 = vmatpush3.msra.mxu1 %v3868_v49 }
 0x82c   :  { %4185 = vmatprep.subr.mxu1 %v3867_v50 }
 0x82d   :  { %4186 = vmatpush3.msra.mxu1 %v3867_v50 }
 0x82e   :  { %4187 = vmatprep.subr.mxu1 %v3866_v7 }
 0x82f   :  { %4188 = vmatpush3.msra.mxu1 %v3866_v7 }
 0x830   :  { %4189 = vmatprep.subr.mxu1 %v3865_v51 }
 0x831   :  { %4190 = vmatpush3.msra.mxu1 %v3865_v51 }
 0x832   :  { %4194 = vmatprep.subr.mxu1 %v4440_v40 }
 0x8ea   :  { %v4163_v23 = vpop.f32.mrf.mxu1 }
 0x8eb   :  { %v1813_v24 = vadd.f32 %v4163_v23, %v3855_v22 }
 0x8ec   :  { %v1807_v25 = vpop.f32.mrf.mxu1 }
 0x8ed   :  { %v1808_v26 = vadd.f32 %v3855_v22, %v1807_v25  ;;  %v1817_v28 = vmax.f32 %v1813_v24, 0.0 }
 0x8ef   :  { %v1816_v27 = vmax.f32 %v1808_v26, 0.0 }
 0x8f1   :  { %4180 = vmatprep.mubr.msk.f32.mxu0 %vm1833_vm9, %v1816_v27 }
 0x8f2   :  { %4181 = vmatmul.mubr.msk.f32.vlgmr.msra.gmra.mxu0 %vm1833_vm9, %v1817_v28 }
 0x8f3   :  { %4206 = vmatprep.mubr.msk.f32.mxu0 %vm4441_vm1, %v4440_v40 }
 0x9b2   :  { %v4182_v30 = vpop.f32.mrf.mxu0 }
 0x9b3   :  { %v1912_v31 = vadd.f32 %v4182_v30, %v3858_v29 }
 0x9b4   :  { %v1906_v32 = vpop.f32.mrf.mxu0 }
 0x9b5   :  { %v4893_v33 = vadd.f32 %v1912_v31, %v4824_v38  ;;  %v1907_v34 = vadd.f32 %v3858_v29, %v1906_v32 }
 0x9b7   :  { %v4896_v35 = vadd.f32 %v1907_v34, %v4827_v41  ;;  %v1924_v36 = vsel %vm69_vm0, %v4893_v33, 0.0 }
 0x9b8   :  { %1925 = vadd.xlane.f32.xlu1 %v1924_v36 }
 0x9b9   :  { %v1921_v37 = vsel %vm69_vm0, %v4896_v35, 0.0 }
 0x9ba   :  { %1922 = vadd.xlane.f32.xlu0 %v1921_v37 }
 0xa41   :  { %v1926_v45 = vpop.xlane.xlu1 %1925 }
 0xa42   :  { %v1928_v43 = vmul.f32 0.03125, %v1926_v45 }
 0xa43   :  { %v1923_v39 = vpop.xlane.xlu0 %1922 }
 0xa44   :  { %v1930_v42 = vsub.f32 %v4893_v33, %v1928_v43  ;;  %v1927_v44 = vmul.f32 0.03125, %v1923_v39 }
 0xa46   :  { %v1929_v38 = vsub.f32 %v4896_v35, %v1927_v44  ;;  %v1932_v46 = vmul.f32 %v1930_v42, %v1930_v42 }
 0xa48   :  { %v1936_v41 = vsel %vm69_vm0, %v1932_v46, 0.0  ;;  %v1931_v47 = vmul.f32 %v1929_v38, %v1929_v38 }
 0xa49   :  { %1937 = vadd.xlane.f32.xlu1 %v1936_v41 }
 0xa4a   :  { %v1933_v48 = vsel %vm69_vm0, %v1931_v47, 0.0 }
 0xa4b   :  { %1934 = vadd.xlane.f32.xlu0 %v1933_v48 }
 0xad2   :  { %v1938_v6 = vpop.xlane.xlu1 %1937 }
 0xad3   :  { %v1940_v52 = vmul.f32 0.03125, %v1938_v6 }
 0xad4   :  { %v1935_v53 = vpop.xlane.xlu0 %1934 }
 0xad5   :  { %v1942_v54 = vadd.f32 1e-06, %v1940_v52  ;;  %v1939_v55 = vmul.f32 0.03125, %v1935_v53 }
 0xad7   :  { %4374 = vrsqrt.f32 %v1942_v54  ;;  %v1941_v56 = vadd.f32 1e-06, %v1939_v55 }
 0xad9   :  { %4376 = vrsqrt.f32 %v1941_v56 }
 0xae4   :  { %v4375_v57 = vpop.eup %4374 }
 0xae5   :  { %v1946_v59 = vmul.f32 %v4375_v57, %v1930_v42 }
 0xae6   :  { %v4377_v60 = vpop.eup %4376 }
 0xae7   :  { %v1945_v61 = vmul.f32 %v4377_v60, %v1929_v38  ;;  %v1954_v62 = vmul.f32 %v3863_v58, %v1946_v59 }
 0xae9   :  { %v1953_v0 = vmul.f32 %v3863_v58, %v1945_v61  ;;  %v1962_v2 = vadd.f32 %v3864_v63, %v1954_v62 }
 0xaeb   :  { %v1961_v1 = vadd.f32 %v3864_v63, %v1953_v0 }
 0xaed   :  { %4191 = vmatprep.mubr.msk.f32.mxu1 %vm69_vm0, %v1961_v1 }
 0xaee   :  { %4192 = vmatmul.mubr.msk.f32.vlgmr.msra.gmra.mxu1 %vm69_vm0, %v1962_v2 }
 0xaef   :  { %4196 = vmatprep.mubr.msk.f32.mxu1 %vm4441_vm1, %v4440_v40 }
 0xbae   :  { %v4193_v8 = vpop.f32.mrf.mxu1 }
 0xbaf   :  { %v4932_v9 = vadd.f32 %v4193_v8, %v3870_v3 }
 0xbb0   :  { %v2048_v10 = vpop.f32.mrf.mxu1 }
 0xbb1   :  { %v4934_v11 = vadd.f32 %v3870_v3, %v2048_v10  ;;  %2224 = vrot.lane.b32.xlu1 %v4932_v9, %s4442_s30 }
 0xbb3   :  { %2058 = vrot.lane.b32.xlu0 %v4934_v11, %s4442_s30  ;;  %s5250_s30 = smov 40  }
 0xbb5   :  { %2391 = vrot.lane.b32.xlu1 %v4934_v11, %s4443_s18 }
 0xbb7   :  { %2558 = vrot.lane.b32.xlu0 %v4932_v9, %s4443_s18  ;;  %s5251_s18 = smov 8  }
 0xbb9   :  { %2389 = vrot.lane.b32.xlu1 %v4934_v11, %s4444_s12 }
 0xbbb   :  { %2725 = vrot.lane.b32.xlu0 %v4934_v11, %s4445_s19 }
 0xbbd   :  { %2556 = vrot.lane.b32.xlu1 %v4932_v9, %s4444_s12  ;;  %s5252_s12 = smov 16  }
 0xbbf   :  { %2892 = vrot.lane.b32.xlu0 %v4932_v9, %s4445_s19 }
 0xbc1   :  { %2723 = vrot.lane.b32.xlu1 %v4934_v11, %s4446_s1 }
 0xbc3   :  { %3059 = vrot.lane.b32.xlu0 %v4934_v11, %s4447_s20 }
 0xbc5   :  { %2890 = vrot.lane.b32.xlu1 %v4932_v9, %s4446_s1 }
 0xbc7   :  { %3226 = vrot.lane.b32.xlu0 %v4932_v9, %s4447_s20 }
 0xbc9   :  { %3057 = vrot.lane.b32.xlu1 %v4934_v11, %s4448_s21 }
 0xbcd   :  { %3224 = vrot.lane.b32.xlu1 %v4932_v9, %s4448_s21 }
 0xc23   :  { %v2225_v12 = vpop.permute.xlu1 %2224 }
 0xc24   :  { %4205 = vmatpush3.xpose.msk.msra.mxu0 %vm208_vm2, %v2225_v12 }
 0xc25   :  { %v2059_v13 = vpop.permute.xlu0 %2058  ;;  %4214 = vmatprep.subr.mxu0 %v4440_v40 }
 0xc26   :  { %4195 = vmatpush3.xpose.msk.msra.mxu1 %vm208_vm2, %v2059_v13 }
 0xc27   :  { %4207 = vmatmul.mubr.msk.f32.vlgmr.msra.gmra.mxu0 %vm208_vm2, %v4932_v9  ;;  %v2392_v14 = vpop.permute.xlu1 %2391  ;;  %4199 = vmatprep.subr.mxu1 %v4440_v40 }
 0xc28   :  { %4215 = vmatpush3.xpose.msk.msra.mxu0 %vm208_vm2, %v2392_v14  ;;  %4216 = vmatprep.mubr.msk.f32.mxu0 %vm4441_vm1, %v4440_v40 }
 0xc29   :  { %4197 = vmatmul.mubr.msk.f32.vlgmr.msra.gmra.mxu1 %vm208_vm2, %v4934_v11  ;;  %v2559_v15 = vpop.permute.xlu0 %2558  ;;  %4224 = vmatprep.subr.mxu0 %v4440_v40 }
 0xc2a   :  { %4201 = vmatprep.mubr.msk.f32.mxu1 %vm4441_vm1, %v4440_v40 }
 0xc2b   :  { %v2390_v16 = vpop.permute.xlu1 %2389 }
 0xc2c   :  { %4217 = vmatmul.mubr.msk.f32.vlgmr.msra.gmra.mxu0 %vm208_vm2, %v2390_v16 }
 0xc2d   :  { %4225 = vmatpush3.xpose.msk.msra.mxu0 %vm208_vm2, %v2559_v15  ;;  %v2726_v17 = vpop.permute.xlu0 %2725  ;;  %4226 = vmatprep.mubr.msk.f32.mxu0 %vm4441_vm1, %v4440_v40 }
 0xc2e   :  { %4234 = vmatprep.subr.mxu0 %v4440_v40 }
 0xc2f   :  { %v2557_v18 = vpop.permute.xlu1 %2556 }
 0xc30   :  { %4227 = vmatmul.mubr.msk.f32.vlgmr.msra.gmra.mxu0 %vm208_vm2, %v2557_v18 }
 0xc31   :  { %4235 = vmatpush3.xpose.msk.msra.mxu0 %vm208_vm2, %v2726_v17  ;;  %v2893_v19 = vpop.permute.xlu0 %2892  ;;  %4236 = vmatprep.mubr.msk.f32.mxu0 %vm4441_vm1, %v4440_v40 }
 0xc32   :  { %4244 = vmatprep.subr.mxu0 %v4440_v40 }
 0xc33   :  { %v2724_v20 = vpop.permute.xlu1 %2723 }
 0xc34   :  { %4237 = vmatmul.mubr.msk.f32.vlgmr.msra.gmra.mxu0 %vm208_vm2, %v2724_v20 }
 0xc35   :  { %4245 = vmatpush3.xpose.msk.msra.mxu0 %vm208_vm2, %v2893_v19  ;;  %4246 = vmatprep.mubr.msk.f32.mxu0 %vm4441_vm1, %v4440_v40  ;;  %v3060_v21 = vpop.permute.xlu0 %3059 }
 0xc36   :  { %4254 = vmatprep.subr.mxu0 %v4440_v40 }
 0xc37   :  { %v2891_v22 = vpop.permute.xlu1 %2890 }
 0xc38   :  { %4247 = vmatmul.mubr.msk.f32.vlgmr.msra.gmra.mxu0 %vm208_vm2, %v2891_v22 }
 0xc39   :  { %4255 = vmatpush3.xpose.msk.msra.mxu0 %vm208_vm2, %v3060_v21  ;;  %4256 = vmatprep.mubr.msk.f32.mxu0 %vm4441_vm1, %v4440_v40  ;;  %v3227_v24 = vpop.permute.xlu0 %3226 }
 0xc3a   :  { %4264 = vmatprep.subr.mxu0 %v4440_v40 }
 0xc3b   :  { %v3058_v23 = vpop.permute.xlu1 %3057 }
 0xc3c   :  { %4257 = vmatmul.mubr.msk.f32.vlgmr.msra.gmra.mxu0 %vm208_vm2, %v3058_v23 }
 0xc3d   :  { %4265 = vmatpush3.xpose.msk.msra.mxu0 %vm208_vm2, %v3227_v24  ;;  %4266 = vmatprep.mubr.msk.f32.mxu0 %vm4441_vm1, %v4440_v40 }
 0xc3f   :  { %v3225_v25 = vpop.permute.xlu1 %3224 }
 0xc40   :  { %4267 = vmatmul.mubr.msk.f32.vlgmr.msra.gmra.mxu0 %vm208_vm2, %v3225_v25 }
 0xce7   :  { %v2296_v26 = vpop.f32.mrf.mxu0 }
 0xce8   :  { %v2300_v27 = vmul.f32 0.35355338, %v2296_v26 }
 0xce9   :  { %v2130_v28 = vpop.f32.mrf.mxu1  ;;  %v4208_v29 = vpop.f32.mrf.mxu0 }
 0xcea   :  { %v2134_v30 = vmul.f32 0.35355338, %v2130_v28  ;;  %v2301_v31 = vsel %vm463_vm5, -1e+09, %v2300_v27 }
 0xceb   :  { %v4198_v32 = vpop.f32.mrf.mxu1  ;;  %v2302_v34 = vsel %vm208_vm2, %v2301_v31, -inf }
 0xcec   :  { %2303 = vmax.xlane.f32.xlu1 %v2302_v34  ;;  %v2463_v36 = vpop.f32.mrf.mxu0  ;;  %v2135_v37 = vsel %vm290_vm6, -1e+09, %v2134_v30 }
 0xced   :  { %v2467_v45 = vmul.f32 0.35355338, %v2463_v36  ;;  %v2136_v43 = vsel %vm208_vm2, %v2135_v37, -inf }
 0xcee   :  { %v4218_v39 = vpop.f32.mrf.mxu0  ;;  %2137 = vmax.xlane.f32.xlu0 %v2136_v43 }
 0xcef   :  { %v2468_v42 = vsel %vm290_vm6, -1e+09, %v2467_v45 }
 0xcf0   :  { %v2630_v44 = vpop.f32.mrf.mxu0  ;;  %v2469_v38 = vsel %vm208_vm2, %v2468_v42, -inf }
 0xcf1   :  { %v2634_v46 = vmul.f32 0.35355338, %v2630_v44 }
 0xcf2   :  { %2470 = vmax.xlane.f32.xlu0 %v2469_v38  ;;  %v4228_v41 = vpop.f32.mrf.mxu0 }
 0xcf3   :  { %v2635_v47 = vsel %vm463_vm5, -1e+09, %v2634_v46 }
 0xcf4   :  { %v2797_v48 = vpop.f32.mrf.mxu0  ;;  %v2636_v49 = vsel %vm208_vm2, %v2635_v47, -inf }
 0xcf5   :  { %v2801_v50 = vmul.f32 0.35355338, %v2797_v48 }
 0xcf6   :  { %2637 = vmax.xlane.f32.xlu0 %v2636_v49  ;;  %v4238_v7 = vpop.f32.mrf.mxu0 }
 0xcf7   :  { %v2802_v51 = vsel %vm290_vm6, -1e+09, %v2801_v50 }
 0xcf8   :  { %v2964_v6 = vpop.f32.mrf.mxu0  ;;  %v2803_v52 = vsel %vm208_vm2, %v2802_v51, -inf }
 0xcf9   :  { %v2968_v53 = vmul.f32 0.35355338, %v2964_v6 }
 0xcfa   :  { %2804 = vmax.xlane.f32.xlu0 %v2803_v52  ;;  %v4248_v54 = vpop.f32.mrf.mxu0 }
 0xcfb   :  { %v5020_v55 = vsel %vm463_vm5, -1e+09, %v2968_v53 }
 0xcfc   :  { %v3131_v56 = vpop.f32.mrf.mxu0  ;;  %v2970_v57 = vsel %vm208_vm2, %v5020_v55, -inf }
 0xcfd   :  { %v3135_v58 = vmul.f32 0.35355338, %v3131_v56  ;;  %2971 = vmax.xlane.f32.xlu1 %v2970_v57 }
 0xcfe   :  { %v4258_v59 = vpop.f32.mrf.mxu0 }
 0xcff   :  { %v3136_v60 = vsel %vm290_vm6, -1e+09, %v3135_v58 }
 0xd00   :  { %v3298_v61 = vpop.f32.mrf.mxu0  ;;  %v3137_v62 = vsel %vm208_vm2, %v3136_v60, -inf }
 0xd01   :  { %3138 = vmax.xlane.f32.xlu0 %v3137_v62  ;;  %v3302_v0 = vmul.f32 0.35355338, %v3298_v61 }
 0xd02   :  { %v4268_v63 = vpop.f32.mrf.mxu0 }
 0xd03   :  { %v3303_v1 = vsel %vm463_vm5, -1e+09, %v3302_v0 }
 0xd04   :  { %v3304_v2 = vsel %vm208_vm2, %v3303_v1, -inf }
 0xd0e   :  { %2147 = vrot.lane.b32.xlu1 %v4934_v11, %s4450_s2 }
 0xd32   :  { %3305 = vmax.xlane.f32.xlu1 %v3304_v2 }
 0xd75   :  { %v2304_v3 = vpop.xlane.xlu1 %2303 }
 0xd76   :  { %v2305_v8 = vsub.f32 %v2301_v31, %v2304_v3 }
 0xd77   :  { %v2138_v10 = vpop.xlane.xlu0 %2137 }
 0xd78   :  { %v2306_v5 = vmul.f32 1.442695, %v2305_v8  ;;  %v2139_v12 = vsub.f32 %v2135_v37, %v2138_v10 }
 0xd7a   :  { %4378 = vpow2.f32 %v2306_v5  ;;  %v2140_v13 = vmul.f32 1.442695, %v2139_v12 }
 0xd7b   :  { %v2471_v19 = vpop.xlane.xlu0 %2470 }
 0xd7c   :  { %4380 = vpow2.f32 %v2140_v13  ;;  %v2472_v21 = vsub.f32 %v2468_v42, %v2471_v19 }
 0xd7e   :  { %v2473_v23 = vmul.f32 1.442695, %v2472_v21 }
 0xd7f   :  { %v2638_v20 = vpop.xlane.xlu0 %2637 }
 0xd80   :  { %v2639_v26 = vsub.f32 %v2635_v47, %v2638_v20  ;;  %4382 = vpow2.f32 %v2473_v23 }
 0xd82   :  { %v2640_v29 = vmul.f32 1.442695, %v2639_v26 }
 0xd83   :  { %v2805_v22 = vpop.xlane.xlu0 %2804 }
 0xd84   :  { %v2806_v24 = vsub.f32 %v2802_v51, %v2805_v22 }
 0xd86   :  { %v2972_v14 = vpop.xlane.xlu1 %2971  ;;  %v2807_v27 = vmul.f32 1.442695, %v2806_v24 }
 0xd87   :  { %v5032_v15 = vpop.eup %4378  ;;  %v2973_v47 = vsub.f32 %v5020_v55, %v2972_v14 }
 0xd88   :  { %v2308_v16 = vsel %vm208_vm2, %v5032_v15, 0.0  ;;  %4384 = vpow2.f32 %v2807_v27  ;;  %v3900_v27 = vld [vmem:[%s5216_s7 + $0x38] sm:$0xff] }
 0xd89   :  { %v4381_v17 = vpop.eup %4380  ;;  %2309 = vadd.xlane.f32.xlu1 %v2308_v16  ;;  %4386 = vpow2.f32 %v2640_v29  ;;  %v2974_v48 = vmul.f32 1.442695, %v2973_v47  ;;  %4274 = vmatprep.subr.mxu0 %v3900_v27  ;;  %v3898_v29 = vld [vmem:[%s5216_s7 + $0x28] sm:$0xff] }
 0xd8a   :  { %v2148_v4 = vpop.permute.xlu1 %2147  ;;  %v2142_v18 = vsel %vm208_vm2, %v4381_v17, 0.0  ;;  %v3139_v25 = vpop.xlane.xlu0 %3138  ;;  %4275 = vmatpush3.msra.mxu0 %v3900_v27 }
 0xd8b   :  { %4200 = vmatpush3.msra.mxu1 %v2148_v4  ;;  %2143 = vadd.xlane.f32.xlu0 %v2142_v18  ;;  %v3140_v28 = vsub.f32 %v3136_v60, %v3139_v25 }
 0xd8c   :  { %4209 = vmatprep.subr.mxu1 %v4440_v40 }
 0xd8d   :  { %v3141_v30 = vmul.f32 1.442695, %v3140_v28  ;;  %v4383_v32 = vpop.eup %4382  ;;  %v3899_v28 = vld [vmem:[%s5216_s7 + $0x30] sm:$0xff] }
 0xd8e   :  { %v2475_v37 = vsel %vm208_vm2, %v4383_v32, 0.0  ;;  %4276 = vmatprep.subr.mxu0 %v3899_v28 }
 0xd8f   :  { %4388 = vpow2.f32 %v3141_v30  ;;  %4277 = vmatpush3.msra.mxu0 %v3899_v28  ;;  %v3897_v30 = vld [vmem:[%s5216_s7 + $0x20] sm:$0xff]  ;;  %v3920_v28 = vld [vmem:[%s5222_s13 + $0x58] sm:$0xff] }
 0xd90   :  { %4278 = vmatprep.subr.mxu0 %v3898_v29 }
 0xd91   :  { %4279 = vmatpush3.msra.mxu0 %v3898_v29  ;;  %v3919_v29 = vld [vmem:[%s5222_s13 + $0x50] sm:$0xff] }
 0xd92   :  { %4280 = vmatprep.subr.mxu0 %v3897_v30 }
 0xd93   :  { %4281 = vmatpush3.msra.mxu0 %v3897_v30  ;;  %v3918_v30 = vld [vmem:[%s5222_s13 + $0x48] sm:$0xff] }
 0xd95   :  { %v4385_v45 = vpop.eup %4384 }
 0xd96   :  { %v4387_v43 = vpop.eup %4386  ;;  %v2809_v39 = vsel %vm208_vm2, %v4385_v45, 0.0 }
 0xd97   :  { %v2642_v44 = vsel %vm208_vm2, %v4387_v43, 0.0 }
 0xd9a   :  { %2480 = vrot.lane.b32.xlu1 %v4934_v11, %s5248_s4 }
 0xd9c   :  { %v5048_v42 = vpop.eup %4388 }
 0xd9d   :  { %v3143_v38 = vsel %vm208_vm2, %v5048_v42, 0.0 }
 0xd9e   :  { %2647 = vrot.lane.b32.xlu1 %v4932_v9, %s5248_s4 }
 0xda1   :  { %2313 = vrot.lane.b32.xlu0 %v4932_v9, %s4450_s2 }
 0xda2   :  { %2814 = vrot.lane.b32.xlu1 %v4934_v11, %s5249_s6 }
 0xdbb   :  { %v3306_v31 = vpop.xlane.xlu1 %3305 }
 0xdbc   :  { %v3307_v34 = vsub.f32 %v3303_v1, %v3306_v31 }
 0xdbe   :  { %v3308_v36 = vmul.f32 1.442695, %v3307_v34 }
 0xdc0   :  { %4390 = vpow2.f32 %v3308_v36  ;;  %2476 = vadd.xlane.f32.xlu0 %v2475_v37 }
 0xdc1   :  { %4392 = vpow2.f32 %v2974_v48 }
 0xdc4   :  { %2810 = vadd.xlane.f32.xlu0 %v2809_v39 }
 0xdc6   :  { %2643 = vadd.xlane.f32.xlu1 %v2642_v44 }
 0xdc8   :  { %3144 = vadd.xlane.f32.xlu0 %v3143_v38 }
 0xdcd   :  { %v5053_v46 = vpop.eup %4390 }
 0xdce   :  { %v3310_v41 = vsel %vm208_vm2, %v5053_v46, 0.0  ;;  %v4393_v49 = vpop.eup %4392 }
 0xdcf   :  { %3311 = vadd.xlane.f32.xlu0 %v3310_v41  ;;  %v2976_v50 = vsel %vm208_vm2, %v4393_v49, 0.0 }
 0xdd7   :  { %2981 = vrot.lane.b32.xlu1 %v4932_v9, %s5249_s6 }
 0xde5   :  { %3148 = vrot.lane.b32.xlu0 %v4934_v11, %s5250_s30 }
 0xdfb   :  { %2977 = vadd.xlane.f32.xlu1 %v2976_v50 }
 0xe0c   :  { %3315 = vrot.lane.b32.xlu1 %v4932_v9, %s5250_s30 }
 0xe12   :  { %v2310_v7 = vpop.xlane.xlu1 %2309 }
 0xe14   :  { %v2144_v51 = vpop.xlane.xlu0 %2143 }
 0xe15   :  { %4394 = vrcp.f32 %v2144_v51  ;;  %v3902_v51 = vld [vmem:[%s5217_s8 + $0x1] ss:$0 sm:$0xff] }
 0xe16   :  { %4396 = vrcp.f32 %v2310_v7  ;;  %v2481_v55 = vpop.permute.xlu1 %2480 }
 0xe18   :  { %v2314_v54 = vpop.permute.xlu0 %2313 }
 0xe1a   :  { %v2648_v9 = vpop.permute.xlu1 %2647 }
 0xe1e   :  { %v2815_v57 = vpop.permute.xlu1 %2814 }
 0xe22   :  { %v4395_v6 = vpop.eup %4394 }
 0xe23   :  { %v2146_v52 = vmul.f32 %v4395_v6, %v4381_v17  ;;  %v4397_v53 = vpop.eup %4396 }
 0xe24   :  { %v2312_v11 = vmul.f32 %v4397_v53, %v5032_v15 }
 0xe25   :  { %4202 = vmatmul.mubr.msk.f32.vlgmr.msra.gmra.mxu1 %vm208_vm2, %v2146_v52 }
 0xe26   :  { %4210 = vmatpush3.msra.mxu1 %v2314_v54  ;;  %4211 = vmatprep.mubr.msk.f32.mxu1 %vm4441_vm1, %v4440_v40 }
 0xe27   :  { %4219 = vmatprep.subr.mxu1 %v4440_v40 }
 0xe29   :  { %4212 = vmatmul.mubr.msk.f32.vlgmr.msra.gmra.mxu1 %vm208_vm2, %v2312_v11 }
 0xe2a   :  { %4220 = vmatpush3.msra.mxu1 %v2481_v55  ;;  %4221 = vmatprep.mubr.msk.f32.mxu1 %vm4441_vm1, %v4440_v40 }
 0xe2b   :  { %4229 = vmatprep.subr.mxu1 %v4440_v40 }
 0xe49   :  { %v2477_v56 = vpop.xlane.xlu0 %2476 }
 0xe4a   :  { %4398 = vrcp.f32 %v2477_v56 }
 0xe4d   :  { %v2811_v58 = vpop.xlane.xlu0 %2810 }
 0xe4f   :  { %v2644_v59 = vpop.xlane.xlu1 %2643 }
 0xe50   :  { %4400 = vrcp.f32 %v2644_v59 }
 0xe51   :  { %4402 = vrcp.f32 %v2811_v58  ;;  %v3145_v3 = vpop.xlane.xlu0 %3144 }
 0xe53   :  { %v2982_v2 = vpop.permute.xlu1 %2981 }
 0xe57   :  { %v4399_v60 = vpop.eup %4398 }
 0xe58   :  { %v2479_v61 = vmul.f32 %v4399_v60, %v4383_v32  ;;  %v3312_v10 = vpop.xlane.xlu0 %3311 }
 0xe5a   :  { %4222 = vmatmul.mubr.msk.f32.vlgmr.msra.gmra.mxu1 %vm208_vm2, %v2479_v61 }
 0xe5b   :  { %4230 = vmatpush3.msra.mxu1 %v2648_v9  ;;  %4231 = vmatprep.mubr.msk.f32.mxu1 %vm4441_vm1, %v4440_v40 }
 0xe5c   :  { %4239 = vmatprep.subr.mxu1 %v4440_v40  ;;  %v3149_v14 = vpop.permute.xlu0 %3148 }
 0xe5d   :  { %v4401_v62 = vpop.eup %4400 }
 0xe5e   :  { %v2646_v63 = vmul.f32 %v4401_v62, %v4387_v43  ;;  %v4403_v0 = vpop.eup %4402 }
 0xe5f   :  { %v2813_v1 = vmul.f32 %v4403_v0, %v4385_v45 }
 0xe60   :  { %4232 = vmatmul.mubr.msk.f32.vlgmr.msra.gmra.mxu1 %vm208_vm2, %v2646_v63 }
 0xe61   :  { %4240 = vmatpush3.msra.mxu1 %v2815_v57  ;;  %4241 = vmatprep.mubr.msk.f32.mxu1 %vm4441_vm1, %v4440_v40 }
 0xe62   :  { %4249 = vmatprep.subr.mxu1 %v4440_v40 }
 0xe64   :  { %4242 = vmatmul.mubr.msk.f32.vlgmr.msra.gmra.mxu1 %vm208_vm2, %v2813_v1  ;;  %v3912_v1 = vld [vmem:[%s5220_s11 + $0x38] sm:$0xff] }
 0xe65   :  { %4250 = vmatpush3.msra.mxu1 %v2982_v2  ;;  %4251 = vmatprep.mubr.msk.f32.mxu1 %vm4441_vm1, %v4440_v40  ;;  %v3911_v2 = vld [vmem:[%s5220_s11 + $0x30] sm:$0xff] }
 0xe66   :  { %4259 = vmatprep.subr.mxu1 %v4440_v40 }
 0xe84   :  { %v2978_v8 = vpop.xlane.xlu1 %2977 }
 0xe85   :  { %4404 = vrcp.f32 %v2978_v8  ;;  %v3909_v8 = vld [vmem:[%s5220_s11 + $0x20] sm:$0xff] }
 0xe86   :  { %4406 = vrcp.f32 %v3145_v3  ;;  %v3910_v3 = vld [vmem:[%s5220_s11 + $0x28] sm:$0xff] }
 0xe87   :  { %4408 = vrcp.f32 %v3312_v10  ;;  %v3924_v10 = vld [vmem:[%s5222_s13 + $0x78] sm:$0xff] }
 0xe88   :  { %v3316_v17 = vpop.permute.xlu1 %3315  ;;  %4296 = vmatprep.subr.mxu0 %v3924_v10 }
 0xe92   :  { %v4405_v5 = vpop.eup %4404 }
 0xe93   :  { %v2980_v12 = vmul.f32 %v4405_v5, %v4393_v49  ;;  %v4407_v13 = vpop.eup %4406  ;;  %v3923_v5 = vld [vmem:[%s5222_s13 + $0x70] sm:$0xff] }
 0xe94   :  { %v3147_v15 = vmul.f32 %v4407_v13, %v5048_v42  ;;  %v4409_v16 = vpop.eup %4408  ;;  %v3921_v13 = vld [vmem:[%s5222_s13 + $0x60] sm:$0xff] }
 0xe95   :  { %4252 = vmatmul.mubr.msk.f32.vlgmr.msra.gmra.mxu1 %vm208_vm2, %v2980_v12  ;;  %v3314_v4 = vmul.f32 %v4409_v16, %v5053_v46  ;;  %v3922_v12 = vld [vmem:[%s5222_s13 + $0x68] sm:$0xff] }
 0xe96   :  { %4260 = vmatpush3.msra.mxu1 %v3149_v14  ;;  %4261 = vmatprep.mubr.msk.f32.mxu1 %vm4441_vm1, %v4440_v40 }
 0xe97   :  { %4269 = vmatprep.subr.mxu1 %v4440_v40 }
 0xe99   :  { %4262 = vmatmul.mubr.msk.f32.vlgmr.msra.gmra.mxu1 %vm208_vm2, %v3147_v15 }
 0xe9a   :  { %4270 = vmatpush3.msra.mxu1 %v3316_v17  ;;  %4271 = vmatprep.mubr.msk.f32.mxu1 %vm4441_vm1, %v4440_v40 }
 0xe9b   :  { %4285 = vmatprep.subr.mxu1 %v3912_v1 }
 0xe9d   :  { %4272 = vmatmul.mubr.msk.f32.vlgmr.msra.gmra.mxu1 %vm208_vm2, %v3314_v4 }
 0xe9e   :  { %4286 = vmatpush3.msra.mxu1 %v3912_v1  ;;  %v3930_v1 = vld [vmem:[%s5225_s16] ss:$0 sm:$0xff] }
 0xe9f   :  { %4287 = vmatprep.subr.mxu1 %v3911_v2 }
 0xea0   :  { %4288 = vmatpush3.msra.mxu1 %v3911_v2 }
 0xea1   :  { %4289 = vmatprep.subr.mxu1 %v3910_v3 }
 0xea2   :  { %4290 = vmatpush3.msra.mxu1 %v3910_v3 }
 0xea3   :  { %4291 = vmatprep.subr.mxu1 %v3909_v8 }
 0xea4   :  { %4292 = vmatpush3.msra.mxu1 %v3909_v8 }
 0xee5   :  { %v2219_v18 = vpop.f32.mrf.mxu1 }
 0xee7   :  { %v4203_v19 = vpop.f32.mrf.mxu1 }
 0xee9   :  { %v2385_v20 = vpop.f32.mrf.mxu1 }
 0xeeb   :  { %v4213_v21 = vpop.f32.mrf.mxu1 }
 0xf1a   :  { %v2552_v22 = vpop.f32.mrf.mxu1 }
 0xf1b   :  { %3393 = vrot.lane.b32.xlu0 %v2552_v22, %s5251_s18  ;;  %v3908_v22 = vld [vmem:[%s5219_s10 + $0x1] ss:$0 sm:$0xff] }
 0xf1c   :  { %v4223_v23 = vpop.f32.mrf.mxu1 }
 0xf20   :  { %v2719_v24 = vpop.f32.mrf.mxu1 }
 0xf21   :  { %3395 = vrot.lane.b32.xlu1 %v2719_v24, %s5251_s18 }
 0xf22   :  { %v4233_v25 = vpop.f32.mrf.mxu1 }
 0xf24   :  { %v2886_v26 = vpop.f32.mrf.mxu1 }
 0xf25   :  { %3401 = vrot.lane.b32.xlu0 %v2886_v26, %s5252_s12 }
 0xf26   :  { %v4243_v40 = vpop.f32.mrf.mxu1 }
 0xf55   :  { %v3053_v31 = vpop.f32.mrf.mxu1 }
 0xf56   :  { %3403 = vrot.lane.b32.xlu1 %v3053_v31, %s5252_s12  ;;  %v3917_v31 = vld [vmem:[%s5222_s13 + $0x40] sm:$0xff]  ;;  %s4457_s12 = smov [#allocation2]  }
 0xf57   :  { %v4253_v32 = vpop.f32.mrf.mxu1  ;;  %s3810_s19 = sshll.u32 %s4457_s12, 4  ;;  %s3811_s19 = int_to_ptr.vmem [resolvable:$true] %s3810_s19 }
 0xf58   :  { %v3914_v32 = vld [vmem:[%s5247_s22 + $0x1] ss:$0 sm:$0xff]  ;;  %s4418_s1 = scalar_lea.vmem %s3811_s19, 256  ;;  %p4423_p1 = scmp.lt.s32.totalorder %s3811_s19, %s3811_s19 }
 0xf59   :  { %v3220_v34 = vpop.f32.mrf.mxu1  ;;  %p4419_p0 = scmp.ne.s32.totalorder %s3811_s19, %s4418_s1  ;;  %p4424_p2 = scmp.lt.s32.totalorder %s4418_s1, %s4418_s1 }
 0xf5a   :  { %3409 = vrot.lane.b32.xlu0 %v3220_v34, %s5253_s28 }
 0xf5b   :  { %v4263_v36 = vpop.f32.mrf.mxu1  ;;  %p4425_p3 = por %p4424_p2, %p4423_p1 }
 0xf5d   :  { %v3387_v37 = vpop.f32.mrf.mxu1  ;;  %p4426_p4 = pnand %p4425_p3, %p4419_p0 }
 0xf5e   :  { %3411 = vrot.lane.b32.xlu1 %v3387_v37, %s5253_s28 }
 0xf5f   :  { %v4273_v45 = vpop.f32.mrf.mxu1 }
 0xf8d   :  { %v3394_v43 = vpop.permute.xlu0 %3393 }
 0xf8e   :  { %v3415_v44 = vsel %vm208_vm2, %v2219_v18, %v3394_v43 }
 0xf93   :  { %v3396_v39 = vpop.permute.xlu1 %3395 }
 0xf94   :  { %v3416_v48 = vsel %vm208_vm2, %v2385_v20, %v3396_v39  ;;  %v3907_v20 = vld [vmem:[%s5218_s9 + $0x1] ss:$0 sm:$0xff] }
 0xf97   :  { %v3402_v42 = vpop.permute.xlu0 %3401 }
 0xf98   :  { %v3417_v38 = vsel %vm1580_vm7, %v3415_v44, %v3402_v42  ;;  %v3926_v42 = vld [vmem:[%s5223_s14 + $0x1] ss:$0 sm:$0xff] }
 0xfc8   :  { %v3404_v46 = vpop.permute.xlu1 %3403 }
 0xfc9   :  { %v3418_v49 = vsel %vm1580_vm7, %v3416_v48, %v3404_v46 }
 0xfcc   :  { %v3410_v41 = vpop.permute.xlu0 %3409 }
 0xfcd   :  { %v3419_v47 = vsel %vm1583_vm8, %v3417_v38, %v3410_v41 }
 0xfce   :  { %4282 = vmatprep.mubr.msk.f32.mxu0 %vm69_vm0, %v3419_v47 }
 0xfd0   :  { %v3412_v50 = vpop.permute.xlu1 %3411 }
 0xfd1   :  { %v3420_v7 = vsel %vm1583_vm8, %v3418_v49, %v3412_v50 }
 0xfd2   :  { %4283 = vmatmul.mubr.msk.f32.vlgmr.msra.gmra.mxu0 %vm69_vm0, %v3420_v7 }
 0xfd3   :  { %4297 = vmatpush3.msra.mxu0 %v3924_v10 }
 0xfd4   :  { %4298 = vmatprep.subr.mxu0 %v3923_v5 }
 0xfd5   :  { %4299 = vmatpush3.msra.mxu0 %v3923_v5 }
 0xfd6   :  { %4300 = vmatprep.subr.mxu0 %v3922_v12 }
 0xfd7   :  { %4301 = vmatpush3.msra.mxu0 %v3922_v12 }
 0xfd8   :  { %4302 = vmatprep.subr.mxu0 %v3921_v13 }
 0xfd9   :  { %4303 = vmatpush3.msra.mxu0 %v3921_v13 }
 0xfda   :  { %4304 = vmatprep.subr.mxu0 %v3920_v28 }
 0xfdb   :  { %4305 = vmatpush3.msra.mxu0 %v3920_v28 }
 0xfdc   :  { %4306 = vmatprep.subr.mxu0 %v3919_v29 }
 0xfdd   :  { %4307 = vmatpush3.msra.mxu0 %v3919_v29 }
 0xfde   :  { %4308 = vmatprep.subr.mxu0 %v3918_v30 }
 0xfdf   :  { %4309 = vmatpush3.msra.mxu0 %v3918_v30 }
 0xfe0   :  { %4310 = vmatprep.subr.mxu0 %v3917_v31 }
 0xfe1   :  { %4311 = vmatpush3.msra.mxu0 %v3917_v31 }
0x1092   :  { %v4284_v6 = vpop.f32.mrf.mxu0 }
0x1093   :  { %v3512_v52 = vadd.f32 %v4284_v6, %v3902_v51 }
0x1094   :  { %v3506_v53 = vpop.f32.mrf.mxu0 }
0x1095   :  { %v5126_v54 = vadd.f32 %v3512_v52, %v4893_v33  ;;  %v3507_v11 = vadd.f32 %v3902_v51, %v3506_v53 }
0x1097   :  { %v5129_v55 = vadd.f32 %v3507_v11, %v4896_v35  ;;  %v3524_v9 = vsel %vm69_vm0, %v5126_v54, 0.0 }
0x1098   :  { %3525 = vadd.xlane.f32.xlu1 %v3524_v9 }
0x1099   :  { %v3521_v56 = vsel %vm69_vm0, %v5129_v55, 0.0 }
0x109a   :  { %3522 = vadd.xlane.f32.xlu0 %v3521_v56 }
0x1121   :  { %v3526_v57 = vpop.xlane.xlu1 %3525 }
0x1122   :  { %v3528_v58 = vmul.f32 0.03125, %v3526_v57 }
0x1123   :  { %v3523_v59 = vpop.xlane.xlu0 %3522 }
0x1124   :  { %v3527_v60 = vmul.f32 0.03125, %v3523_v59  ;;  %v3530_v61 = vsub.f32 %v5126_v54, %v3528_v58 }
0x1126   :  { %v3529_v33 = vsub.f32 %v5129_v55, %v3527_v60  ;;  %v3532_v63 = vmul.f32 %v3530_v61, %v3530_v61 }
0x1128   :  { %v3531_v62 = vmul.f32 %v3529_v33, %v3529_v33  ;;  %v3536_v0 = vsel %vm69_vm0, %v3532_v63, 0.0 }
0x112a   :  { %v3533_v35 = vsel %vm69_vm0, %v3531_v62, 0.0 }
0x112b   :  { %3534 = vadd.xlane.f32.xlu0 %v3533_v35  ;;  %v3929_v35 = vld [vmem:[%s5224_s15] ss:$0 sm:$0xff] }
0x112f   :  { %3537 = vadd.xlane.f32.xlu0 %v3536_v0 }
0x11b4   :  { %v3535_v14 = vpop.xlane.xlu0 %3534 }
0x11b5   :  { %v3539_v15 = vmul.f32 0.03125, %v3535_v14 }
0x11b7   :  { %v3541_v16 = vadd.f32 1e-06, %v3539_v15 }
0x11b8   :  { %v3538_v17 = vpop.xlane.xlu0 %3537 }
0x11b9   :  { %4410 = vrsqrt.f32 %v3541_v16  ;;  %v3540_v4 = vmul.f32 0.03125, %v3538_v17 }
0x11bb   :  { %v3542_v18 = vadd.f32 1e-06, %v3540_v4 }
0x11bd   :  { %4412 = vrsqrt.f32 %v3542_v18 }
0x11c6   :  { %v4411_v19 = vpop.eup %4410 }
0x11c7   :  { %v3545_v21 = vmul.f32 %v4411_v19, %v3529_v33 }
0x11c9   :  { %v3553_v23 = vmul.f32 %v3907_v20, %v3545_v21 }
0x11ca   :  { %v4413_v24 = vpop.eup %4412 }
0x11cb   :  { %v3546_v25 = vmul.f32 %v4413_v24, %v3530_v61  ;;  %v3561_v26 = vadd.f32 %v3908_v22, %v3553_v23 }
0x11cd   :  { %v3554_v40 = vmul.f32 %v3907_v20, %v3546_v25  ;;  %4293 = vmatprep.mubr.msk.f32.mxu1 %vm69_vm0, %v3561_v26 }
0x11cf   :  { %v3562_v27 = vadd.f32 %v3908_v22, %v3554_v40 }
0x11d1   :  { %4294 = vmatmul.mubr.msk.f32.vlgmr.msra.gmra.mxu1 %vm69_vm0, %v3562_v27 }
0x1291   :  { %v4295_v34 = vpop.f32.mrf.mxu1 }
0x1292   :  { %v3654_v36 = vadd.f32 %v4295_v34, %v3914_v32 }
0x1293   :  { %v3648_v37 = vpop.f32.mrf.mxu1 }
0x1294   :  { %v3649_v45 = vadd.f32 %v3914_v32, %v3648_v37  ;;  %v3658_v39 = vmax.f32 %v3654_v36, 0.0 }
0x1296   :  { %v3657_v43 = vmax.f32 %v3649_v45, 0.0 }
0x1298   :  { %4312 = vmatprep.mubr.msk.f32.mxu0 %vm1833_vm9, %v3657_v43 }
0x1299   :  { %4313 = vmatmul.mubr.msk.f32.vlgmr.msra.gmra.mxu0 %vm1833_vm9, %v3658_v39 }
0x1359   :  { %v4314_v44 = vpop.f32.mrf.mxu0 }
0x135a   :  { %v3754_v38 = vadd.f32 %v4314_v44, %v3926_v42 }
0x135b   :  { %v3748_v46 = vpop.f32.mrf.mxu0 }
0x135c   :  { %v3758_v41 = vadd.f32 %v3754_v38, %v5126_v54  ;;  %v3749_v47 = vadd.f32 %v3926_v42, %v3748_v46 }
0x135e   :  { %v3757_v48 = vadd.f32 %v3749_v47, %v5129_v55  ;;  %v3764_v49 = vsel %vm69_vm0, %v3758_v41, 0.0 }
0x135f   :  { %3765 = vadd.xlane.f32.xlu1 %v3764_v49 }
0x1360   :  { %v3761_v50 = vsel %vm69_vm0, %v3757_v48, 0.0 }
0x1361   :  { %3762 = vadd.xlane.f32.xlu0 %v3761_v50 }
0x13e8   :  { %v3766_v7 = vpop.xlane.xlu1 %3765 }
0x13e9   :  { %v3768_v51 = vmul.f32 0.03125, %v3766_v7 }
0x13ea   :  { %v3763_v6 = vpop.xlane.xlu0 %3762 }
0x13eb   :  { %v3770_v52 = vsub.f32 %v3758_v41, %v3768_v51  ;;  %v3767_v53 = vmul.f32 0.03125, %v3763_v6 }
0x13ed   :  { %v3769_v11 = vsub.f32 %v3757_v48, %v3767_v53  ;;  %v3772_v9 = vmul.f32 %v3770_v52, %v3770_v52 }
0x13ef   :  { %v3776_v56 = vsel %vm69_vm0, %v3772_v9, 0.0  ;;  %v3771_v57 = vmul.f32 %v3769_v11, %v3769_v11 }
0x13f0   :  { %3777 = vadd.xlane.f32.xlu1 %v3776_v56 }
0x13f1   :  { %v3773_v54 = vsel %vm69_vm0, %v3771_v57, 0.0 }
0x13f2   :  { %3774 = vadd.xlane.f32.xlu0 %v3773_v54 }
0x1479   :  { %v3778_v55 = vpop.xlane.xlu1 %3777 }
0x147a   :  { %v3780_v58 = vmul.f32 0.03125, %v3778_v55 }
0x147b   :  { %v3775_v59 = vpop.xlane.xlu0 %3774 }
0x147c   :  { %v3782_v60 = vadd.f32 1e-06, %v3780_v58  ;;  %v3779_v61 = vmul.f32 0.03125, %v3775_v59 }
0x147e   :  { %4414 = vrsqrt.f32 %v3782_v60  ;;  %v3781_v33 = vadd.f32 1e-06, %v3779_v61 }
0x1480   :  { %4416 = vrsqrt.f32 %v3781_v33 }
0x148b   :  { %v4415_v62 = vpop.eup %4414 }
0x148c   :  { %v3786_v63 = vmul.f32 %v4415_v62, %v3770_v52 }
0x148d   :  { %v4417_v0 = vpop.eup %4416 }
0x148e   :  { %v3785_v2 = vmul.f32 %v4417_v0, %v3769_v11  ;;  %v3794_v3 = vmul.f32 %v3929_v35, %v3786_v63 }
0x1490   :  { %v3793_v8 = vmul.f32 %v3929_v35, %v3785_v2  ;;  %v3802_v10 = vadd.f32 %v3930_v1, %v3794_v3 }
0x1492   :  { %v3801_v5 = vadd.f32 %v3930_v1, %v3793_v8  ;;  %3804 = vst.msk [vmem:[#allocation2 + $0x8] sm:$0xff] %vm69_vm0, %v3802_v10 }
0x1494   :  { %3803 = vst.msk [vmem:[#allocation2] sm:$0xff] %vm69_vm0, %v3801_v5 }
0x1495   :  { %4429 = shalt.err (!%p4426_p4)
}
0x1496   :  { %s4458_s15 = smov 128  }
0x1497   :  { %3816 = dma.vmem_to_hbm [thread:$0]  %s3811_s19, 256, %s5226_s17, [#allocation3], %s4458_s15, %s4458_s15, %s5251_s18  }
0x1498   :  { %4438 = dma.done.wait [#allocation3], 256  }
0x1499   :  { %4439 = vsyncadd [#allocation3], 4294967040 }
0x149a   :  { %3820 = vsyncpa [#allocation3], 1 }

</bundles_post_ra>
